<compile_context>
chip_gen: v5e
topology: v5e:2x2
jax: 0.10.0
libtpu: 0.0.40
codegen_flags: <defaults>
</compile_context>

<pallas_src>
import jax
import jax.numpy as jnp
from jax import lax
from jax.experimental import pallas as pl
from jax.experimental.pallas import tpu as pltpu


def _leaky_relu(x, slope=0.1):
    # LeakyReLU(0.1): max(x, 0.1*x) is exact for both signs.
    return jnp.maximum(x, slope * x)


def _basic_block1_kernel(x_ref, w1_ref, s1_ref, b1_ref, w3_ref, s3_ref, b3_ref,
                         o_ref, pad_ref):
    # x_ref:   (1, C, H*W)        one image, NCHW flattened (lane-dense, HW on lanes)
    # w*_ref:  (9*C, C)           im2col weights, row = (ky, kx, c_in) row-major
    # s1/b1:   (1, C)             folded BN1 scale/shift (for the (HW, C) epilogue)
    # s3/b3:   (C, 1)             folded BN3 scale/shift (for the (C, HW) epilogue)
    # o_ref:   (1, C, H*W)
    # pad_ref: (H+2, W+2, C) f32  VMEM scratch holding the zero-padded activation
    C, HW = x_ref.shape[1], x_ref.shape[2]
    Hp, Wp = pad_ref.shape[0], pad_ref.shape[1]
    H, W = Hp - 2, Wp - 2

    def pad_hw(a_hwc):
        # (H, W, C) -> (H+2, W+2, C) zero SAME padding, built as one value.
        zc = jnp.zeros((H, 1, C), a_hwc.dtype)
        zr = jnp.zeros((1, Wp, C), a_hwc.dtype)
        body = jnp.concatenate([zc, a_hwc, zc], axis=1)
        return jnp.concatenate([zr, body, zr], axis=0)

    def im2col():
        # (HW, 9*C) patch matrix; column order = (ky, kx, c_in) row-major,
        # matching the wrapper's weight reshape.
        taps = [pad_ref[ky:ky + H, kx:kx + W, :].reshape(H * W, C)
                for ky in range(3) for kx in range(3)]
        return jnp.concatenate(taps, axis=-1)

    # Load the image in its native NCHW-flat layout (lane-dense); transpose to
    # (HW, C) on the XLU and pad straight into the scratch.
    x_chw = x_ref[0].astype(jnp.float32)                  # (C, HW)
    pad_ref[...] = pad_hw(x_chw.T.reshape(H, W, C))

    # conv1 (one fat K=9C MXU matmul) -> folded bn1 -> leaky_relu
    h = jnp.dot(im2col(), w1_ref[...], preferred_element_type=jnp.float32)
    h = _leaky_relu(h * s1_ref[...] + b1_ref[...])        # (HW, C)

    # Re-pad the intermediate for the second SAME conv (single scratch store).
    pad_ref[...] = pad_hw(h.reshape(H, W, C))

    # conv3 -> folded bn3, epilogue in lane-dense (C, HW) layout.
    y = jnp.dot(im2col(), w3_ref[...], preferred_element_type=jnp.float32)
    y_t = y.T                                             # (C, HW) via XLU
    out = _leaky_relu(y_t * s3_ref[...] + b3_ref[...] + x_chw)

    # MaxPool2d(1) and dropout(p=0) are identities for the default config.
    o_ref[...] = out.reshape(1, C, HW).astype(o_ref.dtype)


def basic_block1_forward(x_nchw, w1_oihw, bn1, w3_oihw, bn3, *, eps=1e-5):
    """Inference forward of BasicBlock1 (stride=1, no downsample, drop_rate=0).

    x_nchw:  (B, C, H, W) float32
    w*_oihw: (C, C, 3, 3) conv weights (PyTorch OIHW layout)
    bn*:     tuple (gamma, beta, running_mean, running_var), each shape (C,)
    Returns  (B, C, H, W).
    """
    B, C, H, W = x_nchw.shape
    x_flat = x_nchw.reshape(B, C, H * W)     # free reshape, lane-dense input

    def fold_bn(bn, shape):
        gamma, beta, mean, var = bn
        scale = gamma / jnp.sqrt(var + eps)
        shift = beta - mean * scale
        return (scale.reshape(shape).astype(jnp.float32),
                shift.reshape(shape).astype(jnp.float32))

    s1, b1 = fold_bn(bn1, (1, C))            # broadcast over rows of (HW, C)
    s3, b3 = fold_bn(bn3, (C, 1))            # broadcast over lanes of (C, HW)

    def fold_w(w_oihw):
        # OIHW -> (ky, kx, C_in, C_out) -> (9*C_in, C_out); row order matches im2col.
        return jnp.transpose(w_oihw, (2, 3, 1, 0)).reshape(9 * C, C).astype(jnp.float32)

    w1t, w3t = fold_w(w1_oihw), fold_w(w3_oihw)

    out_flat = pl.pallas_call(
        _basic_block1_kernel,
        out_shape=jax.ShapeDtypeStruct((B, C, H * W), x_nchw.dtype),
        grid_spec=pltpu.PrefetchScalarGridSpec(
            num_scalar_prefetch=0,
            grid=(B,),
            in_specs=[
                pl.BlockSpec((1, C, H * W), lambda b: (b, 0, 0)),
                pl.BlockSpec((9 * C, C), lambda b: (0, 0)),
                pl.BlockSpec((1, C), lambda b: (0, 0)),
                pl.BlockSpec((1, C), lambda b: (0, 0)),
                pl.BlockSpec((9 * C, C), lambda b: (0, 0)),
                pl.BlockSpec((C, 1), lambda b: (0, 0)),
                pl.BlockSpec((C, 1), lambda b: (0, 0)),
            ],
            out_specs=pl.BlockSpec((1, C, H * W), lambda b: (b, 0, 0)),
            scratch_shapes=[pltpu.VMEM((H + 2, W + 2, C), jnp.float32)],
        ),
        compiler_params=pltpu.CompilerParams(
            dimension_semantics=("parallel",),
        ),
    )(x_flat, w1t, s1, b1, w3t, s3, b3)

    return out_flat.reshape(B, C, H, W)      # free reshape back to NCHW


def _reference(x_nchw, w1_oihw, bn1, w3_oihw, bn3, eps=1e-5):
    # Pure-JAX/XLA reference of the PyTorch forward (eval mode).
    x = jnp.transpose(x_nchw, (0, 2, 3, 1))

    def conv(h, w_oihw):
        w_hwio = jnp.transpose(w_oihw, (2, 3, 1, 0))
        return lax.conv_general_dilated(
            h, w_hwio, window_strides=(1, 1), padding="SAME",
            dimension_numbers=("NHWC", "HWIO", "NHWC"))

    def bn(h, p):
        gamma, beta, mean, var = p
        return (h - mean) / jnp.sqrt(var + eps) * gamma + beta

    out = _leaky_relu(bn(conv(x, w1_oihw), bn1))
    out = bn(conv(out, w3_oihw), bn3)
    out = _leaky_relu(out + x)
    # MaxPool2d(1) and dropout(p=0) are identities.
    return jnp.transpose(out, (0, 3, 1, 2))


if __name__ == "__main__":
    key = jax.random.PRNGKey(0)
    ks = jax.random.split(key, 5)

    B, C, H, W = 2, 32, 16, 16   # batch, channels (inplanes == planes), spatial
    x = jax.random.normal(ks[0], (B, C, H, W), dtype=jnp.float32)

    w_std = (2.0 / (9 * C)) ** 0.5
    w1 = jax.random.normal(ks[1], (C, C, 3, 3), dtype=jnp.float32) * w_std
    w3 = jax.random.normal(ks[2], (C, C, 3, 3), dtype=jnp.float32) * w_std

    def make_bn(k):
        kg, kb, km, kv = jax.random.split(k, 4)
        gamma = 1.0 + 0.1 * jax.random.normal(kg, (C,), dtype=jnp.float32)
        beta = 0.1 * jax.random.normal(kb, (C,), dtype=jnp.float32)
        mean = 0.1 * jax.random.normal(km, (C,), dtype=jnp.float32)
        var = jax.random.uniform(kv, (C,), dtype=jnp.float32, minval=0.5, maxval=1.5)
        return gamma, beta, mean, var

    bn1 = make_bn(ks[3])
    bn3 = make_bn(ks[4])

    fwd = jax.jit(basic_block1_forward)
    out = jax.block_until_ready(fwd(x, w1, bn1, w3, bn3))

    ref = _reference(x, w1, bn1, w3, bn3)
    assert out.shape == (B, C, H, W)
    max_err = jnp.max(jnp.abs(out - ref))
    assert jnp.allclose(out, ref, atol=1e-4, rtol=1e-4), f"mismatch, max abs err {max_err}"

    print("KERNEL_OK")
</pallas_src>

<mosaic_0001>
module attributes {stable_mosaic.version = 11 : i64} {
  func.func @_basic_block1_kernel(%arg0: i32, %arg1: memref<1x32x256xf32, #tpu.memory_space<vmem>>, %arg2: memref<288x32xf32, #tpu.memory_space<vmem>>, %arg3: memref<1x32xf32, #tpu.memory_space<vmem>>, %arg4: memref<1x32xf32, #tpu.memory_space<vmem>>, %arg5: memref<288x32xf32, #tpu.memory_space<vmem>>, %arg6: memref<32x1xf32, #tpu.memory_space<vmem>>, %arg7: memref<32x1xf32, #tpu.memory_space<vmem>>, %arg8: memref<1x32x256xf32, #tpu.memory_space<vmem>>, %arg9: memref<18x18x32xf32, #tpu.memory_space<vmem>>) attributes {dimension_semantics = [#tpu.dimension_semantics<parallel>], iteration_bounds = array<i64: 2>, scalar_prefetch = 0 : i64, scratch_operands = 1 : i64, tpu.core_type = #tpu.core_type<tc>, window_params = [{transform_indices = @transform_0, window_bounds = array<i64: 1, 32, 256>}, {pipeline_mode = #tpu.pipeline_mode<synchronous>, transform_indices = @transform_1, window_bounds = array<i64: 288, 32>}, {pipeline_mode = #tpu.pipeline_mode<synchronous>, transform_indices = @transform_2, window_bounds = array<i64: 1, 32>}, {pipeline_mode = #tpu.pipeline_mode<synchronous>, transform_indices = @transform_3, window_bounds = array<i64: 1, 32>}, {pipeline_mode = #tpu.pipeline_mode<synchronous>, transform_indices = @transform_4, window_bounds = array<i64: 288, 32>}, {pipeline_mode = #tpu.pipeline_mode<synchronous>, transform_indices = @transform_5, window_bounds = array<i64: 32, 1>}, {pipeline_mode = #tpu.pipeline_mode<synchronous>, transform_indices = @transform_6, window_bounds = array<i64: 32, 1>}, {transform_indices = @transform_7, window_bounds = array<i64: 1, 32, 256>}]} {
    %c0 = arith.constant 0 : index
    %c0_0 = arith.constant 0 : index
    %c0_1 = arith.constant 0 : index
    %0 = vector.load %arg1[%c0, %c0_0, %c0_1] : memref<1x32x256xf32, #tpu.memory_space<vmem>>, vector<1x32x256xf32>
    %1 = vector.shape_cast %0 : vector<1x32x256xf32> to vector<32x256xf32>
    %2 = tpu.transpose %1, [1, 0] : vector<32x256xf32> -> vector<256x32xf32>
    %3 = vector.shape_cast %2 : vector<256x32xf32> to vector<16x16x32xf32>
    %cst = arith.constant 0.000000e+00 : f32
    %4 = vector.broadcast %cst : f32 to vector<16x1x32xf32>
    %cst_2 = arith.constant 0.000000e+00 : f32
    %5 = vector.broadcast %cst_2 : f32 to vector<1x18x32xf32>
    %6 = tpu.concatenate %4, %3, %4 in 1 : vector<16x1x32xf32>, vector<16x16x32xf32>, vector<16x1x32xf32> -> vector<16x18x32xf32>
    %7 = tpu.concatenate %5, %6, %5 in 0 : vector<1x18x32xf32>, vector<16x18x32xf32>, vector<1x18x32xf32> -> vector<18x18x32xf32>
    %c0_3 = arith.constant 0 : index
    %c0_4 = arith.constant 0 : index
    %c0_5 = arith.constant 0 : index
    %8 = vector.load %arg9[%c0_3, %c0_4, %c0_5] : memref<18x18x32xf32, #tpu.memory_space<vmem>>, vector<18x18x32xf32>
    tpu.vector_store %arg9[%c0_3, %c0_4, %c0_5], %7 {strides = array<i32>} : memref<18x18x32xf32, #tpu.memory_space<vmem>>, vector<18x18x32xf32>,
    %c0_6 = arith.constant 0 : index
    %c0_7 = arith.constant 0 : index
    %c0_8 = arith.constant 0 : index
    %9 = vector.load %arg9[%c0_6, %c0_7, %c0_8] : memref<18x18x32xf32, #tpu.memory_space<vmem>>, vector<16x16x32xf32>
    %10 = vector.shape_cast %9 : vector<16x16x32xf32> to vector<256x32xf32>
    %c0_9 = arith.constant 0 : index
    %c1 = arith.constant 1 : index
    %c0_10 = arith.constant 0 : index
    %11 = vector.load %arg9[%c0_9, %c1, %c0_10] : memref<18x18x32xf32, #tpu.memory_space<vmem>>, vector<16x16x32xf32>
    %12 = vector.shape_cast %11 : vector<16x16x32xf32> to vector<256x32xf32>
    %c0_11 = arith.constant 0 : index
    %c2 = arith.constant 2 : index
    %c0_12 = arith.constant 0 : index
    %13 = vector.load %arg9[%c0_11, %c2, %c0_12] : memref<18x18x32xf32, #tpu.memory_space<vmem>>, vector<16x16x32xf32>
    %14 = vector.shape_cast %13 : vector<16x16x32xf32> to vector<256x32xf32>
    %c1_13 = arith.constant 1 : index
    %c0_14 = arith.constant 0 : index
    %c0_15 = arith.constant 0 : index
    %15 = vector.load %arg9[%c1_13, %c0_14, %c0_15] : memref<18x18x32xf32, #tpu.memory_space<vmem>>, vector<16x16x32xf32>
    %16 = vector.shape_cast %15 : vector<16x16x32xf32> to vector<256x32xf32>
    %c1_16 = arith.constant 1 : index
    %c1_17 = arith.constant 1 : index
    %c0_18 = arith.constant 0 : index
    %17 = vector.load %arg9[%c1_16, %c1_17, %c0_18] : memref<18x18x32xf32, #tpu.memory_space<vmem>>, vector<16x16x32xf32>
    %18 = vector.shape_cast %17 : vector<16x16x32xf32> to vector<256x32xf32>
    %c1_19 = arith.constant 1 : index
    %c2_20 = arith.constant 2 : index
    %c0_21 = arith.constant 0 : index
    %19 = vector.load %arg9[%c1_19, %c2_20, %c0_21] : memref<18x18x32xf32, #tpu.memory_space<vmem>>, vector<16x16x32xf32>
    %20 = vector.shape_cast %19 : vector<16x16x32xf32> to vector<256x32xf32>
    %c2_22 = arith.constant 2 : index
    %c0_23 = arith.constant 0 : index
    %c0_24 = arith.constant 0 : index
    %21 = vector.load %arg9[%c2_22, %c0_23, %c0_24] : memref<18x18x32xf32, #tpu.memory_space<vmem>>, vector<16x16x32xf32>
    %22 = vector.shape_cast %21 : vector<16x16x32xf32> to vector<256x32xf32>
    %c2_25 = arith.constant 2 : index
    %c1_26 = arith.constant 1 : index
    %c0_27 = arith.constant 0 : index
    %23 = vector.load %arg9[%c2_25, %c1_26, %c0_27] : memref<18x18x32xf32, #tpu.memory_space<vmem>>, vector<16x16x32xf32>
    %24 = vector.shape_cast %23 : vector<16x16x32xf32> to vector<256x32xf32>
    %c2_28 = arith.constant 2 : index
    %c2_29 = arith.constant 2 : index
    %c0_30 = arith.constant 0 : index
    %25 = vector.load %arg9[%c2_28, %c2_29, %c0_30] : memref<18x18x32xf32, #tpu.memory_space<vmem>>, vector<16x16x32xf32>
    %26 = vector.shape_cast %25 : vector<16x16x32xf32> to vector<256x32xf32>
    %27 = tpu.concatenate %10, %12, %14, %16, %18, %20, %22, %24, %26 in 1 : vector<256x32xf32>, vector<256x32xf32>, vector<256x32xf32>, vector<256x32xf32>, vector<256x32xf32>, vector<256x32xf32>, vector<256x32xf32>, vector<256x32xf32>, vector<256x32xf32> -> vector<256x288xf32>
    %c0_31 = arith.constant 0 : index
    %c0_32 = arith.constant 0 : index
    %28 = vector.load %arg2[%c0_31, %c0_32] : memref<288x32xf32, #tpu.memory_space<vmem>>, vector<288x32xf32>
    %cst_33 = arith.constant dense<0.000000e+00> : vector<256x32xf32>
    %29 = tpu.matmul %27, %28, %cst_33 {dimension_numbers = #tpu.dot_dimension_numbers<[1], [0], [0], [1], [0, 0, 1, 1], [], []>} : vector<256x288xf32>, vector<288x32xf32>, vector<256x32xf32> -> vector<256x32xf32>
    %c0_34 = arith.constant 0 : index
    %c0_35 = arith.constant 0 : index
    %30 = vector.load %arg3[%c0_34, %c0_35] : memref<1x32xf32, #tpu.memory_space<vmem>>, vector<1x32xf32>
    %31 = vector.broadcast %30 : vector<1x32xf32> to vector<256x32xf32>
    %32 = arith.mulf %29, %31 : vector<256x32xf32>
    %c0_36 = arith.constant 0 : index
    %c0_37 = arith.constant 0 : index
    %33 = vector.load %arg4[%c0_36, %c0_37] : memref<1x32xf32, #tpu.memory_space<vmem>>, vector<1x32xf32>
    %34 = vector.broadcast %33 : vector<1x32xf32> to vector<256x32xf32>
    %35 = arith.addf %32, %34 : vector<256x32xf32>
    %cst_38 = arith.constant 1.000000e-01 : f32
    %36 = vector.broadcast %cst_38 : f32 to vector<256x32xf32>
    %37 = arith.mulf %36, %35 : vector<256x32xf32>
    %38 = arith.maximumf %35, %37 : vector<256x32xf32>
    %39 = vector.shape_cast %38 : vector<256x32xf32> to vector<16x16x32xf32>
    %cst_39 = arith.constant 0.000000e+00 : f32
    %40 = vector.broadcast %cst_39 : f32 to vector<16x1x32xf32>
    %cst_40 = arith.constant 0.000000e+00 : f32
    %41 = vector.broadcast %cst_40 : f32 to vector<1x18x32xf32>
    %42 = tpu.concatenate %40, %39, %40 in 1 : vector<16x1x32xf32>, vector<16x16x32xf32>, vector<16x1x32xf32> -> vector<16x18x32xf32>
    %43 = tpu.concatenate %41, %42, %41 in 0 : vector<1x18x32xf32>, vector<16x18x32xf32>, vector<1x18x32xf32> -> vector<18x18x32xf32>
    %c0_41 = arith.constant 0 : index
    %c0_42 = arith.constant 0 : index
    %c0_43 = arith.constant 0 : index
    %44 = vector.load %arg9[%c0_41, %c0_42, %c0_43] : memref<18x18x32xf32, #tpu.memory_space<vmem>>, vector<18x18x32xf32>
    tpu.vector_store %arg9[%c0_41, %c0_42, %c0_43], %43 {strides = array<i32>} : memref<18x18x32xf32, #tpu.memory_space<vmem>>, vector<18x18x32xf32>,
    %c0_44 = arith.constant 0 : index
    %c0_45 = arith.constant 0 : index
    %c0_46 = arith.constant 0 : index
    %45 = vector.load %arg9[%c0_44, %c0_45, %c0_46] : memref<18x18x32xf32, #tpu.memory_space<vmem>>, vector<16x16x32xf32>
    %46 = vector.shape_cast %45 : vector<16x16x32xf32> to vector<256x32xf32>
    %c0_47 = arith.constant 0 : index
    %c1_48 = arith.constant 1 : index
    %c0_49 = arith.constant 0 : index
    %47 = vector.load %arg9[%c0_47, %c1_48, %c0_49] : memref<18x18x32xf32, #tpu.memory_space<vmem>>, vector<16x16x32xf32>
    %48 = vector.shape_cast %47 : vector<16x16x32xf32> to vector<256x32xf32>
    %c0_50 = arith.constant 0 : index
    %c2_51 = arith.constant 2 : index
    %c0_52 = arith.constant 0 : index
    %49 = vector.load %arg9[%c0_50, %c2_51, %c0_52] : memref<18x18x32xf32, #tpu.memory_space<vmem>>, vector<16x16x32xf32>
    %50 = vector.shape_cast %49 : vector<16x16x32xf32> to vector<256x32xf32>
    %c1_53 = arith.constant 1 : index
    %c0_54 = arith.constant 0 : index
    %c0_55 = arith.constant 0 : index
    %51 = vector.load %arg9[%c1_53, %c0_54, %c0_55] : memref<18x18x32xf32, #tpu.memory_space<vmem>>, vector<16x16x32xf32>
    %52 = vector.shape_cast %51 : vector<16x16x32xf32> to vector<256x32xf32>
    %c1_56 = arith.constant 1 : index
    %c1_57 = arith.constant 1 : index
    %c0_58 = arith.constant 0 : index
    %53 = vector.load %arg9[%c1_56, %c1_57, %c0_58] : memref<18x18x32xf32, #tpu.memory_space<vmem>>, vector<16x16x32xf32>
    %54 = vector.shape_cast %53 : vector<16x16x32xf32> to vector<256x32xf32>
    %c1_59 = arith.constant 1 : index
    %c2_60 = arith.constant 2 : index
    %c0_61 = arith.constant 0 : index
    %55 = vector.load %arg9[%c1_59, %c2_60, %c0_61] : memref<18x18x32xf32, #tpu.memory_space<vmem>>, vector<16x16x32xf32>
    %56 = vector.shape_cast %55 : vector<16x16x32xf32> to vector<256x32xf32>
    %c2_62 = arith.constant 2 : index
    %c0_63 = arith.constant 0 : index
    %c0_64 = arith.constant 0 : index
    %57 = vector.load %arg9[%c2_62, %c0_63, %c0_64] : memref<18x18x32xf32, #tpu.memory_space<vmem>>, vector<16x16x32xf32>
    %58 = vector.shape_cast %57 : vector<16x16x32xf32> to vector<256x32xf32>
    %c2_65 = arith.constant 2 : index
    %c1_66 = arith.constant 1 : index
    %c0_67 = arith.constant 0 : index
    %59 = vector.load %arg9[%c2_65, %c1_66, %c0_67] : memref<18x18x32xf32, #tpu.memory_space<vmem>>, vector<16x16x32xf32>
    %60 = vector.shape_cast %59 : vector<16x16x32xf32> to vector<256x32xf32>
    %c2_68 = arith.constant 2 : index
    %c2_69 = arith.constant 2 : index
    %c0_70 = arith.constant 0 : index
    %61 = vector.load %arg9[%c2_68, %c2_69, %c0_70] : memref<18x18x32xf32, #tpu.memory_space<vmem>>, vector<16x16x32xf32>
    %62 = vector.shape_cast %61 : vector<16x16x32xf32> to vector<256x32xf32>
    %63 = tpu.concatenate %46, %48, %50, %52, %54, %56, %58, %60, %62 in 1 : vector<256x32xf32>, vector<256x32xf32>, vector<256x32xf32>, vector<256x32xf32>, vector<256x32xf32>, vector<256x32xf32>, vector<256x32xf32>, vector<256x32xf32>, vector<256x32xf32> -> vector<256x288xf32>
    %c0_71 = arith.constant 0 : index
    %c0_72 = arith.constant 0 : index
    %64 = vector.load %arg5[%c0_71, %c0_72] : memref<288x32xf32, #tpu.memory_space<vmem>>, vector<288x32xf32>
    %cst_73 = arith.constant dense<0.000000e+00> : vector<256x32xf32>
    %65 = tpu.matmul %63, %64, %cst_73 {dimension_numbers = #tpu.dot_dimension_numbers<[1], [0], [0], [1], [0, 0, 1, 1], [], []>} : vector<256x288xf32>, vector<288x32xf32>, vector<256x32xf32> -> vector<256x32xf32>
    %66 = tpu.transpose %65, [1, 0] : vector<256x32xf32> -> vector<32x256xf32>
    %c0_74 = arith.constant 0 : index
    %c0_75 = arith.constant 0 : index
    %67 = vector.load %arg6[%c0_74, %c0_75] : memref<32x1xf32, #tpu.memory_space<vmem>>, vector<32x1xf32>
    %68 = vector.broadcast %67 : vector<32x1xf32> to vector<32x256xf32>
    %69 = arith.mulf %66, %68 : vector<32x256xf32>
    %c0_76 = arith.constant 0 : index
    %c0_77 = arith.constant 0 : index
    %70 = vector.load %arg7[%c0_76, %c0_77] : memref<32x1xf32, #tpu.memory_space<vmem>>, vector<32x1xf32>
    %71 = vector.broadcast %70 : vector<32x1xf32> to vector<32x256xf32>
    %72 = arith.addf %69, %71 : vector<32x256xf32>
    %73 = arith.addf %72, %1 : vector<32x256xf32>
    %cst_78 = arith.constant 1.000000e-01 : f32
    %74 = vector.broadcast %cst_78 : f32 to vector<32x256xf32>
    %75 = arith.mulf %74, %73 : vector<32x256xf32>
    %76 = arith.maximumf %73, %75 : vector<32x256xf32>
    %77 = vector.shape_cast %76 : vector<32x256xf32> to vector<1x32x256xf32>
    %c0_79 = arith.constant 0 : index
    %c0_80 = arith.constant 0 : index
    %c0_81 = arith.constant 0 : index
    %78 = vector.load %arg8[%c0_79, %c0_80, %c0_81] : memref<1x32x256xf32, #tpu.memory_space<vmem>>, vector<1x32x256xf32>
    tpu.vector_store %arg8[%c0_79, %c0_80, %c0_81], %77 {strides = array<i32>} : memref<1x32x256xf32, #tpu.memory_space<vmem>>, vector<1x32x256xf32>,
    return
  }
  func.func @transform_0(%arg0: i32) -> (i32, i32, i32) {
    %c0_i32 = arith.constant 0 : i32
    %c0_i32_0 = arith.constant 0 : i32
    %c0_i32_1 = arith.constant 0 : i32
    return %arg0, %c0_i32, %c0_i32_0 : i32, i32, i32
  }
  func.func @transform_1(%arg0: i32) -> (i32, i32) {
    %c0_i32 = arith.constant 0 : i32
    %c0_i32_0 = arith.constant 0 : i32
    %c0_i32_1 = arith.constant 0 : i32
    return %c0_i32, %c0_i32_0 : i32, i32
  }
  func.func @transform_2(%arg0: i32) -> (i32, i32) {
    %c0_i32 = arith.constant 0 : i32
    %c0_i32_0 = arith.constant 0 : i32
    %c0_i32_1 = arith.constant 0 : i32
    return %c0_i32, %c0_i32_0 : i32, i32
  }
  func.func @transform_3(%arg0: i32) -> (i32, i32) {
    %c0_i32 = arith.constant 0 : i32
    %c0_i32_0 = arith.constant 0 : i32
    %c0_i32_1 = arith.constant 0 : i32
    return %c0_i32, %c0_i32_0 : i32, i32
  }
  func.func @transform_4(%arg0: i32) -> (i32, i32) {
    %c0_i32 = arith.constant 0 : i32
    %c0_i32_0 = arith.constant 0 : i32
    %c0_i32_1 = arith.constant 0 : i32
    return %c0_i32, %c0_i32_0 : i32, i32
  }
  func.func @transform_5(%arg0: i32) -> (i32, i32) {
    %c0_i32 = arith.constant 0 : i32
    %c0_i32_0 = arith.constant 0 : i32
    %c0_i32_1 = arith.constant 0 : i32
    return %c0_i32, %c0_i32_0 : i32, i32
  }
  func.func @transform_6(%arg0: i32) -> (i32, i32) {
    %c0_i32 = arith.constant 0 : i32
    %c0_i32_0 = arith.constant 0 : i32
    %c0_i32_1 = arith.constant 0 : i32
    return %c0_i32, %c0_i32_0 : i32, i32
  }
  func.func @transform_7(%arg0: i32) -> (i32, i32, i32) {
    %c0_i32 = arith.constant 0 : i32
    %c0_i32_0 = arith.constant 0 : i32
    %c0_i32_1 = arith.constant 0 : i32
    return %arg0, %c0_i32, %c0_i32_0 : i32, i32, i32
  }
}

</mosaic_0001>

<bundles_post_ra>
// kernel: basic_block1_forward.1
= control target key start
LH: loop header
LB: loop body
LE: loop exit
PB: predicated region body
PF: predicated region fallthrough
CT: control target
= control target key end

     0   :  { %s5686_s24 = smov 0   ;;  %s8044_s0 = inlined_call_operand.vmem [shape: f32[2,32,256], index: 0, kind: input, shape index: {}]   ;;  %s8045_s1 = inlined_call_operand.vmem [shape: f32[288,32], index: 1, kind: input, shape index: {}]   ;;  %s8046_s2 = inlined_call_operand.vmem [shape: f32[1,32], index: 2, kind: input, shape index: {}]   ;;  %s8047_s3 = inlined_call_operand.vmem [shape: f32[1,32], index: 3, kind: input, shape index: {}]   ;;  %s8048_s4 = inlined_call_operand.vmem [shape: f32[288,32], index: 4, kind: input, shape index: {}]   ;;  %s8049_s5 = inlined_call_operand.vmem [shape: f32[32,1], index: 5, kind: input, shape index: {}]   ;;  %s8050_s6 = inlined_call_operand.vmem [shape: f32[32,1], index: 6, kind: input, shape index: {}]   ;;  %s8051_s7 = inlined_call_operand.vmem [shape: f32[2,32,256], index: 7, kind: output, shape index: {}]  }
   0x1 LB: > { %s4575_s25 = sadd.s32 4294967295, %s5639_s24   ;;  %p4579_p0 = scmp.ge.s32.totalorder %s5639_s24, 1  ;;  %s5639_s24 = sphi %s5686_s24, %s17_s24  }
   0x2   : > { %p237_p1 = scmp.lt.s32.totalorder %s5639_s24, 3 }
   0x4   : > { %p238_p2 = pnand %p4579_p0, %p237_p1 }
   0x6   : > { %241 = sbr.rel (%p238_p2) target bundleno = 1444 (0x5a4), region = 48 }
   0xb   : > { %p269_p3 = scmp.lt.s32.totalorder %s4575_s25, 1  ;;  %vm512_vm0 = vcmask 261120   ;;  %vm515_vm1 = vcmask 254976   ;;  %v8052_v8 = vmov 0.0   ;;  %s5642_s30 = smov 32   ;;  %v1855_v12 = vld [vmem:[%s8045_s1 + $0x118] sm:$0xff] }
   0xc   : > { %513 = vst.msk [vmem:[#allocation2] sm:$0xff] %vm512_vm0, %v8052_v8  ;;  %v1854_v13 = vld [vmem:[%s8045_s1 + $0x110] sm:$0xff]  ;;  %vm383_vm2 = vcmask 1040384   ;;  %2190 = vmatpush.msra.mxu2 %v1855_v12  ;;  %4668 = vmatpush.msra.mxu3 %v1855_v12  ;;  %v1853_v20 = vld [vmem:[%s8045_s1 + $0x108] sm:$0xff]  ;;  %v1852_v21 = vld [vmem:[%s8045_s1 + $0x100] sm:$0xff]  ;;  %s5643_s16 = smov 96  }
   0xd   : > { %s8074_s25 = smov (!%p269_p3, %s4575_s25), 1  ;;  %514 = vst.msk [vmem:[#allocation2 + $0x8] sm:$0xff] %vm512_vm0, %v8052_v8  ;;  %s5644_s17 = smov 64   ;;  %vm1658_vm3 = vcmask 523264   ;;  %vm1691_vm4 = vcmask 785408  }
   0xe   : > { %s4650_s26 = sshll.u32 %s8074_s25, 6  ;;  %516 = vst.msk [vmem:[#allocation2 + $0x10] sm:$0x3] %vm515_vm1, %v8052_v8  ;;  %2191 = vmatpush.msra.mxu2 %v1854_v13  ;;  %4669 = vmatpush.msra.mxu3 %v1854_v13 }
   0xf   : > { %s5702_s29 = scalar_lea.vmem %s8044_s0, %s4650_s26  ;;  %565 = vst.msk [vmem:[#allocation2 + $0x198] sm:$0xff] %vm512_vm0, %v8052_v8  ;;  %s8017_s19 = scalar_lea.vmem %s8051_s7, %s4650_s26 }
  0x10   : > { %v280_v0 = vld [vmem:[%s5702_s29 + $0x8] sm:$0xff]  ;;  %v279_v1 = vld [vmem:[%s5702_s29] sm:$0xff]  ;;  %v282_v2 = vld [vmem:[%s5702_s29 + $0x18] sm:$0xff]  ;;  %566 = vst.msk [vmem:[#allocation2 + $0x1a0] sm:$0xff] %vm512_vm0, %v8052_v8  ;;  %2192 = vmatpush.msra.mxu2 %v1853_v20  ;;  %4670 = vmatpush.msra.mxu3 %v1853_v20 }
  0x11   : > { %319 = vxpose.xlu1.b32.start [1/4] (short) %v280_v0, 128  ;;  %287 = vxpose.xlu0.b32.start [1/4] (short) %v279_v1, 128  ;;  %v281_v3 = vld [vmem:[%s5702_s29 + $0x10] sm:$0xff]  ;;  %v284_v4 = vld [vmem:[%s5702_s29 + $0x28] sm:$0xff]  ;;  %v283_v5 = vld [vmem:[%s5702_s29 + $0x20] sm:$0xff]  ;;  %567 = vst.msk [vmem:[#allocation2 + $0x1a8] sm:$0x3] %vm515_vm1, %v8052_v8 }
  0x12   : > { %v286_v6 = vld [vmem:[%s5702_s29 + $0x38] sm:$0xff]  ;;  %v285_v7 = vld [vmem:[%s5702_s29 + $0x30] sm:$0xff]  ;;  %2193 = vmatpush.msra.mxu2 %v1852_v21  ;;  %4671 = vmatpush.msra.mxu3 %v1852_v21 }
  0x14   : > { %v600_v9 = vld [vmem:[#allocation2 + $0x1] sm:$0xff] }
  0x15   : > { %v601_v10 = vld [vmem:[#allocation2 + $0x9] sm:$0xff] }
  0x16   : > { %v4689_v11 = vpack.i.bf16 %v601_v10, %v600_v9 }
  0x18   : > { %4690 = vrot.lane.b32.xlu2 %v4689_v11, %s5642_s30 }
  0x19   : > { %320 = vxpose.xlu1.b32.cont [2/4] (short) %v282_v2, 128  ;;  %288 = vxpose.xlu0.b32.cont [2/4] (short) %v281_v3, 128 }
  0x21   : > { %321 = vxpose.xlu1.b32.cont [3/4] (short) %v284_v4, 128  ;;  %289 = vxpose.xlu0.b32.cont [3/4] (short) %v283_v5, 128 }
  0x29   : > { %322 = vxpose.xlu1.b32.end [4/4] (short) %v286_v6, 128  ;;  %290 = vxpose.xlu0.b32.end [4/4] (short) %v285_v7, 128 }
  0xb5   : > { %v335_v14 = vpop.trf.xlu1  ;;  %v303_v15 = vpop.trf.xlu0 }
  0xb6   : > { %v408_v16 = vrot.slane %v335_v14, 7  ;;  %v384_v17 = vrot.slane %v303_v15, 7 }
  0xb8   : > { %v488_v18 = vsel %vm383_vm2, 0.0, %v408_v16  ;;  %v480_v19 = vsel %vm383_vm2, 0.0, %v384_v17 }
  0xb9   : > { %541 = vst.msk [vmem:[#allocation2 + $0xd8] sm:$0xff] %vm512_vm0, %v488_v18 }
  0xba   : > { %517 = vst.msk [vmem:[#allocation2 + $0x18] sm:$0xff] %vm512_vm0, %v480_v19 }
  0xbd   : > { %v336_v22 = vpop.trf.xlu1  ;;  %v304_v23 = vpop.trf.xlu0 }
  0xbe   : > { %v409_v24 = vrot.slane %v336_v22, 7  ;;  %v385_v25 = vrot.slane %v304_v23, 7 }
  0xc0   : > { %v410_v26 = vsel %vm383_vm2, %v408_v16, %v409_v24  ;;  %v504_v27 = vsel %vm383_vm2, %v409_v24, 0.0  ;;  %v386_v28 = vsel %vm383_vm2, %v384_v17, %v385_v25  ;;  %v496_v29 = vsel %vm383_vm2, %v385_v25, 0.0 }
  0xc1   : > { %542 = vst.msk [vmem:[#allocation2 + $0xe0] sm:$0xff] %vm512_vm0, %v410_v26 }
  0xc2   : > { %543 = vst.msk [vmem:[#allocation2 + $0xe8] sm:$0x3] %vm515_vm1, %v504_v27  ;;  %v5815_v27 = vld [vmem:[#allocation2 + $0xa] sm:$0xff] }
  0xc3   : > { %518 = vst.msk [vmem:[#allocation2 + $0x20] sm:$0xff] %vm512_vm0, %v386_v28 }
  0xc4   : > { %519 = vst.msk [vmem:[#allocation2 + $0x28] sm:$0x3] %vm515_vm1, %v496_v29 }
  0xc5   : > { %v337_v30 = vpop.trf.xlu1  ;;  %v305_v31 = vpop.trf.xlu0  ;;  %2589 = vst.msk [vmem:[#allocation2 + $0x10] sm:$0x3] %vm515_vm1, %v8052_v8 }
  0xc6   : > { %v411_v32 = vrot.slane %v337_v30, 7  ;;  %v387_v33 = vrot.slane %v305_v31, 7 }
  0xc8   : > { %v489_v34 = vsel %vm383_vm2, 0.0, %v411_v32  ;;  %v481_v35 = vsel %vm383_vm2, 0.0, %v387_v33  ;;  %v618_v23 = vld [vmem:[#allocation2 + $0xd9] sm:$0xff] }
  0xc9   : > { %544 = vst.msk [vmem:[#allocation2 + $0xf0] sm:$0xff] %vm512_vm0, %v489_v34  ;;  %v619_v24 = vld [vmem:[#allocation2 + $0xe1] sm:$0xff] }
  0xca   : > { %520 = vst.msk [vmem:[#allocation2 + $0x30] sm:$0xff] %vm512_vm0, %v481_v35  ;;  %v602_v36 = vld [vmem:[#allocation2 + $0x19] sm:$0xff]  ;;  %v4719_v26 = vpack.i.bf16 %v619_v24, %v618_v23 }
  0xcb   : > { %v603_v37 = vld [vmem:[#allocation2 + $0x21] sm:$0xff] }
  0xcc   : > { %v4694_v38 = vpack.i.bf16 %v603_v37, %v602_v36 }
  0xcd   : > { %v338_v39 = vpop.trf.xlu1  ;;  %v306_v40 = vpop.trf.xlu0 }
  0xce   : > { %4695 = vrot.lane.b32.xlu2 %v4694_v38, %s5642_s30  ;;  %v412_v41 = vrot.slane %v338_v39, 7  ;;  %v388_v42 = vrot.slane %v306_v40, 7 }
  0xd0   : > { %v413_v43 = vsel %vm383_vm2, %v411_v32, %v412_v41  ;;  %v505_v44 = vsel %vm383_vm2, %v412_v41, 0.0  ;;  %v389_v45 = vsel %vm383_vm2, %v387_v33, %v388_v42  ;;  %v497_v46 = vsel %vm383_vm2, %v388_v42, 0.0 }
  0xd1   : > { %545 = vst.msk [vmem:[#allocation2 + $0xf8] sm:$0xff] %vm512_vm0, %v413_v43 }
  0xd2   : > { %546 = vst.msk [vmem:[#allocation2 + $0x100] sm:$0x3] %vm515_vm1, %v505_v44 }
  0xd3   : > { %521 = vst.msk [vmem:[#allocation2 + $0x38] sm:$0xff] %vm512_vm0, %v389_v45 }
  0xd4   : > { %522 = vst.msk [vmem:[#allocation2 + $0x40] sm:$0x3] %vm515_vm1, %v497_v46 }
  0xd5   : > { %v339_v47 = vpop.trf.xlu1  ;;  %v307_v48 = vpop.trf.xlu0 }
  0xd6   : > { %v414_v49 = vrot.slane %v339_v47, 7  ;;  %v390_v50 = vrot.slane %v307_v48, 7 }
  0xd8   : > { %v490_v51 = vsel %vm383_vm2, 0.0, %v414_v49  ;;  %v482_v52 = vsel %vm383_vm2, 0.0, %v390_v50  ;;  %v620_v35 = vld [vmem:[#allocation2 + $0xf1] sm:$0xff] }
  0xd9   : > { %547 = vst.msk [vmem:[#allocation2 + $0x108] sm:$0xff] %vm512_vm0, %v490_v51  ;;  %v621_v36 = vld [vmem:[#allocation2 + $0xf9] sm:$0xff] }
  0xda   : > { %523 = vst.msk [vmem:[#allocation2 + $0x48] sm:$0xff] %vm512_vm0, %v482_v52  ;;  %v5766_v53 = vld [vmem:[#allocation2 + $0x32] sm:$0xff]  ;;  %v4724_v40 = vpack.i.bf16 %v621_v36, %v620_v35  ;;  %v634_v36 = vld [vmem:[#allocation2 + $0x1a] sm:$0xff] }
  0xdb   : > { %v604_v54 = vld [vmem:[#allocation2 + $0x31] sm:$0xff]  ;;  %4584 = vmatmul.msk.f32.vlgmr.msra.gmra.mxu2 %vm512_vm0, %v5766_v53  ;;  %v605_v55 = vld [vmem:[#allocation2 + $0x39] sm:$0xff] }
  0xdc   : > { %v5770_v56 = vpack.i.bf16 %v605_v55, %v604_v54  ;;  %v5780_v1 = vld [vmem:[#allocation2 + $0x3a] sm:$0xff] }
  0xdd   : > { %v340_v57 = vpop.trf.xlu1  ;;  %v308_v58 = vpop.trf.xlu0 }
  0xde   : > { %4700 = vrot.lane.b32.xlu2 %v5770_v56, %s5642_s30  ;;  %v415_v59 = vrot.slane %v340_v57, 7  ;;  %v391_v60 = vrot.slane %v308_v58, 7 }
  0xe0   : > { %v416_v61 = vsel %vm383_vm2, %v414_v49, %v415_v59  ;;  %v506_v62 = vsel %vm383_vm2, %v415_v59, 0.0  ;;  %v392_v63 = vsel %vm383_vm2, %v390_v50, %v391_v60  ;;  %v498_v0 = vsel %vm383_vm2, %v391_v60, 0.0 }
  0xe1   : > { %548 = vst.msk [vmem:[#allocation2 + $0x110] sm:$0xff] %vm512_vm0, %v416_v61 }
  0xe2   : > { %549 = vst.msk [vmem:[#allocation2 + $0x118] sm:$0x3] %vm515_vm1, %v506_v62 }
  0xe3   : > { %524 = vst.msk [vmem:[#allocation2 + $0x50] sm:$0xff] %vm512_vm0, %v392_v63  ;;  %4585 = vmatmul.msk.f32.gmra.mxu2 %vm512_vm0, %v5780_v1 }
  0xe4   : > { %525 = vst.msk [vmem:[#allocation2 + $0x58] sm:$0x3] %vm515_vm1, %v498_v0 }
  0xe5   : > { %v341_v2 = vpop.trf.xlu1  ;;  %v309_v3 = vpop.trf.xlu0 }
  0xe6   : > { %v417_v4 = vrot.slane %v341_v2, 7  ;;  %v393_v5 = vrot.slane %v309_v3, 7 }
  0xe8   : > { %v491_v6 = vsel %vm383_vm2, 0.0, %v417_v4  ;;  %v483_v7 = vsel %vm383_vm2, 0.0, %v393_v5  ;;  %v5788_v9 = vld [vmem:[#allocation2 + $0x10a] sm:$0xff] }
  0xe9   : > { %550 = vst.msk [vmem:[#allocation2 + $0x120] sm:$0xff] %vm512_vm0, %v491_v6  ;;  %4602 = vmatmul.msk.f32.vlgmr.msra.gmra.mxu3 %vm512_vm0, %v5788_v9  ;;  %v5799_v18 = vld [vmem:[#allocation2 + $0x112] sm:$0xff]  ;;  %v622_v55 = vld [vmem:[#allocation2 + $0x109] sm:$0xff] }
  0xea   : > { %526 = vst.msk [vmem:[#allocation2 + $0x60] sm:$0xff] %vm512_vm0, %v483_v7  ;;  %v5794_v10 = vld [vmem:[#allocation2 + $0x4a] sm:$0xff] }
  0xeb   : > { %v606_v11 = vld [vmem:[#allocation2 + $0x49] sm:$0xff]  ;;  %4586 = vmatmul.msk.f32.gmra.mxu2 %vm512_vm0, %v5794_v10  ;;  %v607_v12 = vld [vmem:[#allocation2 + $0x51] sm:$0xff] }
  0xec   : > { %v4704_v13 = vpack.i.bf16 %v607_v12, %v606_v11  ;;  %v5809_v25 = vld [vmem:[#allocation2 + $0x52] sm:$0xff] }
  0xed   : > { %v342_v14 = vpop.trf.xlu1  ;;  %v310_v15 = vpop.trf.xlu0  ;;  %v623_v57 = vld [vmem:[#allocation2 + $0x111] sm:$0xff] }
  0xee   : > { %4705 = vrot.lane.b32.xlu2 %v4704_v13, %s5642_s30  ;;  %v418_v16 = vrot.slane %v342_v14, 7  ;;  %v394_v17 = vrot.slane %v310_v15, 7  ;;  %v5853_v59 = vpack.i.bf16 %v623_v57, %v622_v55  ;;  %v665_v57 = vld [vmem:[#allocation2 + $0x18] sm:$0xff] }
  0xf0   : > { %v419_v19 = vsel %vm383_vm2, %v417_v4, %v418_v16  ;;  %v507_v20 = vsel %vm383_vm2, %v418_v16, 0.0  ;;  %v395_v21 = vsel %vm383_vm2, %v393_v5, %v394_v17  ;;  %v499_v22 = vsel %vm383_vm2, %v394_v17, 0.0  ;;  %v632_v17 = vld [vmem:[#allocation2 + $0x2] sm:$0xff] }
  0xf1   : > { %551 = vst.msk [vmem:[#allocation2 + $0x128] sm:$0xff] %vm512_vm0, %v419_v19  ;;  %4603 = vmatmul.msk.f32.gmra.mxu3 %vm512_vm0, %v5799_v18  ;;  %v671_v47 = vld [vmem:[#allocation2 + $0x60] sm:$0xff]  ;;  %v4739_v24 = vpack.i.bf16 %v5815_v27, %v632_v17  ;;  %v5950_v17 = vpack.i.bf16 %v5809_v25, %v5794_v10 }
  0xf2   : > { %552 = vst.msk [vmem:[#allocation2 + $0x130] sm:$0x3] %vm515_vm1, %v507_v20 }
  0xf3   : > { %527 = vst.msk [vmem:[#allocation2 + $0x68] sm:$0xff] %vm512_vm0, %v395_v21  ;;  %4587 = vmatmul.msk.f32.gmra.mxu2 %vm512_vm0, %v5809_v25 }
  0xf4   : > { %528 = vst.msk [vmem:[#allocation2 + $0x70] sm:$0x3] %vm515_vm1, %v499_v22 }
  0xf5   : > { %v343_v28 = vpop.trf.xlu1  ;;  %v311_v29 = vpop.trf.xlu0 }
  0xf6   : > { %4720 = vrot.lane.b32.xlu2 %v4719_v26, %s5642_s30  ;;  %v420_v30 = vrot.slane %v343_v28, 7  ;;  %v396_v31 = vrot.slane %v311_v29, 7  ;;  %v5884_v26 = vld [vmem:[#allocation2] sm:$0xff] }
  0xf7   : > { %2587 = vst.msk [vmem:[#allocation2] sm:$0xff] %vm512_vm0, %v8052_v8 }
  0xf8   : > { %v492_v32 = vsel %vm383_vm2, 0.0, %v420_v30  ;;  %v484_v33 = vsel %vm383_vm2, 0.0, %v396_v31  ;;  %v5822_v34 = vld [vmem:[#allocation2 + $0x122] sm:$0xff] }
  0xf9   : > { %553 = vst.msk [vmem:[#allocation2 + $0x138] sm:$0xff] %vm512_vm0, %v492_v32  ;;  %4604 = vmatmul.msk.f32.gmra.mxu3 %vm512_vm0, %v5822_v34  ;;  %v5837_v46 = vld [vmem:[#allocation2 + $0x12a] sm:$0xff]  ;;  %v624_v3 = vld [vmem:[#allocation2 + $0x121] sm:$0xff] }
  0xfa   : > { %529 = vst.msk [vmem:[#allocation2 + $0x78] sm:$0xff] %vm512_vm0, %v484_v33  ;;  %v5828_v37 = vld [vmem:[#allocation2 + $0x62] sm:$0xff] }
  0xfb   : > { %v608_v38 = vld [vmem:[#allocation2 + $0x61] sm:$0xff]  ;;  %4588 = vmatmul.msk.f32.gmra.mxu2 %vm512_vm0, %v5828_v37  ;;  %v609_v39 = vld [vmem:[#allocation2 + $0x69] sm:$0xff] }
  0xfc   : > { %v5832_v41 = vpack.i.bf16 %v609_v39, %v608_v38  ;;  %v672_v48 = vld [vmem:[#allocation2 + $0x68] sm:$0xff] }
  0xfd   : > { %v344_v42 = vpop.trf.xlu1  ;;  %v312_v43 = vpop.trf.xlu0  ;;  %v5842_v52 = vld [vmem:[#allocation2 + $0x6a] sm:$0xff]  ;;  %v4864_v58 = vpack.i.bf16 %v672_v48, %v671_v47  ;;  %v635_v38 = vld [vmem:[#allocation2 + $0x22] sm:$0xff] }
  0xfe   : > { %4725 = vrot.lane.b32.xlu2 %v4724_v40, %s5642_s30  ;;  %4710 = vrot.lane.b32.xlu0 %v5832_v41, %s5642_s30  ;;  %v421_v44 = vrot.slane %v344_v42, 7  ;;  %v397_v45 = vrot.slane %v312_v43, 7  ;;  %v625_v4 = vld [vmem:[#allocation2 + $0x129] sm:$0xff]  ;;  %v4744_v43 = vpack.i.bf16 %v635_v38, %v634_v36 }
  0xff   : > { %v4734_v11 = vpack.i.bf16 %v625_v4, %v624_v3 }
 0x100   : > { %v422_v49 = vsel %vm383_vm2, %v420_v30, %v421_v44  ;;  %v508_v50 = vsel %vm383_vm2, %v421_v44, 0.0  ;;  %v398_v51 = vsel %vm383_vm2, %v396_v31, %v397_v45  ;;  %v500_v54 = vsel %vm383_vm2, %v397_v45, 0.0  ;;  %v5888_v30 = vld [vmem:[#allocation2 + $0x8] sm:$0xff] }
 0x101   : > { %554 = vst.msk [vmem:[#allocation2 + $0x140] sm:$0xff] %vm512_vm0, %v422_v49  ;;  %4605 = vmatmul.msk.f32.gmra.mxu3 %vm512_vm0, %v5837_v46  ;;  %v666_v49 = vld [vmem:[#allocation2 + $0x20] sm:$0xff] }
 0x102   : > { %555 = vst.msk [vmem:[#allocation2 + $0x148] sm:$0x3] %vm515_vm1, %v508_v50 }
 0x103   : > { %530 = vst.msk [vmem:[#allocation2 + $0x80] sm:$0xff] %vm512_vm0, %v398_v51  ;;  %4589 = vmatmul.msk.f32.gmra.mxu2 %vm512_vm0, %v5842_v52 }
 0x104   : > { %531 = vst.msk [vmem:[#allocation2 + $0x88] sm:$0x3] %vm515_vm1, %v500_v54 }
 0x105   : > { %v345_v60 = vpop.trf.xlu1  ;;  %v313_v61 = vpop.trf.xlu0  ;;  %2588 = vst.msk [vmem:[#allocation2 + $0x8] sm:$0xff] %vm512_vm0, %v8052_v8 }
 0x106   : > { %4730 = vrot.lane.b32.xlu2 %v5853_v59, %s5642_s30  ;;  %v423_v62 = vrot.slane %v345_v60, 7  ;;  %v399_v63 = vrot.slane %v313_v61, 7  ;;  %4865 = vrot.lane.b32.xlu0 %v4864_v58, %s5643_s16  ;;  %v4849_v60 = vpack.i.bf16 %v666_v49, %v665_v57  ;;  %v682_v49 = vld [vmem:[#allocation2 + $0xe0] sm:$0xff] }
 0x107   : > { %v650_v57 = vld [vmem:[#allocation2 + $0xda] sm:$0xff] }
 0x108   : > { %v493_v0 = vsel %vm383_vm2, 0.0, %v423_v62  ;;  %v485_v2 = vsel %vm383_vm2, 0.0, %v399_v63  ;;  %v5923_v61 = vld [vmem:[#allocation2 + $0x13a] sm:$0xff] }
 0x109   : > { %556 = vst.msk [vmem:[#allocation2 + $0x150] sm:$0xff] %vm512_vm0, %v493_v0  ;;  %4606 = vmatmul.msk.f32.gmra.mxu3 %vm512_vm0, %v5923_v61 }
 0x10a   : > { %532 = vst.msk [vmem:[#allocation2 + $0x90] sm:$0xff] %vm512_vm0, %v485_v2  ;;  %v5862_v5 = vld [vmem:[#allocation2 + $0x7a] sm:$0xff] }
 0x10b   : > { %v610_v6 = vld [vmem:[#allocation2 + $0x79] sm:$0xff]  ;;  %4590 = vmatmul.msk.f32.gmra.mxu2 %vm512_vm0, %v5862_v5  ;;  %v611_v7 = vld [vmem:[#allocation2 + $0x81] sm:$0xff] }
 0x10c   : > { %v5866_v12 = vpack.i.bf16 %v611_v7, %v610_v6  ;;  %v5874_v22 = vld [vmem:[#allocation2 + $0x82] sm:$0xff]  ;;  %v670_v6 = vld [vmem:[#allocation2 + $0x50] sm:$0xff] }
 0x10d   : > { %v346_v13 = vpop.trf.xlu1  ;;  %v314_v14 = vpop.trf.xlu0 }
 0x10e   : > { %4735 = vrot.lane.b32.xlu2 %v4734_v11, %s5642_s30  ;;  %4715 = vrot.lane.b32.xlu1 %v5866_v12, %s5642_s30  ;;  %v424_v15 = vrot.slane %v346_v13, 7  ;;  %v400_v16 = vrot.slane %v314_v14, 7  ;;  %v669_v13 = vld [vmem:[#allocation2 + $0x48] sm:$0xff] }
 0x110   : > { %v425_v19 = vsel %vm383_vm2, %v423_v62, %v424_v15  ;;  %v509_v20 = vsel %vm383_vm2, %v424_v15, 0.0  ;;  %v401_v21 = vsel %vm383_vm2, %v399_v63, %v400_v16  ;;  %v501_v23 = vsel %vm383_vm2, %v400_v16, 0.0  ;;  %v5946_v16 = vld [vmem:[#allocation2 + $0x142] sm:$0xff] }
 0x111   : > { %557 = vst.msk [vmem:[#allocation2 + $0x158] sm:$0xff] %vm512_vm0, %v425_v19  ;;  %v5927_v62 = vpack.i.bf16 %v5780_v1, %v5766_v53  ;;  %v5940_v15 = vpack.i.bf16 %v670_v6, %v669_v13  ;;  %4607 = vmatmul.msk.f32.gmra.mxu3 %vm512_vm0, %v5946_v16  ;;  %v652_v6 = vld [vmem:[#allocation2 + $0xf2] sm:$0xff] }
 0x112   : > { %558 = vst.msk [vmem:[#allocation2 + $0x160] sm:$0x3] %vm515_vm1, %v509_v20  ;;  %v675_v20 = vld [vmem:[#allocation2 + $0x90] sm:$0xff] }
 0x113   : > { %533 = vst.msk [vmem:[#allocation2 + $0x98] sm:$0xff] %vm512_vm0, %v401_v21  ;;  %4591 = vmatmul.msk.f32.gmra.mxu2 %vm512_vm0, %v5874_v22 }
 0x114   : > { %534 = vst.msk [vmem:[#allocation2 + $0xa0] sm:$0x3] %vm515_vm1, %v501_v23 }
 0x115   : > { %v315_v28 = vpop.trf.xlu0  ;;  %v347_v29 = vpop.trf.xlu1 }
 0x116   : > { %4740 = vrot.lane.b32.xlu2 %v4739_v24, %s5644_s17  ;;  %v402_v27 = vrot.slane %v315_v28, 7  ;;  %v426_v31 = vrot.slane %v347_v29, 7  ;;  %v5956_v24 = vpop.permute.xlu2 %4690  ;;  %v683_v29 = vld [vmem:[#allocation2 + $0xf0] sm:$0xff] }
 0x118   : > { %v486_v32 = vsel %vm383_vm2, 0.0, %v402_v27  ;;  %v5894_v33 = vld [vmem:[#allocation2 + $0x152] sm:$0xff]  ;;  %v494_v35 = vsel %vm383_vm2, 0.0, %v426_v31 }
 0x119   : > { %535 = vst.msk [vmem:[#allocation2 + $0xa8] sm:$0xff] %vm512_vm0, %v486_v32  ;;  %v5898_v39 = vld [vmem:[#allocation2 + $0x15a] sm:$0xff]  ;;  %4608 = vmatmul.msk.f32.gmra.mxu3 %vm512_vm0, %v5894_v33 }
 0x11a   : > { %v5900_v40 = vld [vmem:[#allocation2 + $0x92] sm:$0xff]  ;;  %v5904_v42 = vpack.i.bf16 %v5898_v39, %v5894_v33  ;;  %559 = vst.msk [vmem:[#allocation2 + $0x168] sm:$0xff] %vm512_vm0, %v494_v35 }
 0x11b   : > { %4592 = vmatmul.msk.f32.gmra.mxu2 %vm512_vm0, %v5900_v40  ;;  %v5914_v54 = vld [vmem:[#allocation2 + $0x9a] sm:$0xff] }
 0x11c   : > { %4840 = vrot.lane.b32.xlu1 %v5904_v42, %s5644_s17  ;;  %v676_v21 = vld [vmem:[#allocation2 + $0x98] sm:$0xff] }
 0x11d   : > { %v316_v44 = vpop.trf.xlu0  ;;  %v348_v45 = vpop.trf.xlu1  ;;  %v5964_v35 = vpack.i.bf16 %v676_v21, %v675_v20  ;;  %v4774_v21 = vpack.i.bf16 %v5799_v18, %v5788_v9 }
 0x11e   : > { %4745 = vrot.lane.b32.xlu2 %v4744_v43, %s5644_s17  ;;  %v403_v47 = vrot.slane %v316_v44, 7  ;;  %v427_v48 = vrot.slane %v348_v45, 7  ;;  %v4759_v44 = vpack.i.bf16 %v5842_v52, %v5828_v37  ;;  %v689_v45 = vld [vmem:[#allocation2 + $0x138] sm:$0xff]  ;;  %v651_v37 = vld [vmem:[#allocation2 + $0xe2] sm:$0xff] }
 0x120   : > { %v404_v50 = vsel %vm383_vm2, %v402_v27, %v403_v47  ;;  %v502_v51 = vsel %vm383_vm2, %v403_v47, 0.0  ;;  %v428_v55 = vsel %vm383_vm2, %v426_v31, %v427_v48  ;;  %v510_v58 = vsel %vm383_vm2, %v427_v48, 0.0  ;;  %v677_v3 = vld [vmem:[#allocation2 + $0xa8] sm:$0xff]  ;;  %v684_v27 = vld [vmem:[#allocation2 + $0xf8] sm:$0xff]  ;;  %v690_v47 = vld [vmem:[#allocation2 + $0x140] sm:$0xff] }
 0x121   : > { %536 = vst.msk [vmem:[#allocation2 + $0xb0] sm:$0xff] %vm512_vm0, %v404_v50  ;;  %v4894_v38 = vpack.i.bf16 %v684_v27, %v683_v29  ;;  %v681_v48 = vld [vmem:[#allocation2 + $0xd8] sm:$0xff]  ;;  %v4909_v50 = vpack.i.bf16 %v690_v47, %v689_v45  ;;  %4609 = vmatmul.msk.f32.gmra.mxu3 %vm512_vm0, %v5898_v39  ;;  %v693_v39 = vld [vmem:[#allocation2 + $0x168] sm:$0xff] }
 0x122   : > { %537 = vst.msk [vmem:[#allocation2 + $0xb8] sm:$0x3] %vm515_vm1, %v502_v51  ;;  %v5984_v52 = vpack.i.bf16 %v682_v49, %v681_v48  ;;  %v626_v29 = vld [vmem:[#allocation2 + $0x139] sm:$0xff]  ;;  %v627_v27 = vld [vmem:[#allocation2 + $0x141] sm:$0xff]  ;;  %v628_v48 = vld [vmem:[#allocation2 + $0x151] sm:$0xff] }
 0x123   : > { %4593 = vmatmul.msk.f32.gmra.mxu2 %vm512_vm0, %v5914_v54  ;;  %560 = vst.msk [vmem:[#allocation2 + $0x170] sm:$0xff] %vm512_vm0, %v428_v55  ;;  %v6027_v18 = vpack.i.bf16 %v627_v27, %v626_v29  ;;  %v1829_v47 = vld [vmem:[%s8045_s1 + $0x48] sm:$0xff]  ;;  %v629_v49 = vld [vmem:[#allocation2 + $0x159] sm:$0xff] }
 0x124   : > { %4850 = vrot.lane.b32.xlu1 %v4849_v60, %s5643_s16  ;;  %561 = vst.msk [vmem:[#allocation2 + $0x178] sm:$0x3] %vm515_vm1, %v510_v58  ;;  %v4764_v58 = vpack.i.bf16 %v651_v37, %v650_v57 }
 0x125   : > { %v317_v63 = vpop.trf.xlu0  ;;  %v349_v0 = vpop.trf.xlu1 }
 0x126   : > { %4750 = vrot.lane.b32.xlu2 %v5927_v62, %s5644_s17  ;;  %v405_v2 = vrot.slane %v317_v63, 7  ;;  %v429_v4 = vrot.slane %v349_v0, 7  ;;  %v687_v63 = vld [vmem:[#allocation2 + $0x120] sm:$0xff]  ;;  %v688_v0 = vld [vmem:[#allocation2 + $0x128] sm:$0xff] }
 0x128   : > { %v487_v7 = vsel %vm383_vm2, 0.0, %v405_v2  ;;  %v5936_v53 = vld [vmem:[#allocation2 + $0xaa] sm:$0xff]  ;;  %v495_v11 = vsel %vm383_vm2, 0.0, %v429_v4  ;;  %v5982_v51 = vpop.permute.xlu2 %4695 }
 0x129   : > { %v678_v1 = vld [vmem:[#allocation2 + $0xb0] sm:$0xff]  ;;  %538 = vst.msk [vmem:[#allocation2 + $0xc0] sm:$0xff] %vm512_vm0, %v487_v7  ;;  %v653_v7 = vld [vmem:[#allocation2 + $0xfa] sm:$0xff] }
 0x12a   : > { %v4879_v14 = vpack.i.bf16 %v678_v1, %v677_v3  ;;  %562 = vst.msk [vmem:[#allocation2 + $0x180] sm:$0xff] %vm512_vm0, %v495_v11  ;;  %v5962_v32 = vld [vmem:[#allocation2 + $0xb2] sm:$0xff]  ;;  %v5995_v1 = vpack.i.bf16 %v688_v0, %v687_v63  ;;  %v5999_v11 = vpack.i.bf16 %v653_v7, %v652_v6  ;;  %v757_v20 = vld [vmem:[#allocation2 + $0x16a] sm:$0xff] }
 0x12b   : > { %4594 = vmatmul.msk.f32.gmra.mxu2 %vm512_vm0, %v5936_v53  ;;  %v694_v13 = vld [vmem:[#allocation2 + $0x170] sm:$0xff]  ;;  %4610 = vmatmul.msk.f32.gmra.mxu3 %vm512_vm0, %v757_v20  ;;  %v1823_v63 = vld [vmem:[%s8045_s1 + $0x18] sm:$0xff] }
 0x12c   : > { %4880 = vrot.lane.b32.xlu0 %v4879_v14, %s5643_s16  ;;  %4860 = vrot.lane.b32.xlu1 %v5940_v15, %s5643_s16  ;;  %v758_v9 = vld [vmem:[#allocation2 + $0x172] sm:$0xff]  ;;  %v630_v27 = vld [vmem:[#allocation2 + $0x169] sm:$0xff] }
 0x12d   : > { %v318_v19 = vpop.trf.xlu0  ;;  %v350_v23 = vpop.trf.xlu1  ;;  %v1822_v0 = vld [vmem:[%s8045_s1 + $0x10] sm:$0xff] }
 0x12e   : > { %4755 = vrot.lane.b32.xlu2 %v5950_v17, %s5644_s17  ;;  %v406_v28 = vrot.slane %v318_v19, 7  ;;  %v430_v10 = vrot.slane %v350_v23, 7  ;;  %v6007_v19 = vpack.i.bf16 %v694_v13, %v693_v39  ;;  %v6020_v23 = vpack.i.bf16 %v5914_v54, %v5900_v40  ;;  %v1835_v54 = vld [vmem:[%s8045_s1 + $0x78] sm:$0xff]  ;;  %v1820_v39 = vld [vmem:[%s8045_s1] sm:$0xff] }
 0x12f   : > { %1952 = vmatpush.msra.mxu0 %v1835_v54  ;;  %4652 = vmatpush.msra.mxu1 %v1835_v54 }
 0x130   : > { %v407_v25 = vsel %vm383_vm2, %v405_v2, %v406_v28  ;;  %v503_v31 = vsel %vm383_vm2, %v406_v28, 0.0  ;;  %v431_v36 = vsel %vm383_vm2, %v429_v4, %v430_v10  ;;  %v511_v43 = vsel %vm383_vm2, %v430_v10, 0.0 }
 0x131   : > { %539 = vst.msk [vmem:[#allocation2 + $0xc8] sm:$0xff] %vm512_vm0, %v407_v25  ;;  %v695_v33 = vld [vmem:[#allocation2 + $0x180] sm:$0xff] }
 0x132   : > { %540 = vst.msk [vmem:[#allocation2 + $0xd0] sm:$0x3] %vm515_vm1, %v503_v31  ;;  %v613_v31 = vld [vmem:[#allocation2 + $0x99] sm:$0xff] }
 0x133   : > { %4595 = vmatmul.msk.f32.gmra.mxu2 %vm512_vm0, %v5962_v32  ;;  %563 = vst.msk [vmem:[#allocation2 + $0x188] sm:$0xff] %vm512_vm0, %v431_v36  ;;  %4611 = vmatmul.msk.f32.gmra.mxu3 %vm512_vm0, %v758_v9  ;;  %v6057_v36 = vpack.i.bf16 %v5837_v46, %v5822_v34  ;;  %v1830_v34 = vld [vmem:[%s8045_s1 + $0x50] sm:$0xff]  ;;  %v6074_v46 = vpack.i.bf16 %v758_v9, %v757_v20 }
 0x134   : > { %4895 = vrot.lane.b32.xlu0 %v4894_v38, %s5643_s16  ;;  %4875 = vrot.lane.b32.xlu1 %v5964_v35, %s5643_s16  ;;  %564 = vst.msk [vmem:[#allocation2 + $0x190] sm:$0x3] %vm515_vm1, %v511_v43  ;;  %v1832_v38 = vld [vmem:[%s8045_s1 + $0x60] sm:$0xff]  ;;  %v1831_v43 = vld [vmem:[%s8045_s1 + $0x58] sm:$0xff] }
 0x135   : > { %v631_v9 = vld [vmem:[#allocation2 + $0x171] sm:$0xff] }
 0x136   : > { %4760 = vrot.lane.b32.xlu2 %v4759_v44, %s5644_s17 }
 0x138   : > { %v838_v55 = vld [vmem:[#allocation2 + $0xc2] sm:$0xff]  ;;  %v5993_v3 = vpop.permute.xlu2 %4700 }
 0x139   : > { %v839_v4 = vld [vmem:[#allocation2 + $0xca] sm:$0xff] }
 0x13a   : > { %v696_v60 = vld [vmem:[#allocation2 + $0x188] sm:$0xff]  ;;  %v6050_v25 = vpack.i.bf16 %v839_v4, %v838_v55 }
 0x13b   : > { %4596 = vmatmul.msk.f32.gmra.mxu2 %vm512_vm0, %v838_v55  ;;  %v4924_v2 = vpack.i.bf16 %v696_v60, %v695_v33  ;;  %v1827_v55 = vld [vmem:[%s8045_s1 + $0x38] sm:$0xff]  ;;  %v1825_v33 = vld [vmem:[%s8045_s1 + $0x28] sm:$0xff]  ;;  %v1824_v60 = vld [vmem:[%s8045_s1 + $0x20] sm:$0xff] }
 0x13c   : > { %4910 = vrot.lane.b32.xlu0 %v4909_v50, %s5643_s16  ;;  %4890 = vrot.lane.b32.xlu1 %v5984_v52, %s5643_s16  ;;  %v1828_v50 = vld [vmem:[%s8045_s1 + $0x40] sm:$0xff] }
 0x13e   : > { %4765 = vrot.lane.b32.xlu2 %v4764_v58, %s5644_s17 }
 0x143   : > { %4597 = vmatmul.msk.f32.gmra.mxu2 %vm512_vm0, %v839_v4  ;;  %v6121_v4 = vld [vmem:[#allocation2 + $0x30] sm:$0xff] }
 0x144   : > { %4925 = vrot.lane.b32.xlu0 %v4924_v2, %s5643_s16  ;;  %4905 = vrot.lane.b32.xlu1 %v5995_v1, %s5643_s16  ;;  %v6117_v2 = vld [vmem:[#allocation2 + $0x38] sm:$0xff] }
 0x145   : > { %v6131_v13 = vpack.i.bf16 %v6117_v2, %v6121_v4 }
 0x146   : > { %4770 = vrot.lane.b32.xlu2 %v5999_v11, %s5644_s17 }
 0x148   : > { %v6005_v14 = vpop.permute.xlu2 %4705 }
 0x14b   : > { %4598 = vmatmul.msk.f32.gmra.mxu2 %vm512_vm0, %v650_v57  ;;  %v6089_v57 = vpack.i.bf16 %v629_v49, %v628_v48  ;;  %v617_v48 = vld [vmem:[#allocation2 + $0xc9] sm:$0xff] }
 0x14c   : > { %4940 = vrot.lane.b32.xlu0 %v5950_v17, %s5642_s30  ;;  %4920 = vrot.lane.b32.xlu1 %v6007_v19, %s5643_s16  ;;  %v4784_v17 = vpack.i.bf16 %v5874_v22, %v5862_v5  ;;  %v1833_v5 = vld [vmem:[%s8045_s1 + $0x68] sm:$0xff]  ;;  %v612_v22 = vld [vmem:[#allocation2 + $0x91] sm:$0xff] }
 0x14d   : > { %v4789_v44 = vpack.i.bf16 %v613_v31, %v612_v22  ;;  %v6177_v49 = vld [vmem:[#allocation2 + $0x182] sm:$0xff] }
 0x14e   : > { %4775 = vrot.lane.b32.xlu2 %v4774_v21, %s5644_s17  ;;  %4612 = vmatmul.msk.f32.gmra.mxu3 %vm512_vm0, %v6177_v49 }
 0x150   : > { %v6022_v28 = vpop.permute.xlu2 %4720 }
 0x153   : > { %4599 = vmatmul.msk.f32.gmra.mxu2 %vm512_vm0, %v651_v37  ;;  %v1826_v37 = vld [vmem:[%s8045_s1 + $0x30] sm:$0xff] }
 0x154   : > { %4955 = vrot.lane.b32.xlu0 %v6020_v23, %s5642_s30  ;;  %4935 = vrot.lane.b32.xlu1 %v5927_v62, %s5642_s30  ;;  %v1834_v62 = vld [vmem:[%s8045_s1 + $0x70] sm:$0xff] }
 0x155   : > { %1953 = vmatpush.msra.mxu0 %v1834_v62  ;;  %4653 = vmatpush.msra.mxu1 %v1834_v62  ;;  %v6151_v62 = vld [vmem:[#allocation2 + $0xc8] sm:$0xff] }
 0x156   : > { %4780 = vrot.lane.b32.xlu2 %v6027_v18, %s5642_s30 }
 0x157   : > { %1954 = vmatpush.msra.mxu0 %v1833_v5  ;;  %4654 = vmatpush.msra.mxu1 %v1833_v5 }
 0x158   : > { %v6034_v40 = vpop.permute.xlu2 %4725 }
 0x159   : > { %1955 = vmatpush.msra.mxu0 %v1832_v38  ;;  %4655 = vmatpush.msra.mxu1 %v1832_v38 }
 0x15b   : > { %4600 = vmatmul.msk.f32.gmra.mxu2 %vm512_vm0, %v652_v6  ;;  %1956 = vmatpush.msra.mxu0 %v1831_v43  ;;  %v614_v6 = vld [vmem:[#allocation2 + $0xa9] sm:$0xff] }
 0x15c   : > { %4970 = vrot.lane.b32.xlu0 %v4764_v58, %s5642_s30  ;;  %4950 = vrot.lane.b32.xlu1 %v4784_v17, %s5642_s30 }
 0x15d   : > { %4656 = vmatpush.msra.mxu1 %v1831_v43  ;;  %1957 = vmatpush.msra.mxu0 %v1830_v34  ;;  %v6171_v43 = vld [vmem:[#allocation2 + $0x108] sm:$0xff] }
 0x15e   : > { %4785 = vrot.lane.b32.xlu2 %v4784_v17, %s5644_s17  ;;  %v6149_v17 = vld [vmem:[#allocation2 + $0xc0] sm:$0xff] }
 0x15f   : > { %4657 = vmatpush.msra.mxu1 %v1830_v34  ;;  %1958 = vmatpush.msra.mxu0 %v1829_v47  ;;  %v6160_v31 = vpack.i.bf16 %v6151_v62, %v6149_v17 }
 0x160   : > { %v6048_v10 = vpop.permute.xlu2 %4730 }
 0x161   : > { %4658 = vmatpush.msra.mxu1 %v1829_v47  ;;  %1959 = vmatpush.msra.mxu0 %v1828_v50  ;;  %v616_v47 = vld [vmem:[#allocation2 + $0xc1] sm:$0xff] }
 0x163   : > { %4601 = vmatmul.msk.f32.gmra.mxu2 %vm512_vm0, %v653_v7  ;;  %4659 = vmatpush.msra.mxu1 %v1828_v50  ;;  %v615_v7 = vld [vmem:[#allocation2 + $0xb1] sm:$0xff]  ;;  %v4819_v50 = vpack.i.bf16 %v617_v48, %v616_v47 }
 0x164   : > { %4985 = vrot.lane.b32.xlu0 %v6057_v36, %s5642_s30  ;;  %4965 = vrot.lane.b32.xlu1 %v6050_v25, %s5642_s30  ;;  %v6135_v20 = vpack.i.bf16 %v615_v7, %v614_v6  ;;  %v6198_v6 = vld [vmem:[#allocation2 + $0x18a] sm:$0xff] }
 0x165   : > { %1960 = vmatpush.msra.mxu0 %v1827_v55  ;;  %4660 = vmatpush.msra.mxu1 %v1827_v55 }
 0x166   : > { %4790 = vrot.lane.b32.xlu2 %v4789_v44, %s5642_s30  ;;  %v6173_v44 = vld [vmem:[#allocation2 + $0x110] sm:$0xff]  ;;  %4613 = vmatmul.msk.f32.gmra.mxu3 %vm512_vm0, %v6198_v6 }
 0x167   : > { %1961 = vmatpush.msra.mxu0 %v1826_v37  ;;  %4661 = vmatpush.msra.mxu1 %v1826_v37 }
 0x168   : > { %v6076_v45 = vpop.permute.xlu2 %4735 }
 0x169   : > { %1962 = vmatpush.msra.mxu0 %v1825_v33  ;;  %4662 = vmatpush.msra.mxu1 %v1825_v33 }
 0x16b   : > { %1963 = vmatpush.msra.mxu0 %v1824_v60  ;;  %4663 = vmatpush.msra.mxu1 %v1824_v60  ;;  %v786_v60 = vld [vmem:[#allocation2 + $0x150] sm:$0xff] }
 0x16c   : > { %5000 = vrot.lane.b32.xlu0 %v6074_v46, %s5642_s30  ;;  %4980 = vrot.lane.b32.xlu1 %v4774_v21, %s5642_s30  ;;  %v768_v21 = vld [vmem:[#allocation2 + $0x78] sm:$0xff] }
 0x16d   : > { %1964 = vmatpush.msra.mxu0 %v1823_v63  ;;  %4664 = vmatpush.msra.mxu1 %v1823_v63  ;;  %v787_v63 = vld [vmem:[#allocation2 + $0x158] sm:$0xff] }
 0x16e   : > { %4795 = vrot.lane.b32.xlu2 %v6089_v57, %s5642_s30  ;;  %v5069_v7 = vpack.i.bf16 %v787_v63, %v786_v60  ;;  %v735_v63 = vld [vmem:[#allocation2 + $0x62] sm:$0xff] }
 0x16f   : > { %1965 = vmatpush.msra.mxu0 %v1822_v0  ;;  %4665 = vmatpush.msra.mxu1 %v1822_v0 }
 0x170   : > { %v6097_v58 = vpop.permute.xlu2 %4740 }
 0x174   : > { %5015 = vrot.lane.b32.xlu0 %v5940_v15, %s5644_s17  ;;  %4995 = vrot.lane.b32.xlu1 %v5904_v42, %s5642_s30  ;;  %v1821_v42 = vld [vmem:[%s8045_s1 + $0x8] sm:$0xff] }
 0x175   : > { %1966 = vmatpush.msra.mxu0 %v1821_v42  ;;  %4666 = vmatpush.msra.mxu1 %v1821_v42 }
 0x176   : > { %4800 = vrot.lane.b32.xlu2 %v6020_v23, %s5644_s17  ;;  %v769_v23 = vld [vmem:[#allocation2 + $0x80] sm:$0xff] }
 0x177   : > { %1967 = vmatpush.msra.mxu0 %v1820_v39  ;;  %4667 = vmatpush.msra.mxu1 %v1820_v39  ;;  %v6143_v54 = vpack.i.bf16 %v769_v23, %v768_v21  ;;  %v4693_v39 = vunpack.i.h.bf16 %v5956_v24  ;;  %v792_v23 = vld [vmem:[#allocation2 + $0x198] sm:$0xff] }
 0x178   : > { %v6119_v15 = vpop.permute.xlu2 %4745 }
 0x17c   : > { %5030 = vrot.lane.b32.xlu0 %v5964_v35, %s5644_s17  ;;  %5010 = vrot.lane.b32.xlu1 %v6131_v13, %s5644_s17  ;;  %v4809_v35 = vpack.i.bf16 %v631_v9, %v630_v27  ;;  %v793_v27 = vld [vmem:[#allocation2 + $0x1a0] sm:$0xff]  ;;  %v1627_v9 = vsel %vm512_vm0, %v5888_v30, %v4693_v39  ;;  %v4834_v30 = vpack.i.bf16 %v5946_v16, %v5923_v61 }
 0x17d   : > { %v822_v61 = vld [vmem:[#allocation2 + $0x181] sm:$0xff] }
 0x17e   : > { %4805 = vrot.lane.b32.xlu2 %v6135_v20, %s5642_s30 }
 0x180   : > { %v6141_v29 = vpop.permute.xlu2 %4750  ;;  %v6153_v5 = vpop.permute.xlu1 %4715 }
 0x184   : > { %5045 = vrot.lane.b32.xlu0 %v5984_v52, %s5644_s17  ;;  %5025 = vrot.lane.b32.xlu1 %v6143_v54, %s5644_s17  ;;  %v4814_v52 = vpack.i.bf16 %v5962_v32, %v5936_v53  ;;  %v6181_v53 = vpack.i.bf16 %v6173_v44, %v6171_v43  ;;  %v4692_v32 = vunpack.i.l.bf16 %v5956_v24 }
 0x186   : > { %4810 = vrot.lane.b32.xlu2 %v4809_v35, %s5642_s30  ;;  %v1626_v33 = vsel %vm512_vm0, %v5884_v26, %v4692_v32  ;;  %v4743_v26 = vunpack.i.h.bf16 %v6097_v58  ;;  %v825_v32 = vld [vmem:[#allocation2 + $0x1a1] sm:$0xff] }
 0x188   : > { %v6156_v22 = vpop.permute.xlu2 %4755  ;;  %v1660_v24 = vsel %vm1658_vm3, %v1627_v9, %v4743_v26 }
 0x18c   : > { %5060 = vrot.lane.b32.xlu0 %v5995_v1, %s5644_s17  ;;  %5040 = vrot.lane.b32.xlu1 %v6160_v31, %s5644_s17  ;;  %v4742_v1 = vunpack.i.l.bf16 %v6097_v58 }
 0x18e   : > { %4815 = vrot.lane.b32.xlu2 %v4814_v52, %s5644_s17  ;;  %v6169_v38 = vpop.permute.xlu1 %4840  ;;  %v5084_v52 = vpack.i.bf16 %v793_v27, %v792_v23  ;;  %v742_v23 = vld [vmem:[#allocation2 + $0xb2] sm:$0xff] }
 0x18f   : > { %v1851_v27 = vld [vmem:[%s8045_s1 + $0xf8] sm:$0xff] }
 0x190   : > { %v6175_v34 = vpop.permute.xlu2 %4760  ;;  %2065 = vmatpush.msrb.mxu1 %v1851_v27 }
 0x194   : > { %5075 = vrot.lane.b32.xlu0 %v6007_v19, %s5644_s17  ;;  %5055 = vrot.lane.b32.xlu1 %v6181_v53, %s5644_s17  ;;  %v1659_v19 = vsel %vm1658_vm3, %v1626_v33, %v4742_v1 }
 0x196   : > { %4820 = vrot.lane.b32.xlu2 %v4819_v50, %s5642_s30  ;;  %v4851_v55 = vpop.permute.xlu1 %4850 }
 0x197   : > { %v4852_v37 = vunpack.i.l.bf16 %v4851_v55  ;;  %v4853_v21 = vunpack.i.h.bf16 %v4851_v55 }
 0x198   : > { %v6194_v0 = vpop.permute.xlu2 %4765 }
 0x199   : > { %v1692_v42 = vsel %vm1691_vm4, %v1659_v19, %v4852_v37  ;;  %v730_v37 = vld [vmem:[#allocation2 + $0x22] sm:$0xff]  ;;  %v736_v19 = vld [vmem:[#allocation2 + $0x6a] sm:$0xff] }
 0x19a   : > { %1968 = vmatmul.f32.vlgmr.msra.gmra.mxu0 %v1692_v42  ;;  %v6271_v42 = vpop.permute.xlu0 %4710  ;;  %v4944_v39 = vpack.i.bf16 %v736_v19, %v735_v63 }
 0x19c   : > { %5090 = vrot.lane.b32.xlu0 %v5770_v56, %s5643_s16  ;;  %5070 = vrot.lane.b32.xlu1 %v5069_v7, %s5644_s17  ;;  %v1693_v56 = vsel %vm1691_vm4, %v1660_v24, %v4853_v21  ;;  %v741_v21 = vld [vmem:[#allocation2 + $0xaa] sm:$0xff] }
 0x19d   : > { %v4959_v24 = vpack.i.bf16 %v742_v23, %v741_v21  ;;  %v4722_v23 = vunpack.i.l.bf16 %v6022_v28 }
 0x19e   : > { %4825 = vrot.lane.b32.xlu2 %v6050_v25, %s5644_s17 }
 0x1a0   : > { %v6211_v35 = vpop.permute.xlu2 %4770 }
 0x1a2   : > { %1971 = vmatmul.f32.gmra.mxu0 %v1693_v56  ;;  %v6279_v9 = vpop.permute.xlu0 %4865 }
 0x1a4   : > { %5105 = vrot.lane.b32.xlu0 %v5866_v12, %s5643_s16  ;;  %5085 = vrot.lane.b32.xlu1 %v5084_v52, %s5644_s17  ;;  %v810_v12 = vld [vmem:[#allocation2 + $0xf1] sm:$0xff] }
 0x1a6   : > { %4830 = vrot.lane.b32.xlu2 %v6057_v36, %s5644_s17  ;;  %v811_v36 = vld [vmem:[#allocation2 + $0xf9] sm:$0xff] }
 0x1a8   : > { %v6220_v25 = vpop.permute.xlu2 %4775 }
 0x1ac   : > { %5120 = vrot.lane.b32.xlu0 %v4819_v50, %s5643_s16  ;;  %5100 = vrot.lane.b32.xlu1 %v5832_v41, %s5643_s16  ;;  %v5129_v41 = vpack.i.bf16 %v811_v36, %v810_v12 }
 0x1ae   : > { %4835 = vrot.lane.b32.xlu2 %v4834_v30, %s5644_s17 }
 0x1b0   : > { %v6228_v58 = vpop.permute.xlu2 %4780 }
 0x1b4   : > { %5135 = vrot.lane.b32.xlu0 %v5853_v59, %s5643_s16  ;;  %5115 = vrot.lane.b32.xlu1 %v6135_v20, %s5643_s16 }
 0x1b6   : > { %4845 = vrot.lane.b32.xlu2 %v6074_v46, %s5644_s17  ;;  %v823_v46 = vld [vmem:[#allocation2 + $0x189] sm:$0xff] }
 0x1b7   : > { %v5159_v48 = vpack.i.bf16 %v823_v46, %v822_v61  ;;  %v6286_v61 = vpop.permute.xlu0 %4880 }
 0x1b8   : > { %v6236_v47 = vpop.permute.xlu2 %4785 }
 0x1bc   : > { %5150 = vrot.lane.b32.xlu0 %v6089_v57, %s5643_s16  ;;  %5130 = vrot.lane.b32.xlu1 %v5129_v41, %s5643_s16 }
 0x1be   : > { %4855 = vrot.lane.b32.xlu2 %v6131_v13, %s5643_s16  ;;  %v6256_v13 = vpop.permute.xlu1 %4860 }
 0x1bf   : > { %v4896_v21 = vpop.permute.xlu0 %4895 }
 0x1c0   : > { %v6243_v59 = vpop.permute.xlu2 %4790 }
 0x1c4   : > { %5145 = vrot.lane.b32.xlu1 %v6027_v18, %s5643_s16  ;;  %v824_v18 = vld [vmem:[#allocation2 + $0x199] sm:$0xff] }
 0x1c6   : > { %4870 = vrot.lane.b32.xlu2 %v6143_v54, %s5643_s16  ;;  %v5164_v54 = vpack.i.bf16 %v825_v32, %v824_v18  ;;  %v6263_v50 = vpop.permute.xlu1 %4875  ;;  %v1850_v32 = vld [vmem:[%s8045_s1 + $0xf0] sm:$0xff] }
 0x1c7   : > { %2066 = vmatpush.msrb.mxu1 %v1850_v32 }
 0x1c8   : > { %v6249_v20 = vpop.permute.xlu2 %4795  ;;  %5165 = vrot.lane.b32.xlu0 %v5164_v54, %s5643_s16 }
 0x1cc   : > { %5160 = vrot.lane.b32.xlu1 %v5159_v48, %s5643_s16 }
 0x1ce   : > { %4885 = vrot.lane.b32.xlu2 %v6160_v31, %s5643_s16  ;;  %v729_v31 = vld [vmem:[#allocation2 + $0x1a] sm:$0xff]  ;;  %v4891_v60 = vpop.permute.xlu1 %4890 }
 0x1cf   : > { %v4929_v33 = vpack.i.bf16 %v730_v37, %v729_v31  ;;  %v4892_v36 = vunpack.i.l.bf16 %v4891_v60  ;;  %v4893_v63 = vunpack.i.h.bf16 %v4891_v60  ;;  %v4897_v60 = vunpack.i.l.bf16 %v4896_v21 }
 0x1d0   : > { %v6254_v57 = vpop.permute.xlu2 %4800 }
 0x1d6   : > { %4900 = vrot.lane.b32.xlu2 %v6181_v53, %s5643_s16  ;;  %v6274_v26 = vpop.permute.xlu1 %4905 }
 0x1d8   : > { %v6260_v1 = vpop.permute.xlu2 %4805 }
 0x1de   : > { %4915 = vrot.lane.b32.xlu2 %v5069_v7, %s5643_s16  ;;  %v6282_v30 = vpop.permute.xlu1 %4920 }
 0x1e0   : > { %v6266_v55 = vpop.permute.xlu2 %4810 }
 0x1e6   : > { %4930 = vrot.lane.b32.xlu2 %v4929_v33, %s5642_s30  ;;  %v753_v33 = vld [vmem:[#allocation2 + $0x13a] sm:$0xff]  ;;  %v6300_v19 = vpop.permute.xlu1 %4935 }
 0x1e8   : > { %v6269_v53 = vpop.permute.xlu2 %4815 }
 0x1ee   : > { %4945 = vrot.lane.b32.xlu2 %v4944_v39, %s5642_s30 }
 0x1f0   : > { %v4821_v7 = vpop.permute.xlu2 %4820 }
 0x1f1   : > { %v4822_v52 = vunpack.i.l.bf16 %v4821_v7  ;;  %v4823_v48 = vunpack.i.h.bf16 %v4821_v7  ;;  %v4989_v7 = vpack.i.bf16 %v5946_v16, %v753_v33 }
 0x1f3   : > { %v1642_v41 = vsel %vm512_vm0, %v6149_v17, %v4822_v52  ;;  %v1643_v17 = vsel %vm512_vm0, %v6151_v62, %v4823_v48  ;;  %v4767_v62 = vunpack.i.l.bf16 %v6194_v0  ;;  %v4768_v48 = vunpack.i.h.bf16 %v6194_v0  ;;  %v1847_v0 = vld [vmem:[%s8045_s1 + $0xd8] sm:$0xff] }
 0x1f6   : > { %4960 = vrot.lane.b32.xlu2 %v4959_v24, %s5642_s30  ;;  %v586_v24 = vld [vmem:[#allocation2 + $0xd8] sm:$0xff] }
 0x1f7   : > { %v1644_v52 = vsel %vm512_vm0, %v586_v24, %v4722_v23  ;;  %v570_v23 = vld [vmem:[#allocation2 + $0x18] sm:$0xff]  ;;  %v6347_v24 = vld [vmem:[#allocation2 + $0xa8] sm:$0xff] }
 0x1f8   : > { %v4826_v56 = vpop.permute.xlu2 %4825  ;;  %v1677_v16 = vsel %vm1658_vm3, %v1644_v52, %v4767_v62  ;;  %v6349_v52 = vld [vmem:[#allocation2 + $0xb0] sm:$0xff] }
 0x1f9   : > { %v4827_v12 = vunpack.i.l.bf16 %v4826_v56  ;;  %v4828_v54 = vunpack.i.h.bf16 %v4826_v56  ;;  %v1710_v56 = vsel %vm1691_vm4, %v1677_v16, %v4897_v60 }
 0x1fb   : > { %v1675_v46 = vsel %vm1658_vm3, %v1642_v41, %v4827_v12  ;;  %v1676_v37 = vsel %vm1658_vm3, %v1643_v17, %v4828_v54  ;;  %v5004_v12 = vpack.i.bf16 %v6198_v6, %v6177_v49  ;;  %v6320_v41 = vpop.permute.xlu1 %4950  ;;  %v587_v54 = vld [vmem:[#allocation2 + $0xe0] sm:$0xff]  ;;  %v6329_v49 = vld [vmem:[#allocation2 + $0x68] sm:$0xff] }
 0x1fc   : > { %v1708_v18 = vsel %vm1691_vm4, %v1675_v46, %v4892_v36  ;;  %v1709_v39 = vsel %vm1691_vm4, %v1676_v37, %v4893_v63  ;;  %v1848_v36 = vld [vmem:[%s8045_s1 + $0xe0] sm:$0xff]  ;;  %v4723_v46 = vunpack.i.h.bf16 %v6022_v28  ;;  %v4697_v63 = vunpack.i.l.bf16 %v5982_v51 }
 0x1fd   : > { %2016 = vmatmul.f32.vlgmr.msra.gmra.mxu1 %v1708_v18  ;;  %v4898_v18 = vunpack.i.h.bf16 %v4896_v21  ;;  %v6327_v17 = vld [vmem:[#allocation2 + $0x60] sm:$0xff] }
 0x1fe   : > { %4975 = vrot.lane.b32.xlu2 %v5999_v11, %s5642_s30  ;;  %v1849_v11 = vld [vmem:[%s8045_s1 + $0xe8] sm:$0xff]  ;;  %v1645_v6 = vsel %vm512_vm0, %v587_v54, %v4723_v46  ;;  %v5019_v28 = vpack.i.bf16 %v6329_v49, %v6327_v17  ;;  %v1628_v60 = vsel %vm512_vm0, %v570_v23, %v4697_v63  ;;  %v4698_v46 = vunpack.i.h.bf16 %v5982_v51  ;;  %v779_v63 = vld [vmem:[#allocation2 + $0xf8] sm:$0xff] }
 0x1ff   : > { %2067 = vmatpush.msrb.mxu1 %v1849_v11  ;;  %v1678_v37 = vsel %vm1658_vm3, %v1645_v6, %v4768_v48  ;;  %v4748_v48 = vunpack.i.h.bf16 %v6119_v15  ;;  %v4702_v23 = vunpack.i.l.bf16 %v5993_v3 }
 0x200   : > { %v6295_v31 = vpop.permute.xlu2 %4830  ;;  %v1711_v33 = vsel %vm1691_vm4, %v1678_v37, %v4898_v18  ;;  %v571_v37 = vld [vmem:[#allocation2 + $0x20] sm:$0xff] }
 0x201   : > { %2068 = vmatpush.msrb.mxu1 %v1848_v36  ;;  %v1846_v36 = vld [vmem:[%s8045_s1 + $0xd0] sm:$0xff] }
 0x203   : > { %2069 = vmatpush.msrb.mxu1 %v1847_v0  ;;  %v6344_v11 = vpop.permute.xlu1 %4965  ;;  %v778_v0 = vld [vmem:[#allocation2 + $0xf0] sm:$0xff] }
 0x205   : > { %2019 = vmatmul.f32.gmra.mxu1 %v1709_v39  ;;  %v4747_v39 = vunpack.i.l.bf16 %v6119_v15  ;;  %v5049_v15 = vpack.i.bf16 %v779_v63, %v778_v0 }
 0x206   : > { %4990 = vrot.lane.b32.xlu2 %v4989_v7, %s5642_s30  ;;  %v6341_v7 = vpop.permute.xlu0 %4910  ;;  %2070 = vmatpush.msrb.mxu1 %v1846_v36  ;;  %v6383_v36 = vld [vmem:[#allocation2 + $0x140] sm:$0xff] }
 0x207   : > { %v1661_v16 = vsel %vm1658_vm3, %v1628_v60, %v4747_v39  ;;  %v4862_v60 = vunpack.i.l.bf16 %v6256_v13 }
 0x208   : > { %v6310_v27 = vpop.permute.xlu2 %4835 }
 0x20d   : > { %2022 = vmatmul.f32.gmra.mxu1 %v1710_v56 }
 0x20e   : > { %5005 = vrot.lane.b32.xlu2 %v5004_v12, %s5642_s30  ;;  %v5034_v12 = vpack.i.bf16 %v6349_v52, %v6347_v24  ;;  %v6361_v54 = vpop.permute.xlu0 %4925 }
 0x210   : > { %v6325_v32 = vpop.permute.xlu2 %4845 }
 0x215   : > { %2025 = vmatmul.f32.gmra.mxu1 %v1711_v33  ;;  %v6365_v33 = vpop.permute.xlu1 %4980 }
 0x216   : > { %5020 = vrot.lane.b32.xlu2 %v5019_v28, %s5644_s17  ;;  %8060 = vst [vmem:[#allocation3_spill] sm:$0xff] %v6365_v33  ;;  %v1629_v28 = vsel %vm512_vm0, %v571_v37, %v4698_v46  ;;  %v6385_v46 = vpop.permute.xlu0 %4940 }
 0x217   : > { %v1662_v39 = vsel %vm1658_vm3, %v1629_v28, %v4748_v48 }
 0x218   : > { %v4856_v21 = vpop.permute.xlu2 %4855 }
 0x219   : > { %v4857_v62 = vunpack.i.l.bf16 %v4856_v21  ;;  %v4858_v18 = vunpack.i.h.bf16 %v4856_v21  ;;  %v1845_v21 = vld [vmem:[%s8045_s1 + $0xc8] sm:$0xff] }
 0x21a   : > { %2071 = vmatpush.msrb.mxu1 %v1845_v21  ;;  %v4772_v21 = vunpack.i.l.bf16 %v6211_v35 }
 0x21b   : > { %v1694_v56 = vsel %vm1691_vm4, %v1661_v16, %v4857_v62  ;;  %v1695_v51 = vsel %vm1691_vm4, %v1662_v39, %v4858_v18  ;;  %v4752_v62 = vunpack.i.l.bf16 %v6141_v29  ;;  %v4703_v39 = vunpack.i.h.bf16 %v5993_v3  ;;  %v791_v3 = vld [vmem:[#allocation2 + $0x188] sm:$0xff] }
 0x21c   : > { %1974 = vmatmul.f32.gmra.mxu0 %v1694_v56  ;;  %v1630_v56 = vsel %vm512_vm0, %v6121_v4, %v4702_v23  ;;  %v1844_v4 = vld [vmem:[%s8045_s1 + $0xc0] sm:$0xff]  ;;  %v4863_v23 = vunpack.i.h.bf16 %v6256_v13  ;;  %v4757_v13 = vunpack.i.l.bf16 %v6156_v22 }
 0x21d   : > { %v1663_v48 = vsel %vm1658_vm3, %v1630_v56, %v4752_v62  ;;  %v6388_v18 = vpop.permute.xlu1 %4995  ;;  %2072 = vmatpush.msrb.mxu1 %v1844_v4  ;;  %v1631_v56 = vsel %vm512_vm0, %v6117_v2, %v4703_v39  ;;  %v4728_v39 = vunpack.i.h.bf16 %v6034_v40 }
 0x21e   : > { %5035 = vrot.lane.b32.xlu2 %v5034_v12, %s5644_s17  ;;  %v6381_v12 = vld [vmem:[#allocation2 + $0x138] sm:$0xff]  ;;  %8061 = vst [vmem:[#allocation4_spill] sm:$0xff] %v6388_v18  ;;  %v1696_v37 = vsel %vm1691_vm4, %v1663_v48, %v4862_v60  ;;  %v6411_v33 = vpop.permute.xlu0 %4955 }
 0x21f   : > { %v5064_v28 = vpack.i.bf16 %v6383_v36, %v6381_v12 }
 0x220   : > { %v6363_v6 = vpop.permute.xlu2 %4870 }
 0x224   : > { %1977 = vmatmul.f32.gmra.mxu0 %v1695_v51  ;;  %v4727_v51 = vunpack.i.l.bf16 %v6034_v40  ;;  %v6427_v40 = vld [vmem:[#allocation2 + $0x49] sm:$0xff] }
 0x226   : > { %5050 = vrot.lane.b32.xlu2 %v5049_v15, %s5644_s17  ;;  %v4753_v15 = vunpack.i.h.bf16 %v6141_v29  ;;  %v1646_v48 = vsel %vm512_vm0, %v778_v0, %v4727_v51  ;;  %v4707_v29 = vunpack.i.l.bf16 %v6005_v14  ;;  %v1843_v0 = vld [vmem:[%s8045_s1 + $0xb8] sm:$0xff]  ;;  %v6417_v51 = vpop.permute.xlu1 %5010 }
 0x227   : > { %v1679_v4 = vsel %vm1658_vm3, %v1646_v48, %v4772_v21  ;;  %2073 = vmatpush.msrb.mxu1 %v1843_v0  ;;  %v4867_v21 = vunpack.i.l.bf16 %v6279_v9  ;;  %v1647_v48 = vsel %vm512_vm0, %v779_v63, %v4728_v39  ;;  %v1842_v63 = vld [vmem:[%s8045_s1 + $0xb0] sm:$0xff]  ;;  %v4907_v39 = vunpack.i.l.bf16 %v6274_v26 }
 0x228   : > { %v6377_v16 = vpop.permute.xlu2 %4885  ;;  %v1664_v8 = vsel %vm1658_vm3, %v1631_v56, %v4753_v15  ;;  %v574_v15 = vld [vmem:[#allocation2 + $0x48] sm:$0xff]  ;;  %v575_v0 = vld [vmem:[#allocation2 + $0x50] sm:$0xff] }
 0x229   : > { %v1697_v18 = vsel %vm1691_vm4, %v1664_v8, %v4863_v23  ;;  %v4773_v8 = vunpack.i.h.bf16 %v6211_v35  ;;  %2074 = vmatpush.msrb.mxu1 %v1842_v63  ;;  %v4778_v63 = vunpack.i.h.bf16 %v6220_v25 }
 0x22b   : > { %v1680_v35 = vsel %vm1658_vm3, %v1647_v48, %v4773_v8  ;;  %v6458_v48 = vld [vmem:[#allocation2 + $0x99] sm:$0xff] }
 0x22c   : > { %1980 = vmatmul.f32.gmra.mxu0 %v1696_v37  ;;  %v790_v37 = vld [vmem:[#allocation2 + $0x180] sm:$0xff] }
 0x22d   : > { %v5079_v2 = vpack.i.bf16 %v791_v3, %v790_v37  ;;  %v6429_v37 = vld [vmem:[#allocation2 + $0x51] sm:$0xff]  ;;  %v4708_v3 = vunpack.i.h.bf16 %v6005_v14  ;;  %v4777_v14 = vunpack.i.l.bf16 %v6220_v25  ;;  %v6485_v25 = vld [vmem:[#allocation2 + $0xe1] sm:$0xff] }
 0x22e   : > { %5065 = vrot.lane.b32.xlu2 %v5064_v28, %s5644_s17  ;;  %v6448_v8 = vpop.permute.xlu1 %5025 }
 0x230   : > { %v4901_v62 = vpop.permute.xlu2 %4900 }
 0x231   : > { %v4902_v60 = vunpack.i.l.bf16 %v4901_v62  ;;  %v4903_v23 = vunpack.i.h.bf16 %v4901_v62 }
 0x233   : > { %v1712_v28 = vsel %vm1691_vm4, %v1679_v4, %v4902_v60  ;;  %v1713_v62 = vsel %vm1691_vm4, %v1680_v35, %v4903_v23 }
 0x234   : > { %1983 = vmatmul.f32.gmra.mxu0 %v1697_v18  ;;  %2028 = vmatmul.f32.gmra.mxu1 %v1712_v28  ;;  %v1632_v18 = vsel %vm512_vm0, %v574_v15, %v4707_v29  ;;  %v4758_v29 = vunpack.i.h.bf16 %v6156_v22  ;;  %v5094_v28 = vpack.i.bf16 %v6429_v37, %v6427_v40  ;;  %v4868_v22 = vunpack.i.h.bf16 %v6279_v9 }
 0x235   : > { %v1665_v56 = vsel %vm1658_vm3, %v1632_v18, %v4757_v13  ;;  %v4732_v13 = vunpack.i.l.bf16 %v6048_v10  ;;  %v1633_v15 = vsel %vm512_vm0, %v575_v0, %v4708_v3 }
 0x236   : > { %5080 = vrot.lane.b32.xlu2 %v5079_v2, %s5644_s17  ;;  %v1698_v4 = vsel %vm1691_vm4, %v1665_v56, %v4867_v21  ;;  %v6443_v2 = vpop.permute.xlu0 %4970  ;;  %v1666_v23 = vsel %vm1658_vm3, %v1633_v15, %v4758_v29  ;;  %v6456_v56 = vld [vmem:[#allocation2 + $0x91] sm:$0xff]  ;;  %v4712_v29 = vunpack.i.l.bf16 %v6271_v42 }
 0x237   : > { %v1648_v18 = vsel %vm512_vm0, %v6171_v43, %v4732_v13  ;;  %v1699_v9 = vsel %vm1691_vm4, %v1666_v23, %v4868_v22  ;;  %v5109_v3 = vpack.i.bf16 %v6458_v48, %v6456_v56  ;;  %v4733_v43 = vunpack.i.h.bf16 %v6048_v10  ;;  %v6483_v23 = vld [vmem:[#allocation2 + $0xd9] sm:$0xff] }
 0x238   : > { %v6423_v60 = vpop.permute.xlu2 %4915  ;;  %v1681_v35 = vsel %vm1658_vm3, %v1648_v18, %v4777_v14  ;;  %v4908_v13 = vunpack.i.h.bf16 %v6274_v26  ;;  %v4872_v14 = vunpack.i.l.bf16 %v6363_v6  ;;  %v1634_v10 = vsel %vm512_vm0, %v6327_v17, %v4712_v29  ;;  %v1840_v17 = vld [vmem:[%s8045_s1 + $0xa0] sm:$0xff]  ;;  %v6501_v29 = vld [vmem:[#allocation2 + $0x129] sm:$0xff] }
 0x239   : > { %v1649_v15 = vsel %vm512_vm0, %v6173_v44, %v4733_v43  ;;  %v5124_v44 = vpack.i.bf16 %v6485_v25, %v6483_v23  ;;  %v6499_v43 = vld [vmem:[#allocation2 + $0x121] sm:$0xff]  ;;  %8064 = vst [vmem:[#allocation7_spill] sm:$0xff] %v6501_v29 }
 0x23a   : > { %v1682_v26 = vsel %vm1658_vm3, %v1649_v15, %v4778_v63  ;;  %8063 = vst [vmem:[#allocation6_spill] sm:$0xff] %v6499_v43  ;;  %v592_v63 = vld [vmem:[#allocation2 + $0x120] sm:$0xff] }
 0x23c   : > { %1986 = vmatmul.f32.gmra.mxu0 %v1698_v4  ;;  %2031 = vmatmul.f32.gmra.mxu1 %v1713_v62  ;;  %v1714_v4 = vsel %vm1691_vm4, %v1681_v35, %v4907_v39  ;;  %v1841_v62 = vld [vmem:[%s8045_s1 + $0xa8] sm:$0xff]  ;;  %v5041_v39 = vpop.permute.xlu1 %5040  ;;  %v4737_v35 = vunpack.i.l.bf16 %v6076_v45 }
 0x23d   : > { %2075 = vmatpush.msrb.mxu1 %v1841_v62  ;;  %v4713_v62 = vunpack.i.h.bf16 %v6271_v42  ;;  %v5139_v42 = vpack.i.bf16 %v6501_v29, %v6499_v43 }
 0x23e   : > { %5095 = vrot.lane.b32.xlu2 %v5094_v28, %s5643_s16  ;;  %v4762_v28 = vunpack.i.l.bf16 %v6175_v34  ;;  %v6475_v0 = vpop.permute.xlu0 %4985 }
 0x23f   : > { %8062 = vst [vmem:[#allocation5_spill] sm:$0xff] %v6475_v0  ;;  %2076 = vmatpush.msrb.mxu1 %v1840_v17  ;;  %v5042_v17 = vunpack.i.l.bf16 %v5041_v39 }
 0x240   : > { %v6451_v21 = vpop.permute.xlu2 %4930  ;;  %v1667_v18 = vsel %vm1658_vm3, %v1634_v10, %v4762_v28  ;;  %v4763_v28 = vunpack.i.h.bf16 %v6175_v34  ;;  %v4738_v10 = vunpack.i.h.bf16 %v6076_v45  ;;  %v1635_v34 = vsel %vm512_vm0, %v6329_v49, %v4713_v62 }
 0x241   : > { %v4787_v49 = vunpack.i.l.bf16 %v6236_v47  ;;  %v4833_v62 = vunpack.i.h.bf16 %v6295_v31 }
 0x242   : > { %v1668_v45 = vsel %vm1658_vm3, %v1635_v34, %v4763_v28 }
 0x244   : > { %1989 = vmatmul.f32.gmra.mxu0 %v1699_v9  ;;  %2034 = vmatmul.f32.gmra.mxu1 %v1714_v4  ;;  %v1700_v9 = vsel %vm1691_vm4, %v1667_v18, %v4872_v14  ;;  %v1715_v4 = vsel %vm1691_vm4, %v1682_v26, %v4908_v13  ;;  %v4873_v13 = vunpack.i.h.bf16 %v6363_v6  ;;  %v1650_v14 = vsel %vm512_vm0, %v592_v63, %v4737_v35  ;;  %v709_v63 = vld [vmem:[#allocation2 + $0xa9] sm:$0xff] }
 0x245   : > { %v4912_v26 = vunpack.i.l.bf16 %v6341_v7  ;;  %v5043_v35 = vunpack.i.h.bf16 %v5041_v39  ;;  %v1839_v39 = vld [vmem:[%s8045_s1 + $0x98] sm:$0xff] }
 0x246   : > { %5110 = vrot.lane.b32.xlu2 %v5109_v3, %s5643_s16  ;;  %v4832_v3 = vunpack.i.l.bf16 %v6295_v31  ;;  %v6515_v6 = vpop.permute.xlu0 %5000  ;;  %v1701_v29 = vsel %vm1691_vm4, %v1668_v45, %v4873_v13  ;;  %2077 = vmatpush.msrb.mxu1 %v1839_v39  ;;  %v820_v45 = vld [vmem:[#allocation2 + $0x169] sm:$0xff]  ;;  %v715_v39 = vld [vmem:[#allocation2 + $0xf1] sm:$0xff] }
 0x247   : > { %8065 = vst [vmem:[#allocation8_spill] sm:$0xff] %v6515_v6  ;;  %v716_v6 = vld [vmem:[#allocation2 + $0xf9] sm:$0xff] }
 0x248   : > { %v6477_v22 = vpop.permute.xlu2 %4945  ;;  %v1683_v18 = vsel %vm1658_vm3, %v1650_v14, %v4832_v3  ;;  %v710_v3 = vld [vmem:[#allocation2 + $0xb1] sm:$0xff]  ;;  %v5056_v14 = vpop.permute.xlu1 %5055 }
 0x249   : > { %v1716_v43 = vsel %vm1691_vm4, %v1683_v18, %v4912_v26  ;;  %v578_v18 = vld [vmem:[#allocation2 + $0x78] sm:$0xff]  ;;  %v593_v26 = vld [vmem:[#allocation2 + $0x128] sm:$0xff] }
 0x24c   : > { %1992 = vmatmul.f32.gmra.mxu0 %v1700_v9  ;;  %2037 = vmatmul.f32.gmra.mxu1 %v1715_v4 }
 0x24e   : > { %5125 = vrot.lane.b32.xlu2 %v5124_v44, %s5643_s16  ;;  %v4717_v44 = vunpack.i.l.bf16 %v6153_v5 }
 0x250   : > { %v4961_v15 = vpop.permute.xlu2 %4960  ;;  %v1636_v31 = vsel %vm512_vm0, %v578_v18, %v4717_v44  ;;  %v6546_v18 = vpop.permute.xlu0 %5015 }
 0x251   : > { %v4963_v9 = vunpack.i.h.bf16 %v4961_v15  ;;  %v4962_v4 = vunpack.i.l.bf16 %v4961_v15 }
 0x253   : > { %v1736_v15 = vsel %vm512_vm0, %v709_v63, %v4962_v4  ;;  %v1737_v0 = vsel %vm512_vm0, %v710_v3, %v4963_v9  ;;  %v4877_v9 = vunpack.i.l.bf16 %v6263_v50  ;;  %v1669_v4 = vsel %vm1658_vm3, %v1636_v31, %v4787_v49  ;;  %v821_v63 = vld [vmem:[#allocation2 + $0x171] sm:$0xff] }
 0x254   : > { %1995 = vmatmul.f32.gmra.mxu0 %v1701_v29  ;;  %2040 = vmatmul.f32.gmra.mxu1 %v1716_v43  ;;  %v6528_v28 = vsel %vm1658_vm3, %v1736_v15, %v5042_v17  ;;  %v6531_v13 = vsel %vm1658_vm3, %v1737_v0, %v5043_v35  ;;  %v1651_v43 = vsel %vm512_vm0, %v593_v26, %v4738_v10  ;;  %v4913_v17 = vunpack.i.h.bf16 %v6341_v7 }
 0x255   : > { %v1684_v34 = vsel %vm1658_vm3, %v1651_v43, %v4833_v62  ;;  %v5058_v3 = vunpack.i.h.bf16 %v5056_v14  ;;  %v5057_v15 = vunpack.i.l.bf16 %v5056_v14  ;;  %v1702_v44 = vsel %vm1691_vm4, %v1669_v4, %v4877_v9  ;;  %v579_v43 = vld [vmem:[#allocation2 + $0x80] sm:$0xff] }
 0x256   : > { %5140 = vrot.lane.b32.xlu2 %v5139_v42, %s5643_s16  ;;  %v4718_v42 = vunpack.i.h.bf16 %v6153_v5  ;;  %v1717_v10 = vsel %vm1691_vm4, %v1684_v34, %v4913_v17  ;;  %v4788_v7 = vunpack.i.h.bf16 %v6236_v47  ;;  %v5154_v26 = vpack.i.bf16 %v821_v63, %v820_v45  ;;  %v1838_v5 = vld [vmem:[%s8045_s1 + $0x90] sm:$0xff] }
 0x257   : > { %v4782_v31 = vunpack.i.l.bf16 %v6228_v58  ;;  %2078 = vmatpush.msrb.mxu1 %v1838_v5  ;;  %v4837_v47 = vunpack.i.l.bf16 %v6310_v27  ;;  %v4917_v4 = vunpack.i.l.bf16 %v6423_v60  ;;  %v4792_v63 = vunpack.i.l.bf16 %v6243_v59 }
 0x258   : > { %v4976_v29 = vpop.permute.xlu2 %4975  ;;  %v1637_v34 = vsel %vm512_vm0, %v579_v43, %v4718_v42  ;;  %v1837_v42 = vld [vmem:[%s8045_s1 + $0x88] sm:$0xff] }
 0x259   : > { %v4978_v0 = vunpack.i.h.bf16 %v4976_v29  ;;  %v4977_v35 = vunpack.i.l.bf16 %v4976_v29  ;;  %v4878_v29 = vunpack.i.h.bf16 %v6263_v50  ;;  %v4802_v50 = vunpack.i.l.bf16 %v6254_v57  ;;  %2079 = vmatpush.msrb.mxu1 %v1837_v42 }
 0x25a   : > { %v4803_v42 = vunpack.i.h.bf16 %v6254_v57  ;;  %v4922_v57 = vunpack.i.l.bf16 %v6282_v30 }
 0x25b   : > { %v1742_v49 = vsel %vm512_vm0, %v715_v39, %v4977_v35  ;;  %v1743_v62 = vsel %vm512_vm0, %v716_v6, %v4978_v0  ;;  %v6558_v6 = vpop.permute.xlu1 %5070  ;;  %v1670_v0 = vsel %vm1658_vm3, %v1637_v34, %v4788_v7  ;;  %v1652_v35 = vsel %vm512_vm0, %v6381_v12, %v4782_v31  ;;  %v6579_v12 = vpop.permute.xlu0 %5030 }
 0x25c   : > { %1998 = vmatmul.f32.gmra.mxu0 %v1702_v44  ;;  %2043 = vmatmul.f32.gmra.mxu1 %v1717_v10  ;;  %v6552_v14 = vsel %vm1658_vm3, %v1742_v49, %v5057_v15  ;;  %v6555_v9 = vsel %vm1658_vm3, %v1743_v62, %v5058_v3  ;;  %v1685_v45 = vsel %vm1658_vm3, %v1652_v35, %v4837_v47  ;;  %v4783_v39 = vunpack.i.h.bf16 %v6228_v58  ;;  %v580_v10 = vld [vmem:[#allocation2 + $0x90] sm:$0xff]  ;;  %v727_v35 = vld [vmem:[#allocation2 + $0x181] sm:$0xff] }
 0x25d   : > { %v1703_v3 = vsel %vm1691_vm4, %v1670_v0, %v4878_v29  ;;  %v1718_v15 = vsel %vm1691_vm4, %v1685_v45, %v4917_v4  ;;  %v4838_v44 = vunpack.i.h.bf16 %v6310_v27  ;;  %v4882_v49 = vunpack.i.l.bf16 %v6286_v61 }
 0x25e   : > { %5155 = vrot.lane.b32.xlu2 %v5154_v26, %s5643_s16  ;;  %v4918_v7 = vunpack.i.h.bf16 %v6423_v60  ;;  %v1638_v26 = vsel %vm512_vm0, %v580_v10, %v4792_v63  ;;  %v4797_v58 = vunpack.i.l.bf16 %v6249_v20  ;;  %v1653_v27 = vsel %vm512_vm0, %v6383_v36, %v4783_v39  ;;  %v728_v60 = vld [vmem:[#allocation2 + $0x189] sm:$0xff] }
 0x25f   : > { %v1671_v43 = vsel %vm1658_vm3, %v1638_v26, %v4802_v50  ;;  %v4793_v34 = vunpack.i.h.bf16 %v6243_v59  ;;  %v1686_v0 = vsel %vm1658_vm3, %v1653_v27, %v4838_v44  ;;  %v4842_v50 = vunpack.i.l.bf16 %v6169_v38  ;;  %v596_v36 = vld [vmem:[#allocation2 + $0x150] sm:$0xff]  ;;  %v1836_v59 = vld [vmem:[%s8045_s1 + $0x80] sm:$0xff] }
 0x260   : > { %v6565_v17 = vpop.permute.xlu2 %4990  ;;  %v1704_v45 = vsel %vm1691_vm4, %v1671_v43, %v4882_v49  ;;  %v1719_v63 = vsel %vm1691_vm4, %v1686_v0, %v4918_v7  ;;  %v1654_v10 = vsel %vm512_vm0, %v596_v36, %v4797_v58  ;;  %2080 = vmatpush.msrb.mxu1 %v1836_v59  ;;  %v581_v49 = vld [vmem:[#allocation2 + $0x98] sm:$0xff]  ;;  %v4807_v27 = vunpack.i.l.bf16 %v6260_v1 }
 0x261   : > { %v1639_v7 = vsel %vm512_vm0, %v581_v49, %v4793_v34  ;;  %v1687_v43 = vsel %vm1658_vm3, %v1654_v10, %v4842_v50  ;;  %v4817_v0 = vunpack.i.l.bf16 %v6269_v53  ;;  %v4808_v36 = vunpack.i.h.bf16 %v6260_v1  ;;  %v598_v10 = vld [vmem:[#allocation2 + $0x168] sm:$0xff] }
 0x262   : > { %v4818_v59 = vunpack.i.h.bf16 %v6269_v53  ;;  %v4888_v49 = vunpack.i.h.bf16 %v6377_v16  ;;  %v4813_v1 = vunpack.i.h.bf16 %v6266_v55 }
 0x263   : > { %v5086_v62 = vpop.permute.xlu1 %5085  ;;  %v6610_v26 = vpop.permute.xlu0 %5045 }
 0x264   : > { %2001 = vmatmul.f32.gmra.mxu0 %v1703_v3  ;;  %2046 = vmatmul.f32.gmra.mxu1 %v1718_v15  ;;  %v5088_v5 = vunpack.i.h.bf16 %v5086_v62  ;;  %v5087_v31 = vunpack.i.l.bf16 %v5086_v62  ;;  %v4883_v62 = vunpack.i.h.bf16 %v6286_v61  ;;  %v4843_v61 = vunpack.i.h.bf16 %v6169_v38 }
 0x265   : > { %v1640_v38 = vsel %vm512_vm0, %v6347_v24, %v4807_v27  ;;  %v4927_v24 = vunpack.i.l.bf16 %v6361_v54 }
 0x268   : > { %v5006_v47 = vpop.permute.xlu2 %5005 }
 0x269   : > { %v5008_v29 = vunpack.i.h.bf16 %v5006_v47  ;;  %v5007_v4 = vunpack.i.l.bf16 %v5006_v47 }
 0x26b   : > { %v1754_v3 = vsel %vm512_vm0, %v727_v35, %v5007_v4  ;;  %v1755_v15 = vsel %vm512_vm0, %v728_v60, %v5008_v29  ;;  %v1720_v29 = vsel %vm1691_vm4, %v1687_v43, %v4922_v57  ;;  %v597_v4 = vld [vmem:[#allocation2 + $0x158] sm:$0xff]  ;;  %v4923_v35 = vunpack.i.h.bf16 %v6282_v30 }
 0x26c   : > { %2004 = vmatmul.f32.gmra.mxu0 %v1704_v45  ;;  %2049 = vmatmul.f32.gmra.mxu1 %v1719_v63  ;;  %v6601_v39 = vsel %vm1658_vm3, %v1754_v3, %v5087_v31  ;;  %v6604_v44 = vsel %vm1658_vm3, %v1755_v15, %v5088_v5  ;;  %v1672_v31 = vsel %vm1658_vm3, %v1639_v7, %v4803_v42  ;;  %v4798_v5 = vunpack.i.h.bf16 %v6249_v20  ;;  %v6630_v63 = vpop.permute.xlu0 %5060 }
 0x26d   : > { %v1705_v58 = vsel %vm1691_vm4, %v1672_v31, %v4883_v62  ;;  %v4887_v60 = vunpack.i.l.bf16 %v6377_v16  ;;  %v1673_v3 = vsel %vm1658_vm3, %v1640_v38, %v4817_v0  ;;  %v4812_v15 = vunpack.i.l.bf16 %v6266_v55 }
 0x26e   : > { %v1655_v34 = vsel %vm512_vm0, %v597_v4, %v4798_v5  ;;  %v4847_v30 = vunpack.i.l.bf16 %v6325_v32  ;;  %v1641_v31 = vsel %vm512_vm0, %v6349_v52, %v4808_v36  ;;  %v4848_v16 = vunpack.i.h.bf16 %v6325_v32 }
 0x26f   : > { %v1688_v45 = vsel %vm1658_vm3, %v1655_v34, %v4843_v61  ;;  %v1706_v50 = vsel %vm1691_vm4, %v1673_v3, %v4887_v60  ;;  %v1656_v62 = vsel %vm512_vm0, %v598_v10, %v4812_v15  ;;  %v1674_v43 = vsel %vm1658_vm3, %v1641_v31, %v4818_v59 }
 0x270   : > { %v6612_v47 = vpop.permute.xlu2 %5020  ;;  %v1721_v42 = vsel %vm1691_vm4, %v1688_v45, %v4923_v35  ;;  %v1689_v7 = vsel %vm1658_vm3, %v1656_v62, %v4847_v30  ;;  %v1707_v53 = vsel %vm1691_vm4, %v1674_v43, %v4888_v49  ;;  %v4928_v61 = vunpack.i.h.bf16 %v6361_v54  ;;  %v697_v35 = vld [vmem:[#allocation2 + $0x19] sm:$0xff] }
 0x271   : > { %v1722_v5 = vsel %vm1691_vm4, %v1689_v7, %v4927_v24  ;;  %v4932_v55 = vunpack.i.l.bf16 %v6451_v21  ;;  %v5012_v60 = vunpack.i.l.bf16 %v6417_v51  ;;  %v4933_v3 = vunpack.i.h.bf16 %v6451_v21 }
 0x272   : > { %v5013_v59 = vunpack.i.h.bf16 %v6417_v51  ;;  %v4937_v21 = vunpack.i.l.bf16 %v6300_v19  ;;  %v5017_v7 = vunpack.i.l.bf16 %v6546_v18 }
 0x273   : > { %v1724_v32 = vsel %vm512_vm0, %v697_v35, %v4932_v55  ;;  %v4942_v35 = vunpack.i.l.bf16 %v6385_v46 }
 0x274   : > { %2007 = vmatmul.f32.gmra.mxu0 %v1705_v58  ;;  %2052 = vmatmul.f32.gmra.mxu1 %v1720_v29  ;;  %v6651_v58 = vpop.permute.xlu0 %5075  ;;  %v599_v29 = vld [vmem:[#allocation2 + $0x170] sm:$0xff]  ;;  %v1756_v54 = vsel %vm1658_vm3, %v1724_v32, %v5012_v60  ;;  %v5022_v60 = vunpack.i.l.bf16 %v6612_v47 }
 0x275   : > { %v1657_v4 = vsel %vm512_vm0, %v599_v29, %v4813_v1  ;;  %v699_v1 = vld [vmem:[#allocation2 + $0x31] sm:$0xff]  ;;  %v5018_v29 = vunpack.i.h.bf16 %v6546_v18 }
 0x276   : > { %v1690_v27 = vsel %vm1658_vm3, %v1657_v4, %v4848_v16  ;;  %v4938_v16 = vunpack.i.h.bf16 %v6300_v19  ;;  %v700_v4 = vld [vmem:[#allocation2 + $0x39] sm:$0xff]  ;;  %v1728_v19 = vsel %vm512_vm0, %v6427_v40, %v4942_v35  ;;  %v4947_v40 = vunpack.i.l.bf16 %v6477_v22 }
 0x277   : > { %v1723_v0 = vsel %vm1691_vm4, %v1690_v27, %v4928_v61  ;;  %v1760_v18 = vsel %vm1658_vm3, %v1728_v19, %v5022_v60  ;;  %v5032_v35 = vunpack.i.l.bf16 %v6579_v12  ;;  %v705_v60 = vld [vmem:[#allocation2 + $0x79] sm:$0xff] }
 0x278   : > { %v6625_v20 = vpop.permute.xlu2 %5035  ;;  %v1727_v55 = vsel %vm512_vm0, %v700_v4, %v4938_v16  ;;  %v5028_v16 = vunpack.i.h.bf16 %v6448_v8 }
 0x27a   : > { %v6660_v34 = vpop.f32.mrf.mxu1 }
 0x27c   : > { %2010 = vmatmul.f32.gmra.mxu0 %v1706_v50  ;;  %2055 = vmatmul.f32.gmra.mxu1 %v1721_v42  ;;  %v5091_v45 = vpop.permute.xlu0 %5090  ;;  %v698_v42 = vld [vmem:[#allocation2 + $0x21] sm:$0xff] }
 0x27d   : > { %v5092_v38 = vunpack.i.l.bf16 %v5091_v45  ;;  %v1725_v36 = vsel %vm512_vm0, %v698_v42, %v4933_v3  ;;  %v5093_v24 = vunpack.i.h.bf16 %v5091_v45  ;;  %v5101_v45 = vpop.permute.xlu1 %5100  ;;  %v4943_v3 = vunpack.i.h.bf16 %v6385_v46 }
 0x27e   : > { %v1757_v10 = vsel %vm1658_vm3, %v1725_v36, %v5013_v59  ;;  %v5023_v42 = vunpack.i.h.bf16 %v6612_v47 }
 0x27f   : > { %v1788_v50 = vsel %vm1691_vm4, %v1756_v54, %v5092_v38  ;;  %v1789_v49 = vsel %vm1691_vm4, %v1757_v10, %v5093_v24  ;;  %v5102_v54 = vunpack.i.l.bf16 %v5101_v45  ;;  %v1729_v36 = vsel %vm512_vm0, %v6429_v37, %v4943_v3 }
 0x280   : > { %v6642_v57 = vpop.permute.xlu2 %5050  ;;  %v1761_v59 = vsel %vm1658_vm3, %v1729_v36, %v5023_v42  ;;  %v5103_v10 = vunpack.i.h.bf16 %v5101_v45  ;;  %v4948_v37 = vunpack.i.h.bf16 %v6477_v22  ;;  %v4952_v22 = vunpack.i.l.bf16 %v6320_v41  ;;  %v706_v42 = vld [vmem:[#allocation2 + $0x81] sm:$0xff] }
 0x281   : > { %v5033_v3 = vunpack.i.h.bf16 %v6579_v12 }
 0x282   : > { %v6670_v30 = vpop.f32.mrf.mxu1  ;;  %v1732_v19 = vsel %vm512_vm0, %v705_v60, %v4952_v22 }
 0x284   : > { %2013 = vmatmul.f32.gmra.mxu0 %v1707_v53  ;;  %2058 = vmatmul.f32.gmra.mxu1 %v1722_v5  ;;  %v1726_v53 = vsel %vm512_vm0, %v699_v1, %v4937_v21  ;;  %v5027_v21 = vunpack.i.l.bf16 %v6448_v8  ;;  %v5106_v47 = vpop.permute.xlu0 %5105  ;;  %v1764_v8 = vsel %vm1658_vm3, %v1732_v19, %v5032_v35  ;;  %v4967_v19 = vunpack.i.l.bf16 %v6344_v11 }
 0x285   : > { %v1758_v5 = vsel %vm1658_vm3, %v1726_v53, %v5017_v7 }
 0x288   : > { %v6656_v52 = vpop.permute.xlu2 %5065 }
 0x28a   : > { %v6678_v31 = vpop.f32.mrf.mxu1 }
 0x28c   : > { %2061 = vmatmul.f32.gmra.mxu1 %v1723_v0  ;;  %v1759_v0 = vsel %vm1658_vm3, %v1727_v55, %v5018_v29 }
 0x290   : > { %v6667_v15 = vpop.permute.xlu2 %5080 }
 0x292   : > { %v6685_v27 = vpop.f32.mrf.mxu1 }
 0x294   : > { %2081 = vmatmul.f32.vlgmr.msrb.gmra.mxu1 %v1788_v50  ;;  %v1792_v50 = vsel %vm1691_vm4, %v1760_v18, %v5102_v54  ;;  %v4953_v54 = vunpack.i.h.bf16 %v6320_v41 }
 0x298   : > { %v5096_v62 = vpop.permute.xlu2 %5095 }
 0x299   : > { %v5097_v43 = vunpack.i.l.bf16 %v5096_v62  ;;  %v5098_v61 = vunpack.i.h.bf16 %v5096_v62  ;;  %v703_v62 = vld [vmem:[#allocation2 + $0x61] sm:$0xff] }
 0x29a   : > { %v1730_v46 = vsel %vm512_vm0, %v703_v62, %v4947_v40  ;;  %v4957_v40 = vunpack.i.l.bf16 %v6411_v33  ;;  %v5037_v62 = vunpack.i.l.bf16 %v6625_v20 }
 0x29b   : > { %v1790_v51 = vsel %vm1691_vm4, %v1758_v5, %v5097_v43  ;;  %v1791_v32 = vsel %vm1691_vm4, %v1759_v0, %v5098_v61  ;;  %v1762_v7 = vsel %vm1658_vm3, %v1730_v46, %v5027_v21  ;;  %v5107_v43 = vunpack.i.l.bf16 %v5106_v47  ;;  %v704_v5 = vld [vmem:[#allocation2 + $0x69] sm:$0xff]  ;;  %v5116_v46 = vpop.permute.xlu1 %5115 }
 0x29c   : > { %2084 = vmatmul.f32.gmra.mxu1 %v1789_v49  ;;  %v1793_v49 = vsel %vm1691_vm4, %v1761_v59, %v5103_v10  ;;  %v5108_v61 = vunpack.i.h.bf16 %v5106_v47  ;;  %v1733_v59 = vsel %vm512_vm0, %v706_v42, %v4953_v54  ;;  %v1734_v41 = vsel %vm512_vm0, %v6456_v56, %v4957_v40 }
 0x29d   : > { %v1794_v53 = vsel %vm1691_vm4, %v1762_v7, %v5107_v43  ;;  %v1765_v10 = vsel %vm1658_vm3, %v1733_v59, %v5033_v3  ;;  %v1766_v12 = vsel %vm1658_vm3, %v1734_v41, %v5037_v62  ;;  %v5117_v21 = vunpack.i.l.bf16 %v5116_v46  ;;  %v711_v3 = vld [vmem:[#allocation2 + $0xc1] sm:$0xff] }
 0x29e   : > { %v4958_v7 = vunpack.i.h.bf16 %v6411_v33  ;;  %v5048_v40 = vunpack.i.h.bf16 %v6610_v26 }
 0x29f   : > { %v1798_v43 = vsel %vm1691_vm4, %v1766_v12, %v5117_v21 }
 0x2a0   : > { %v5111_v0 = vpop.permute.xlu2 %5110 }
 0x2a4   : > { %2087 = vmatmul.f32.gmra.mxu1 %v1790_v51  ;;  %v1731_v51 = vsel %vm512_vm0, %v704_v5, %v4948_v37  ;;  %v5038_v37 = vunpack.i.h.bf16 %v6625_v20 }
 0x2a5   : > { %v1763_v29 = vsel %vm1658_vm3, %v1731_v51, %v5028_v16  ;;  %v5118_v51 = vunpack.i.h.bf16 %v5116_v46  ;;  %v712_v46 = vld [vmem:[#allocation2 + $0xc9] sm:$0xff] }
 0x2a6   : > { %v1795_v55 = vsel %vm1691_vm4, %v1763_v29, %v5108_v61  ;;  %v5121_v29 = vpop.permute.xlu0 %5120  ;;  %v2195_v61 = vpop.f32.mrf.mxu2 }
 0x2a7   : > { %v5123_v22 = vunpack.i.h.bf16 %v5121_v29 }
 0x2a8   : > { %v5126_v60 = vpop.permute.xlu2 %5125 }
 0x2a9   : > { %v5127_v54 = vunpack.i.l.bf16 %v5126_v60  ;;  %v5128_v62 = vunpack.i.h.bf16 %v5126_v60 }
 0x2ac   : > { %2090 = vmatmul.f32.gmra.mxu1 %v1791_v32  ;;  %v5112_v32 = vunpack.i.l.bf16 %v5111_v0 }
 0x2ae   : > { %v1796_v18 = vsel %vm1691_vm4, %v1764_v8, %v5112_v32  ;;  %v6756_v35 = vpop.f32.mrf.mxu2  ;;  %v1801_v32 = vsel %vm1691_vm4, %v6531_v13, %v5123_v22  ;;  %v5047_v8 = vunpack.i.l.bf16 %v6610_v26  ;;  %v4968_v13 = vunpack.i.h.bf16 %v6344_v11 }
 0x2af   : > { %v5052_v26 = vunpack.i.l.bf16 %v6642_v57 }
 0x2b0   : > { %v1739_v12 = vsel %vm512_vm0, %v712_v46, %v4968_v13 }
 0x2b1   : > { %v6695_v38 = vpop.f32.mrf.mxu1  ;;  %v1771_v21 = vsel %vm1658_vm3, %v1739_v12, %v5048_v40 }
 0x2b4   : > { %2093 = vmatmul.f32.gmra.mxu1 %v1792_v50  ;;  %v5113_v50 = vunpack.i.h.bf16 %v5111_v0  ;;  %v1969_v0 = vpop.f32.mrf.mxu0 }
 0x2b9   : > { %v6704_v24 = vpop.f32.mrf.mxu1 }
 0x2bc   : > { %2096 = vmatmul.f32.gmra.mxu1 %v1793_v49  ;;  %v1797_v49 = vsel %vm1691_vm4, %v1765_v10, %v5113_v50  ;;  %v1738_v50 = vsel %vm512_vm0, %v711_v3, %v4967_v19  ;;  %v6767_v10 = vpop.f32.mrf.mxu2  ;;  %v4973_v3 = vunpack.i.h.bf16 %v6443_v2 }
 0x2bd   : > { %v1770_v42 = vsel %vm1658_vm3, %v1738_v50, %v5047_v8 }
 0x2be   : > { %v1802_v59 = vsel %vm1691_vm4, %v1770_v42, %v5127_v54  ;;  %v6790_v54 = vld [vmem:[%s8046_s2] ss:$0 sm:$0xff]  ;;  %v5053_v42 = vunpack.i.h.bf16 %v6642_v57  ;;  %v1741_v13 = vsel %vm512_vm0, %v6485_v25, %v4973_v3 }
 0x2c1   : > { %v6711_v1 = vpop.f32.mrf.mxu1 }
 0x2c4   : > { %2099 = vmatmul.f32.gmra.mxu1 %v1794_v53  ;;  %v1735_v53 = vsel %vm512_vm0, %v6458_v48, %v4958_v7  ;;  %v2705_v7 = vld [vmem:[#allocation2 + $0x2] sm:$0xff] }
 0x2c5   : > { %v1767_v5 = vsel %vm1658_vm3, %v1735_v53, %v5038_v37  ;;  %v2673_v37 = vld [vmem:[#allocation2 + $0x1] sm:$0xff]  ;;  %v4972_v53 = vunpack.i.l.bf16 %v6443_v2  ;;  %v1773_v2 = vsel %vm1658_vm3, %v1741_v13, %v5053_v42 }
 0x2c6   : > { %v1799_v56 = vsel %vm1691_vm4, %v1767_v5, %v5118_v51  ;;  %v1803_v5 = vsel %vm1691_vm4, %v1771_v21, %v5128_v62  ;;  %v2674_v51 = vld [vmem:[#allocation2 + $0x9] sm:$0xff] }
 0x2c9   : > { %v6717_v4 = vpop.f32.mrf.mxu1 }
 0x2cc   : > { %2102 = vmatmul.f32.gmra.mxu1 %v1795_v55  ;;  %v5122_v55 = vunpack.i.l.bf16 %v5121_v29  ;;  %v5131_v29 = vpop.permute.xlu1 %5130 }
 0x2cd   : > { %v5133_v46 = vunpack.i.h.bf16 %v5131_v29 }
 0x2ce   : > { %v1800_v20 = vsel %vm1691_vm4, %v6528_v28, %v5122_v55  ;;  %v6782_v55 = vpop.f32.mrf.mxu2 }
 0x2d1   : > { %v6722_v45 = vpop.f32.mrf.mxu1 }
 0x2d4   : > { %2105 = vmatmul.f32.gmra.mxu1 %v1796_v18  ;;  %v1972_v18 = vpop.f32.mrf.mxu0 }
 0x2d6   : > { %v6805_v62 = vpop.f32.mrf.mxu2 }
 0x2d9   : > { %v6729_v36 = vpop.f32.mrf.mxu1 }
 0x2dc   : > { %2108 = vmatmul.f32.gmra.mxu1 %v1797_v49  ;;  %v6771_v49 = vpop.f32.mrf.mxu0 }
 0x2e1   : > { %v6739_v47 = vpop.f32.mrf.mxu1 }
 0x2e4   : > { %2111 = vmatmul.f32.gmra.mxu1 %v1798_v43  ;;  %v2706_v43 = vld [vmem:[#allocation2 + $0xa] sm:$0xff]  ;;  %v1978_v60 = vpop.f32.mrf.mxu0 }
 0x2e5   : > { %v5174_v11 = vpack.i.bf16 %v2706_v43, %v2705_v7  ;;  %v1805_v7 = vsel %vm1691_vm4, %v1773_v2, %v5133_v46  ;;  %v6811_v43 = vld [vmem:[%s8048_s4 + $0x118] sm:$0xff] }
 0x2e6   : > { %4259 = vmatpush.msrb.mxu0 %v6811_v43 }
 0x2e7   : > { %5175 = vrot.lane.b32.xlu1 %v5174_v11, %s5644_s17 }
 0x2e9   : > { %v6747_v16 = vpop.f32.mrf.mxu1 }
 0x2ec   : > { %2114 = vmatmul.f32.gmra.mxu1 %v1799_v56  ;;  %v5169_v56 = vpack.i.bf16 %v2674_v51, %v2673_v37  ;;  %v1981_v21 = vpop.f32.mrf.mxu0  ;;  %v6825_v51 = vld [vmem:[%s8048_s4 + $0x108] sm:$0xff] }
 0x2ee   : > { %5170 = vrot.lane.b32.xlu2 %v5169_v56, %s5642_s30 }
 0x2f1   : > { %v6750_v33 = vpop.f32.mrf.mxu1 }
 0x2f4   : > { %2117 = vmatmul.f32.gmra.mxu1 %v1800_v20  ;;  %v1740_v20 = vsel %vm512_vm0, %v6483_v23, %v4972_v53  ;;  %v6798_v23 = vld [vmem:[%s8047_s3] ss:$0 sm:$0xff]  ;;  %v6818_v53 = vld [vmem:[%s8048_s4 + $0x110] sm:$0xff]  ;;  %v6843_v42 = vpop.f32.mrf.mxu0 }
 0x2f5   : > { %v1772_v22 = vsel %vm1658_vm3, %v1740_v20, %v5052_v26  ;;  %4260 = vmatpush.msrb.mxu0 %v6818_v53  ;;  %v6834_v20 = vld [vmem:[%s8048_s4 + $0x100] sm:$0xff] }
 0x2f7   : > { %4261 = vmatpush.msrb.mxu0 %v6825_v51 }
 0x2f9   : > { %v6754_v48 = vpop.f32.mrf.mxu1  ;;  %4262 = vmatpush.msrb.mxu0 %v6834_v20 }
 0x2fc   : > { %2120 = vmatmul.f32.gmra.mxu1 %v1801_v32  ;;  %v5132_v32 = vunpack.i.l.bf16 %v5131_v29 }
 0x2fe   : > { %v1804_v50 = vsel %vm1691_vm4, %v1772_v22, %v5132_v32 }
 0x301   : > { %v6762_v28 = vpop.f32.mrf.mxu1 }
 0x304   : > { %2123 = vmatmul.f32.gmra.mxu1 %v1802_v59 }
 0x309   : > { %v6773_v41 = vpop.f32.mrf.mxu1 }
 0x30c   : > { %2126 = vmatmul.f32.gmra.mxu1 %v1803_v5 }
 0x311   : > { %v2082_v19 = vpop.f32.mrf.mxu1 }
 0x312   : > { %v2083_v8 = vadd.f32 %v2082_v19, %v1969_v0  ;;  %v6838_v19 = vpop.f32.mrf.mxu2 }
 0x314   : > { %v2196_v59 = vadd.f32 %v2195_v61, %v2083_v8  ;;  %2129 = vmatmul.f32.gmra.mxu1 %v1804_v50 }
 0x316   : > { %v2295_v0 = vmul.f32 %v6790_v54, %v2196_v59 }
 0x318   : > { %v2331_v40 = vadd.f32 %v6798_v23, %v2295_v0 }
 0x319   : > { %v2085_v57 = vpop.f32.mrf.mxu1 }
 0x31a   : > { %v2363_v61 = vmul.f32 0.1, %v2331_v40  ;;  %v2086_v12 = vadd.f32 %v2085_v57, %v1972_v18  ;;  %v5136_v18 = vpop.permute.xlu0 %5135 }
 0x31b   : > { %v5137_v56 = vunpack.i.l.bf16 %v5136_v18  ;;  %v5138_v2 = vunpack.i.h.bf16 %v5136_v18 }
 0x31c   : > { %v2395_v37 = vmax.f32 %v2331_v40, %v2363_v61  ;;  %v2199_v25 = vadd.f32 %v6756_v35, %v2086_v12  ;;  %2132 = vmatmul.f32.gmra.mxu1 %v1805_v7  ;;  %v6854_v7 = vpop.f32.mrf.mxu2 }
 0x31d   : > { %v1806_v8 = vsel %vm1691_vm4, %v6552_v14, %v5137_v56  ;;  %v1807_v57 = vsel %vm1691_vm4, %v6555_v9, %v5138_v2 }
 0x31e   : > { %v2459_v5 = vrot.slane %v2395_v37, 7  ;;  %v2296_v11 = vmul.f32 %v6790_v54, %v2199_v25  ;;  %v5141_v37 = vpop.permute.xlu2 %5140  ;;  %v8066_v25 = vld [vmem:[#allocation3_spill] sm:$0xff] }
 0x320   : > { %v2555_v35 = vsel %vm383_vm2, 0.0, %v2459_v5  ;;  %v2332_v26 = vadd.f32 %v6798_v23, %v2296_v11 }
 0x321   : > { %2590 = vst.msk [vmem:[#allocation2 + $0x18] sm:$0xff] %vm512_vm0, %v2555_v35  ;;  %v2088_v29 = vpop.f32.mrf.mxu1  ;;  %v5062_v35 = vunpack.i.l.bf16 %v6630_v63 }
 0x322   : > { %v2364_v22 = vmul.f32 0.1, %v2332_v26  ;;  %v2089_v32 = vadd.f32 %v2088_v29, %v6771_v49  ;;  %v717_v29 = vld [vmem:[#allocation2 + $0x109] sm:$0xff] }
 0x324   : > { %v2396_v3 = vmax.f32 %v2332_v26, %v2364_v22  ;;  %v2202_v50 = vadd.f32 %v6767_v10, %v2089_v32  ;;  %2135 = vmatmul.f32.gmra.mxu1 %v1806_v8  ;;  %v6859_v26 = vpop.f32.mrf.mxu0 }
 0x326   : > { %v2460_v59 = vrot.slane %v2396_v3, 7  ;;  %v2297_v0 = vmul.f32 %v6790_v54, %v2202_v50 }
 0x328   : > { %v2461_v13 = vsel %vm383_vm2, %v2459_v5, %v2460_v59  ;;  %v2571_v49 = vsel %vm383_vm2, %v2460_v59, 0.0  ;;  %v2333_v40 = vadd.f32 %v6798_v23, %v2297_v0  ;;  %v4982_v5 = vunpack.i.l.bf16 %v8066_v25 }
 0x329   : > { %2592 = vst.msk [vmem:[#allocation2 + $0x28] sm:$0x3] %vm515_vm1, %v2571_v49  ;;  %v2091_v46 = vpop.f32.mrf.mxu1  ;;  %v3920_v49 = vld [vmem:[%s8048_s4 + $0xf8] sm:$0xff] }
 0x32a   : > { %2591 = vst.msk [vmem:[#allocation2 + $0x20] sm:$0xff] %vm512_vm0, %v2461_v13  ;;  %v2365_v14 = vmul.f32 0.1, %v2333_v40  ;;  %v2092_v10 = vadd.f32 %v2091_v46, %v1978_v60  ;;  %v5142_v60 = vunpack.i.l.bf16 %v5141_v37  ;;  %v1744_v13 = vsel %vm512_vm0, %v717_v29, %v4982_v5  ;;  %4134 = vmatpush.msrb.mxu2 %v3920_v49  ;;  %v2737_v29 = vld [vmem:[#allocation2 + $0x18] sm:$0xff] }
 0x32b   : > { %v1776_v2 = vsel %vm1658_vm3, %v1744_v13, %v5062_v35  ;;  %v5063_v5 = vunpack.i.h.bf16 %v6630_v63 }
 0x32c   : > { %v2397_v61 = vmax.f32 %v2333_v40, %v2365_v14  ;;  %v2205_v12 = vadd.f32 %v6782_v55, %v2092_v10  ;;  %2138 = vmatmul.f32.gmra.mxu1 %v1807_v57  ;;  %v4983_v10 = vunpack.i.h.bf16 %v8066_v25 }
 0x32e   : > { %v2462_v18 = vrot.slane %v2397_v61, 7  ;;  %v2298_v11 = vmul.f32 %v6790_v54, %v2205_v12  ;;  %v6876_v12 = vpop.f32.mrf.mxu2 }
 0x330   : > { %v2556_v56 = vsel %vm383_vm2, 0.0, %v2462_v18  ;;  %v2334_v9 = vadd.f32 %v6798_v23, %v2298_v11 }
 0x331   : > { %2593 = vst.msk [vmem:[#allocation2 + $0x30] sm:$0xff] %vm512_vm0, %v2556_v56  ;;  %v2094_v55 = vpop.f32.mrf.mxu1  ;;  %v2801_v22 = vld [vmem:[#allocation2 + $0x1a] sm:$0xff]  ;;  %v2802_v32 = vld [vmem:[#allocation2 + $0x22] sm:$0xff] }
 0x332   : > { %v2675_v8 = vld [vmem:[#allocation2 + $0x19] sm:$0xff]  ;;  %v2366_v3 = vmul.f32 0.1, %v2334_v9  ;;  %v2095_v50 = vadd.f32 %v2094_v55, %v1981_v21  ;;  %v5194_v59 = vpack.i.bf16 %v2802_v32, %v2801_v22  ;;  %v2676_v0 = vld [vmem:[#allocation2 + $0x21] sm:$0xff]  ;;  %v1808_v21 = vsel %vm1691_vm4, %v1776_v2, %v5142_v60  ;;  %v718_v55 = vld [vmem:[#allocation2 + $0x111] sm:$0xff]  ;;  %v5146_v2 = vpop.permute.xlu1 %5145 }
 0x333   : > { %v5179_v40 = vpack.i.bf16 %v2676_v0, %v2675_v8  ;;  %v2738_v11 = vld [vmem:[#allocation2 + $0x20] sm:$0xff] }
 0x334   : > { %v2398_v46 = vmax.f32 %v2334_v9, %v2366_v3  ;;  %v2208_v14 = vadd.f32 %v6805_v62, %v2095_v50  ;;  %5195 = vrot.lane.b32.xlu2 %v5194_v59, %s5642_s30  ;;  %5185 = vrot.lane.b32.xlu0 %v5194_v59, %s5644_s17  ;;  %v5143_v62 = vunpack.i.h.bf16 %v5141_v37  ;;  %v6882_v9 = vpop.f32.mrf.mxu0  ;;  %v5189_v32 = vpack.i.bf16 %v2738_v11, %v2737_v29  ;;  %v8067_v3 = vld [vmem:[#allocation5_spill] sm:$0xff] }
 0x335   : > { %5180 = vrot.lane.b32.xlu1 %v5179_v40, %s5642_s30  ;;  %2141 = vmatmul.f32.gmra.mxu1 %v1808_v21  ;;  %v1745_v37 = vsel %vm512_vm0, %v718_v55, %v4983_v10  ;;  %v4987_v50 = vunpack.i.l.bf16 %v8067_v3  ;;  %v8068_v21 = vld [vmem:[#allocation6_spill] sm:$0xff] }
 0x336   : > { %v2463_v57 = vrot.slane %v2398_v46, 7  ;;  %v2299_v61 = vmul.f32 %v6790_v54, %v2208_v14  ;;  %v1777_v8 = vsel %vm1658_vm3, %v1745_v37, %v5063_v5  ;;  %v3918_v55 = vld [vmem:[%s8048_s4 + $0xe8] sm:$0xff] }
 0x337   : > { %v1809_v13 = vsel %vm1691_vm4, %v1777_v8, %v5143_v62  ;;  %v1746_v10 = vsel %vm512_vm0, %v8068_v21, %v4987_v50  ;;  %v5068_v8 = vunpack.i.h.bf16 %v6656_v52 }
 0x338   : > { %v2464_v35 = vsel %vm383_vm2, %v2462_v18, %v2463_v57  ;;  %v2572_v56 = vsel %vm383_vm2, %v2463_v57, 0.0  ;;  %v2335_v60 = vadd.f32 %v6798_v23, %v2299_v61  ;;  %v3919_v18 = vld [vmem:[%s8048_s4 + $0xf0] sm:$0xff]  ;;  %v6902_v57 = vpop.f32.mrf.mxu2 }
 0x339   : > { %2595 = vst.msk [vmem:[#allocation2 + $0x40] sm:$0x3] %vm515_vm1, %v2572_v56  ;;  %v2097_v25 = vpop.f32.mrf.mxu1  ;;  %4135 = vmatpush.msrb.mxu2 %v3919_v18 }
 0x33a   : > { %2594 = vst.msk [vmem:[#allocation2 + $0x38] sm:$0xff] %vm512_vm0, %v2464_v35  ;;  %v2367_v22 = vmul.f32 0.1, %v2335_v60  ;;  %v2098_v63 = vadd.f32 %v2097_v25, %v6843_v42  ;;  %v5067_v42 = vunpack.i.l.bf16 %v6656_v52  ;;  %v5147_v35 = vunpack.i.l.bf16 %v5146_v2 }
 0x33b   : > { %4136 = vmatpush.msrb.mxu2 %v3918_v55 }
 0x33c   : > { %v2399_v59 = vmax.f32 %v2335_v60, %v2367_v22  ;;  %v2211_v0 = vadd.f32 %v6838_v19, %v2098_v63  ;;  %5190 = vrot.lane.b32.xlu0 %v5189_v32, %s5643_s16  ;;  %v1778_v62 = vsel %vm1658_vm3, %v1746_v10, %v5067_v42  ;;  %v1993_v22 = vpop.f32.mrf.mxu0  ;;  %v4988_v32 = vunpack.i.h.bf16 %v8067_v3  ;;  %v8069_v42 = vld [vmem:[#allocation7_spill] sm:$0xff] }
 0x33d   : > { %2144 = vmatmul.f32.gmra.mxu1 %v1809_v13  ;;  %v4992_v10 = vunpack.i.l.bf16 %v6565_v17 }
 0x33e   : > { %v2465_v49 = vrot.slane %v2399_v59, 7  ;;  %v2300_v40 = vmul.f32 %v6790_v54, %v2211_v0 }
 0x340   : > { %v2557_v46 = vsel %vm383_vm2, 0.0, %v2465_v49  ;;  %v2336_v14 = vadd.f32 %v6798_v23, %v2300_v40  ;;  %v1747_v40 = vsel %vm512_vm0, %v8069_v42, %v4988_v32 }
 0x341   : > { %2596 = vst.msk [vmem:[#allocation2 + $0x48] sm:$0xff] %vm512_vm0, %v2557_v46  ;;  %v2100_v19 = vpop.f32.mrf.mxu1  ;;  %v2897_v61 = vld [vmem:[#allocation2 + $0x32] sm:$0xff]  ;;  %v2710_v5 = vld [vmem:[#allocation2 + $0x3a] sm:$0xff]  ;;  %v5148_v46 = vunpack.i.h.bf16 %v5146_v2  ;;  %v1779_v21 = vsel %vm1658_vm3, %v1747_v40, %v5068_v8 }
 0x342   : > { %v2677_v11 = vld [vmem:[#allocation2 + $0x31] sm:$0xff]  ;;  %v2368_v56 = vmul.f32 0.1, %v2336_v14  ;;  %v2101_v60 = vadd.f32 %v2100_v19, %v6859_v26  ;;  %4616 = vmatmul.msk.f32.vlgmr.msrb.gmra.mxu0 %vm512_vm0, %v2897_v61  ;;  %v5204_v25 = vpack.i.bf16 %v2710_v5, %v2897_v61  ;;  %v2678_v29 = vld [vmem:[#allocation2 + $0x39] sm:$0xff]  ;;  %v1810_v26 = vsel %vm1691_vm4, %v1778_v62, %v5147_v35  ;;  %v6939_v62 = vpop.f32.mrf.mxu2 }
 0x343   : > { %v6911_v63 = vpack.i.bf16 %v2678_v29, %v2677_v11  ;;  %v2740_v0 = vld [vmem:[#allocation2 + $0x38] sm:$0xff]  ;;  %v3917_v11 = vld [vmem:[%s8048_s4 + $0xe0] sm:$0xff] }
 0x344   : > { %v2400_v37 = vmax.f32 %v2336_v14, %v2368_v56  ;;  %v2214_v18 = vadd.f32 %v6854_v7, %v2101_v60  ;;  %5205 = vrot.lane.b32.xlu2 %v5204_v25, %s5644_s17  ;;  %5215 = vrot.lane.b32.xlu1 %v5204_v25, %s5642_s30  ;;  %v2739_v14 = vld [vmem:[#allocation2 + $0x30] sm:$0xff]  ;;  %v3904_v2 = vld [vmem:[%s8048_s4 + $0x78] sm:$0xff]  ;;  %v6945_v25 = vpop.permute.xlu0 %5150 }
 0x345   : > { %5200 = vrot.lane.b32.xlu0 %v6911_v63, %s5642_s30  ;;  %2147 = vmatmul.f32.gmra.mxu1 %v1810_v26  ;;  %v5209_v61 = vpack.i.bf16 %v2740_v0, %v2739_v14  ;;  %v721_v60 = vld [vmem:[#allocation2 + $0x139] sm:$0xff]  ;;  %v5152_v8 = vunpack.i.l.bf16 %v6945_v25  ;;  %v3903_v14 = vld [vmem:[%s8048_s4 + $0x70] sm:$0xff] }
 0x346   : > { %v2466_v50 = vrot.slane %v2400_v37, 7  ;;  %v2301_v59 = vmul.f32 %v6790_v54, %v2214_v18  ;;  %4021 = vmatpush.msrb.mxu3 %v3904_v2  ;;  %4137 = vmatpush.msrb.mxu2 %v3917_v11  ;;  %v1748_v32 = vsel %vm512_vm0, %v721_v60, %v4992_v10  ;;  %v5072_v37 = vunpack.i.l.bf16 %v6558_v6 }
 0x348   : > { %v2467_v3 = vsel %vm383_vm2, %v2465_v49, %v2466_v50  ;;  %v2573_v7 = vsel %vm383_vm2, %v2466_v50, 0.0  ;;  %v2337_v13 = vadd.f32 %v6798_v23, %v2301_v59  ;;  %v2835_v26 = vld [vmem:[#allocation2 + $0x48] sm:$0xff]  ;;  %v4993_v50 = vunpack.i.h.bf16 %v6565_v17  ;;  %4022 = vmatpush.msrb.mxu3 %v3903_v14  ;;  %v3916_v17 = vld [vmem:[%s8048_s4 + $0xd8] sm:$0xff] }
 0x349   : > { %2598 = vst.msk [vmem:[#allocation2 + $0x58] sm:$0x3] %vm515_vm1, %v2573_v7  ;;  %v2103_v52 = vpop.f32.mrf.mxu1  ;;  %4138 = vmatpush.msrb.mxu2 %v3916_v17 }
 0x34a   : > { %2597 = vst.msk [vmem:[#allocation2 + $0x50] sm:$0xff] %vm512_vm0, %v2467_v3  ;;  %v2369_v19 = vmul.f32 0.1, %v2337_v13  ;;  %v2104_v49 = vadd.f32 %v2103_v52, %v6882_v9  ;;  %4617 = vmatmul.msk.f32.gmra.mxu0 %vm512_vm0, %v2710_v5  ;;  %v1811_v9 = vsel %vm1691_vm4, %v1779_v21, %v5148_v46  ;;  %v1996_v5 = vpop.f32.mrf.mxu0 }
 0x34c   : > { %v2401_v35 = vmax.f32 %v2337_v13, %v2369_v19  ;;  %v2217_v56 = vadd.f32 %v6876_v12, %v2104_v49  ;;  %5210 = vrot.lane.b32.xlu2 %v5209_v61, %s5643_s16  ;;  %v1780_v13 = vsel %vm1658_vm3, %v1748_v32, %v5072_v37  ;;  %v2225_v19 = vpop.f32.mrf.mxu2  ;;  %v722_v49 = vld [vmem:[#allocation2 + $0x141] sm:$0xff] }
 0x34d   : > { %5220 = vrot.lane.b32.xlu0 %v5209_v61, %s5644_s17  ;;  %2150 = vmatmul.f32.gmra.mxu1 %v1811_v9  ;;  %v1749_v11 = vsel %vm512_vm0, %v722_v49, %v4993_v50  ;;  %v723_v49 = vld [vmem:[#allocation2 + $0x151] sm:$0xff] }
 0x34e   : > { %v2468_v29 = vrot.slane %v2401_v35, 7  ;;  %v2302_v55 = vmul.f32 %v6790_v54, %v2217_v56 }
 0x350   : > { %v2558_v12 = vsel %vm383_vm2, 0.0, %v2468_v29  ;;  %v2338_v18 = vadd.f32 %v6798_v23, %v2302_v55 }
 0x351   : > { %2599 = vst.msk [vmem:[#allocation2 + $0x60] sm:$0xff] %vm512_vm0, %v2558_v12  ;;  %v2106_v59 = vpop.f32.mrf.mxu1  ;;  %v2899_v0 = vld [vmem:[#allocation2 + $0x4a] sm:$0xff]  ;;  %v2712_v7 = vld [vmem:[#allocation2 + $0x52] sm:$0xff]  ;;  %v5153_v12 = vunpack.i.h.bf16 %v6945_v25 }
 0x352   : > { %v2836_v3 = vld [vmem:[#allocation2 + $0x50] sm:$0xff]  ;;  %v2370_v42 = vmul.f32 0.1, %v2338_v18  ;;  %v2107_v40 = vadd.f32 %v2106_v59, %v1993_v22  ;;  %4618 = vmatmul.msk.f32.gmra.mxu0 %vm512_vm0, %v2899_v0  ;;  %v6957_v52 = vpack.i.bf16 %v2712_v7, %v2899_v0  ;;  %v1812_v22 = vsel %vm1691_vm4, %v1780_v13, %v5152_v8  ;;  %v1999_v35 = vpop.f32.mrf.mxu0  ;;  %v6993_v59 = vpop.permute.xlu2 %5155  ;;  %v8070_v0 = vld [vmem:[#allocation4_spill] sm:$0xff] }
 0x353   : > { %v5249_v46 = vpack.i.bf16 %v2836_v3, %v2835_v26  ;;  %v2680_v56 = vld [vmem:[#allocation2 + $0x51] sm:$0xff]  ;;  %v4997_v3 = vunpack.i.l.bf16 %v8070_v0 }
 0x354   : > { %v2402_v21 = vmax.f32 %v2338_v18, %v2370_v42  ;;  %v2220_v10 = vadd.f32 %v6902_v57, %v2107_v40  ;;  %5225 = vrot.lane.b32.xlu2 %v6911_v63, %s5643_s16  ;;  %5235 = vrot.lane.b32.xlu1 %v6957_v52, %s5644_s17  ;;  %v5073_v57 = vunpack.i.h.bf16 %v6558_v6  ;;  %v2679_v63 = vld [vmem:[#allocation2 + $0x49] sm:$0xff]  ;;  %v6997_v42 = vpop.f32.mrf.mxu2  ;;  %v5077_v40 = vunpack.i.l.bf16 %v6651_v58 }
 0x355   : > { %5250 = vrot.lane.b32.xlu0 %v5249_v46, %s5644_s17  ;;  %2153 = vmatmul.f32.gmra.mxu1 %v1812_v22  ;;  %v5229_v26 = vpack.i.bf16 %v2680_v56, %v2679_v63  ;;  %v3915_v8 = vld [vmem:[%s8048_s4 + $0xd0] sm:$0xff]  ;;  %v3901_v63 = vld [vmem:[%s8048_s4 + $0x60] sm:$0xff] }
 0x356   : > { %v2469_v61 = vrot.slane %v2402_v21, 7  ;;  %v2303_v2 = vmul.f32 %v6790_v54, %v2220_v10  ;;  %v1781_v37 = vsel %vm1658_vm3, %v1749_v11, %v5073_v57  ;;  %4139 = vmatpush.msrb.mxu2 %v3915_v8  ;;  %v1750_v57 = vsel %vm512_vm0, %v723_v49, %v4997_v3 }
 0x357   : > { %v1782_v56 = vsel %vm1658_vm3, %v1750_v57, %v5077_v40  ;;  %v5158_v8 = vunpack.i.h.bf16 %v6993_v59  ;;  %v724_v40 = vld [vmem:[#allocation2 + $0x159] sm:$0xff] }
 0x358   : > { %v2470_v9 = vsel %vm383_vm2, %v2468_v29, %v2469_v61  ;;  %v2574_v60 = vsel %vm383_vm2, %v2469_v61, 0.0  ;;  %v2339_v55 = vadd.f32 %v6798_v23, %v2303_v2  ;;  %v3902_v29 = vld [vmem:[%s8048_s4 + $0x68] sm:$0xff] }
 0x359   : > { %2601 = vst.msk [vmem:[#allocation2 + $0x70] sm:$0x3] %vm515_vm1, %v2574_v60  ;;  %v2109_v32 = vpop.f32.mrf.mxu1  ;;  %4023 = vmatpush.msrb.mxu3 %v3902_v29  ;;  %v856_v60 = vld [vmem:[#allocation2 + $0x19a] sm:$0xff] }
 0x35a   : > { %2600 = vst.msk [vmem:[#allocation2 + $0x68] sm:$0xff] %vm512_vm0, %v2470_v9  ;;  %v2371_v18 = vmul.f32 0.1, %v2339_v55  ;;  %v2110_v6 = vadd.f32 %v2109_v32, %v1996_v5  ;;  %4619 = vmatmul.msk.f32.gmra.mxu0 %vm512_vm0, %v2712_v7  ;;  %v1813_v5 = vsel %vm1691_vm4, %v1781_v37, %v5153_v12  ;;  %v2002_v17 = vpop.f32.mrf.mxu0  ;;  %v3900_v9 = vld [vmem:[%s8048_s4 + $0x58] sm:$0xff]  ;;  %v8071_v12 = vmov 0.0   ;;  %4614 = vmatmul.msk.f32.gmra.mxu3 %vm512_vm0, %v856_v60  ;;  %v5161_v60 = vpop.permute.xlu1 %5160 }
 0x35b   : > { %4024 = vmatpush.msrb.mxu3 %v3901_v63  ;;  %2638 = vst.msk [vmem:[#allocation2 + $0x198] sm:$0xff] %vm512_vm0, %v8071_v12 }
 0x35c   : > { %v2403_v50 = vmax.f32 %v2339_v55, %v2371_v18  ;;  %v2223_v25 = vadd.f32 %v6939_v62, %v2110_v6  ;;  %5230 = vrot.lane.b32.xlu2 %v5229_v26, %s5642_s30  ;;  %5240 = vrot.lane.b32.xlu1 %v5249_v46, %s5643_s16  ;;  %v5157_v62 = vunpack.i.l.bf16 %v6993_v59  ;;  %v4998_v18 = vunpack.i.h.bf16 %v8070_v0  ;;  %v2231_v3 = vpop.f32.mrf.mxu2  ;;  %v2743_v59 = vld [vmem:[#allocation2 + $0x60] sm:$0xff] }
 0x35d   : > { %2156 = vmatmul.f32.gmra.mxu1 %v1813_v5  ;;  %4025 = vmatpush.msrb.mxu3 %v3900_v9 }
 0x35e   : > { %v2471_v7 = vrot.slane %v2403_v50, 7  ;;  %v2304_v13 = vmul.f32 %v6790_v54, %v2223_v25  ;;  %v1814_v37 = vsel %vm1691_vm4, %v1782_v56, %v5157_v62  ;;  %v5082_v56 = vunpack.i.l.bf16 %v6667_v15 }
 0x360   : > { %v2559_v14 = vsel %vm383_vm2, 0.0, %v2471_v7  ;;  %v2340_v46 = vadd.f32 %v6798_v23, %v2304_v13 }
 0x361   : > { %2602 = vst.msk [vmem:[#allocation2 + $0x78] sm:$0xff] %vm512_vm0, %v2559_v14  ;;  %v2112_v21 = vpop.f32.mrf.mxu1  ;;  %v2901_v10 = vld [vmem:[#allocation2 + $0x62] sm:$0xff]  ;;  %v2714_v22 = vld [vmem:[#allocation2 + $0x6a] sm:$0xff] }
 0x362   : > { %v2372_v61 = vmul.f32 0.1, %v2340_v46  ;;  %v2113_v2 = vadd.f32 %v2112_v21, %v1999_v35  ;;  %4620 = vmatmul.msk.f32.gmra.mxu0 %vm512_vm0, %v2901_v10  ;;  %v7005_v11 = vpack.i.bf16 %v2714_v22, %v2901_v10  ;;  %v3914_v35 = vld [vmem:[%s8048_s4 + $0xc8] sm:$0xff]  ;;  %v8072_v10 = vld [vmem:[#allocation8_spill] sm:$0xff] }
 0x363   : > { %4140 = vmatpush.msrb.mxu2 %v3914_v35  ;;  %v2744_v0 = vld [vmem:[#allocation2 + $0x68] sm:$0xff]  ;;  %v5002_v49 = vunpack.i.l.bf16 %v8072_v10 }
 0x364   : > { %v2404_v55 = vmax.f32 %v2340_v46, %v2372_v61  ;;  %v2226_v32 = vadd.f32 %v2225_v19, %v2113_v2  ;;  %5255 = vrot.lane.b32.xlu2 %v5229_v26, %s5643_s16  ;;  %5245 = vrot.lane.b32.xlu1 %v6957_v52, %s5642_s30  ;;  %v5078_v19 = vunpack.i.h.bf16 %v6651_v58  ;;  %v2869_v26 = vld [vmem:[#allocation2 + $0x61] sm:$0xff]  ;;  %v2870_v52 = vld [vmem:[#allocation2 + $0x69] sm:$0xff]  ;;  %v2005_v61 = vpop.f32.mrf.mxu0  ;;  %v5269_v2 = vpack.i.bf16 %v2744_v0, %v2743_v59 }
 0x365   : > { %5265 = vrot.lane.b32.xlu0 %v7005_v11, %s5644_s17  ;;  %2159 = vmatmul.f32.gmra.mxu1 %v1814_v37  ;;  %v5284_v14 = vpack.i.bf16 %v2870_v52, %v2869_v26  ;;  %v3899_v46 = vld [vmem:[%s8048_s4 + $0x50] sm:$0xff]  ;;  %v857_v21 = vld [vmem:[#allocation2 + $0x1a2] sm:$0xff]  ;;  %v5003_v0 = vunpack.i.h.bf16 %v8072_v10 }
 0x366   : > { %v2472_v6 = vrot.slane %v2404_v55, 7  ;;  %v2305_v29 = vmul.f32 %v6790_v54, %v2226_v32  ;;  %4026 = vmatpush.msrb.mxu3 %v3899_v46  ;;  %2639 = vst.msk [vmem:[#allocation2 + $0x1a0] sm:$0xff] %vm512_vm0, %v8071_v12  ;;  %v725_v55 = vld [vmem:[#allocation2 + $0x169] sm:$0xff] }
 0x367   : > { %2640 = vst.msk [vmem:[#allocation2 + $0x1a8] sm:$0x3] %vm515_vm1, %v8071_v12  ;;  %4615 = vmatmul.msk.f32.gmra.mxu3 %vm512_vm0, %v857_v21  ;;  %v1752_v37 = vsel %vm512_vm0, %v725_v55, %v5002_v49  ;;  %v3897_v55 = vld [vmem:[%s8048_s4 + $0x40] sm:$0xff] }
 0x368   : > { %v2473_v50 = vsel %vm383_vm2, %v2471_v7, %v2472_v6  ;;  %v2575_v25 = vsel %vm383_vm2, %v2472_v6, 0.0  ;;  %v2341_v5 = vadd.f32 %v6798_v23, %v2305_v29  ;;  %v1751_v7 = vsel %vm512_vm0, %v724_v40, %v4998_v18 }
 0x369   : > { %2604 = vst.msk [vmem:[#allocation2 + $0x88] sm:$0x3] %vm515_vm1, %v2575_v25  ;;  %v2115_v13 = vpop.f32.mrf.mxu1  ;;  %v1783_v57 = vsel %vm1658_vm3, %v1751_v7, %v5078_v19  ;;  %v1784_v29 = vsel %vm1658_vm3, %v1752_v37, %v5082_v56  ;;  %v5162_v19 = vunpack.i.l.bf16 %v5161_v60  ;;  %v2234_v25 = vpop.f32.mrf.mxu2 }
 0x36a   : > { %2603 = vst.msk [vmem:[#allocation2 + $0x80] sm:$0xff] %vm512_vm0, %v2473_v50  ;;  %v2373_v58 = vmul.f32 0.1, %v2341_v5  ;;  %v2116_v62 = vadd.f32 %v2115_v13, %v2002_v17  ;;  %4621 = vmatmul.msk.f32.gmra.mxu0 %vm512_vm0, %v2714_v22  ;;  %v1815_v63 = vsel %vm1691_vm4, %v1783_v57, %v5158_v8  ;;  %v3913_v50 = vld [vmem:[%s8048_s4 + $0xc0] sm:$0xff]  ;;  %v2839_v57 = vld [vmem:[#allocation2 + $0x78] sm:$0xff] }
 0x36b   : > { %4141 = vmatpush.msrb.mxu2 %v3913_v50 }
 0x36c   : > { %v2405_v17 = vmax.f32 %v2341_v5, %v2373_v58  ;;  %v2229_v22 = vadd.f32 %v6997_v42, %v2116_v62  ;;  %5285 = vrot.lane.b32.xlu2 %v5284_v14, %s5643_s16  ;;  %5260 = vrot.lane.b32.xlu1 %v5284_v14, %s5642_s30  ;;  %v3898_v5 = vld [vmem:[%s8048_s4 + $0x48] sm:$0xff]  ;;  %v1816_v58 = vsel %vm1691_vm4, %v1784_v29, %v5162_v19  ;;  %v5083_v62 = vunpack.i.h.bf16 %v6667_v15  ;;  %v2008_v14 = vpop.f32.mrf.mxu0 }
 0x36d   : > { %5270 = vrot.lane.b32.xlu0 %v5269_v2, %s5643_s16  ;;  %2162 = vmatmul.f32.gmra.mxu1 %v1815_v63 }
 0x36e   : > { %v2474_v9 = vrot.slane %v2405_v17, 7  ;;  %v2306_v35 = vmul.f32 %v6790_v54, %v2229_v22  ;;  %4027 = vmatpush.msrb.mxu3 %v3898_v5  ;;  %v5163_v22 = vunpack.i.h.bf16 %v5161_v60 }
 0x370   : > { %v2560_v42 = vsel %vm383_vm2, 0.0, %v2474_v9  ;;  %v2342_v32 = vadd.f32 %v6798_v23, %v2306_v35  ;;  %v3912_v35 = vld [vmem:[%s8048_s4 + $0xb8] sm:$0xff]  ;;  %4028 = vmatpush.msrb.mxu3 %v3897_v55 }
 0x371   : > { %2605 = vst.msk [vmem:[#allocation2 + $0x90] sm:$0xff] %vm512_vm0, %v2560_v42  ;;  %v2118_v12 = vpop.f32.mrf.mxu1  ;;  %v2903_v18 = vld [vmem:[#allocation2 + $0x7a] sm:$0xff]  ;;  %v2716_v6 = vld [vmem:[#allocation2 + $0x82] sm:$0xff]  ;;  %4142 = vmatpush.msrb.mxu2 %v3912_v35 }
 0x372   : > { %v2374_v26 = vmul.f32 0.1, %v2342_v32  ;;  %v2119_v52 = vadd.f32 %v2118_v12, %v2005_v61  ;;  %4622 = vmatmul.msk.f32.gmra.mxu0 %vm512_vm0, %v2903_v18  ;;  %v7061_v8 = vpack.i.bf16 %v2716_v6, %v2903_v18  ;;  %v2840_v46 = vld [vmem:[#allocation2 + $0x80] sm:$0xff]  ;;  %v2237_v12 = vpop.f32.mrf.mxu2  ;;  %v5166_v18 = vpop.permute.xlu0 %5165 }
 0x373   : > { %v2683_v49 = vld [vmem:[#allocation2 + $0x79] sm:$0xff]  ;;  %v2684_v61 = vld [vmem:[#allocation2 + $0x81] sm:$0xff] }
 0x374   : > { %v2406_v13 = vmax.f32 %v2342_v32, %v2374_v26  ;;  %v2232_v40 = vadd.f32 %v2231_v3, %v2119_v52  ;;  %5275 = vrot.lane.b32.xlu1 %v7005_v11, %s5642_s30  ;;  %5295 = vrot.lane.b32.xlu2 %v7061_v8, %s5644_s17  ;;  %v726_v3 = vld [vmem:[#allocation2 + $0x171] sm:$0xff]  ;;  %v5289_v42 = vpack.i.bf16 %v2684_v61, %v2683_v49  ;;  %v2011_v19 = vpop.f32.mrf.mxu0  ;;  %v5167_v26 = vunpack.i.l.bf16 %v5166_v18 }
 0x375   : > { %5280 = vrot.lane.b32.xlu0 %v5269_v2, %s5644_s17  ;;  %2165 = vmatmul.f32.gmra.mxu1 %v1816_v58  ;;  %v1753_v15 = vsel %vm512_vm0, %v726_v3, %v5003_v0  ;;  %v3895_v3 = vld [vmem:[%s8048_s4 + $0x30] sm:$0xff] }
 0x376   : > { %v2475_v59 = vrot.slane %v2406_v13, 7  ;;  %v2307_v7 = vmul.f32 %v6790_v54, %v2232_v40  ;;  %v1785_v17 = vsel %vm1658_vm3, %v1753_v15, %v5083_v62  ;;  %v3911_v62 = vld [vmem:[%s8048_s4 + $0xb0] sm:$0xff]  ;;  %v3894_v15 = vld [vmem:[%s8048_s4 + $0x28] sm:$0xff] }
 0x377   : > { %v1817_v37 = vsel %vm1691_vm4, %v1785_v17, %v5163_v22  ;;  %4143 = vmatpush.msrb.mxu2 %v3911_v62 }
 0x378   : > { %v2476_v21 = vsel %vm383_vm2, %v2474_v9, %v2475_v59  ;;  %v2576_v11 = vsel %vm383_vm2, %v2475_v59, 0.0  ;;  %v2343_v10 = vadd.f32 %v6798_v23, %v2307_v7  ;;  %v5304_v9 = vpack.i.bf16 %v2840_v46, %v2839_v57 }
 0x379   : > { %2607 = vst.msk [vmem:[#allocation2 + $0xa0] sm:$0x3] %vm515_vm1, %v2576_v11  ;;  %v2121_v2 = vpop.f32.mrf.mxu1  ;;  %v1818_v46 = vsel %vm1691_vm4, %v6601_v39, %v5167_v26  ;;  %v5168_v39 = vunpack.i.h.bf16 %v5166_v18 }
 0x37a   : > { %2606 = vst.msk [vmem:[#allocation2 + $0x98] sm:$0xff] %vm512_vm0, %v2476_v21  ;;  %v2375_v63 = vmul.f32 0.1, %v2343_v10  ;;  %v2122_v56 = vadd.f32 %v2121_v2, %v2008_v14  ;;  %4623 = vmatmul.msk.f32.gmra.mxu0 %vm512_vm0, %v2716_v6  ;;  %v3896_v14 = vld [vmem:[%s8048_s4 + $0x38] sm:$0xff] }
 0x37b   : > { %4029 = vmatpush.msrb.mxu3 %v3896_v14 }
 0x37c   : > { %v2407_v32 = vmax.f32 %v2343_v10, %v2375_v63  ;;  %v2235_v60 = vadd.f32 %v2234_v25, %v2122_v56  ;;  %5305 = vrot.lane.b32.xlu1 %v5304_v9, %s5644_s17  ;;  %5300 = vrot.lane.b32.xlu2 %v5304_v9, %s5643_s16  ;;  %v2014_v22 = vpop.f32.mrf.mxu0  ;;  %v2747_v9 = vld [vmem:[#allocation2 + $0x90] sm:$0xff] }
 0x37d   : > { %5290 = vrot.lane.b32.xlu0 %v5289_v42, %s5642_s30  ;;  %2168 = vmatmul.f32.gmra.mxu1 %v1817_v37 }
 0x37e   : > { %v2477_v6 = vrot.slane %v2407_v32, 7  ;;  %v2308_v29 = vmul.f32 %v6790_v54, %v2235_v60  ;;  %4030 = vmatpush.msrb.mxu3 %v3895_v3  ;;  %v3910_v32 = vld [vmem:[%s8048_s4 + $0xa8] sm:$0xff]  ;;  %v3893_v60 = vld [vmem:[%s8048_s4 + $0x20] sm:$0xff] }
 0x37f   : > { %4144 = vmatpush.msrb.mxu2 %v3910_v32 }
 0x380   : > { %v2561_v52 = vsel %vm383_vm2, 0.0, %v2477_v6  ;;  %v2344_v50 = vadd.f32 %v6798_v23, %v2308_v29  ;;  %4031 = vmatpush.msrb.mxu3 %v3894_v15  ;;  %v3892_v29 = vld [vmem:[%s8048_s4 + $0x18] sm:$0xff] }
 0x381   : > { %2608 = vst.msk [vmem:[#allocation2 + $0xa8] sm:$0xff] %vm512_vm0, %v2561_v52  ;;  %v2124_v25 = vpop.f32.mrf.mxu1  ;;  %v2905_v5 = vld [vmem:[#allocation2 + $0x92] sm:$0xff]  ;;  %v2718_v0 = vld [vmem:[#allocation2 + $0x9a] sm:$0xff] }
 0x382   : > { %v2376_v13 = vmul.f32 0.1, %v2344_v50  ;;  %v2125_v40 = vadd.f32 %v2124_v25, %v2011_v19  ;;  %4624 = vmatmul.msk.f32.gmra.mxu0 %vm512_vm0, %v2905_v5  ;;  %v7101_v58 = vpack.i.bf16 %v2718_v0, %v2905_v5  ;;  %v2873_v10 = vld [vmem:[#allocation2 + $0x91] sm:$0xff]  ;;  %v2874_v49 = vld [vmem:[#allocation2 + $0x99] sm:$0xff]  ;;  %4032 = vmatpush.msrb.mxu3 %v3893_v60 }
 0x383   : > { %v2748_v61 = vld [vmem:[#allocation2 + $0x98] sm:$0xff]  ;;  %v5339_v56 = vpack.i.bf16 %v2874_v49, %v2873_v10  ;;  %v3891_v52 = vld [vmem:[%s8048_s4 + $0x10] sm:$0xff] }
 0x384   : > { %v2408_v59 = vmax.f32 %v2344_v50, %v2376_v13  ;;  %v2238_v7 = vadd.f32 %v2237_v12, %v2125_v40  ;;  %5315 = vrot.lane.b32.xlu2 %v7061_v8, %s5642_s30  ;;  %5325 = vrot.lane.b32.xlu1 %v7101_v58, %s5644_s17  ;;  %v2240_v8 = vpop.f32.mrf.mxu2  ;;  %v7135_v12 = vpop.permute.xlu2 %5170  ;;  %v3907_v60 = vld [vmem:[%s8048_s4 + $0x90] sm:$0xff] }
 0x385   : > { %5310 = vrot.lane.b32.xlu0 %v5289_v42, %s5643_s16  ;;  %2171 = vmatmul.f32.gmra.mxu1 %v1818_v46  ;;  %v5329_v42 = vpack.i.bf16 %v2748_v61, %v2747_v9  ;;  %v7149_v50 = vpop.f32.mrf.mxu3  ;;  %v3890_v46 = vld [vmem:[%s8048_s4 + $0x8] sm:$0xff] }
 0x386   : > { %v2478_v21 = vrot.slane %v2408_v59, 7  ;;  %v2309_v11 = vmul.f32 %v6790_v54, %v2238_v7  ;;  %4033 = vmatpush.msrb.mxu3 %v3892_v29  ;;  %v3909_v7 = vld [vmem:[%s8048_s4 + $0xa0] sm:$0xff] }
 0x387   : > { %4145 = vmatpush.msrb.mxu2 %v3909_v7 }
 0x388   : > { %v2479_v2 = vsel %vm383_vm2, %v2477_v6, %v2478_v21  ;;  %v2577_v57 = vsel %vm383_vm2, %v2478_v21, 0.0  ;;  %v2345_v17 = vadd.f32 %v6798_v23, %v2309_v11  ;;  %v1819_v6 = vsel %vm1691_vm4, %v6604_v44, %v5168_v39  ;;  %4034 = vmatpush.msrb.mxu3 %v3891_v52 }
 0x389   : > { %2610 = vst.msk [vmem:[#allocation2 + $0xb8] sm:$0x3] %vm515_vm1, %v2577_v57  ;;  %v2127_v63 = vpop.f32.mrf.mxu1 }
 0x38a   : > { %2609 = vst.msk [vmem:[#allocation2 + $0xb0] sm:$0xff] %vm512_vm0, %v2479_v2  ;;  %v2377_v35 = vmul.f32 0.1, %v2345_v17  ;;  %v2128_v55 = vadd.f32 %v2127_v63, %v2014_v22  ;;  %4625 = vmatmul.msk.f32.gmra.mxu0 %vm512_vm0, %v2718_v0  ;;  %4035 = vmatpush.msrb.mxu3 %v3890_v46  ;;  %v2749_v22 = vld [vmem:[#allocation2 + $0xa8] sm:$0xff] }
 0x38c   : > { %v2409_v37 = vmax.f32 %v2345_v17, %v2377_v35  ;;  %v2241_v18 = vadd.f32 %v2240_v8, %v2128_v55  ;;  %5330 = vrot.lane.b32.xlu1 %v5329_v42, %s5643_s16  ;;  %5320 = vrot.lane.b32.xlu2 %v5339_v56, %s5642_s30  ;;  %v2243_v5 = vpop.f32.mrf.mxu2 }
 0x38d   : > { %5340 = vrot.lane.b32.xlu0 %v5339_v56, %s5643_s16  ;;  %2174 = vmatmul.f32.gmra.mxu1 %v1819_v6  ;;  %v3908_v56 = vld [vmem:[%s8048_s4 + $0x98] sm:$0xff] }
 0x38e   : > { %v2480_v19 = vrot.slane %v2409_v37, 7  ;;  %v2310_v26 = vmul.f32 %v6790_v54, %v2241_v18  ;;  %v7169_v10 = vpop.permute.xlu2 %5195  ;;  %4146 = vmatpush.msrb.mxu2 %v3908_v56 }
 0x390   : > { %v2562_v25 = vsel %vm383_vm2, 0.0, %v2480_v19  ;;  %v2346_v44 = vadd.f32 %v6798_v23, %v2310_v26  ;;  %4147 = vmatpush.msrb.mxu2 %v3907_v60  ;;  %v2642_v60 = vld [vmem:[#allocation2 + $0x8] sm:$0xff] }
 0x391   : > { %2611 = vst.msk [vmem:[#allocation2 + $0xc0] sm:$0xff] %vm512_vm0, %v2562_v25  ;;  %v2130_v0 = vpop.f32.mrf.mxu1  ;;  %v2907_v13 = vld [vmem:[#allocation2 + $0xaa] sm:$0xff]  ;;  %v2720_v40 = vld [vmem:[#allocation2 + $0xb2] sm:$0xff] }
 0x392   : > { %v2378_v62 = vmul.f32 0.1, %v2346_v44  ;;  %v2131_v14 = vadd.f32 %v2130_v0, %v6660_v34  ;;  %4626 = vmatmul.msk.f32.gmra.mxu0 %vm512_vm0, %v2907_v13  ;;  %v5354_v59 = vpack.i.bf16 %v2720_v40, %v2907_v13  ;;  %v3889_v34 = vld [vmem:[%s8048_s4] sm:$0xff]  ;;  %v2687_v8 = vld [vmem:[#allocation2 + $0xa9] sm:$0xff]  ;;  %v2688_v61 = vld [vmem:[#allocation2 + $0xb1] sm:$0xff] }
 0x393   : > { %4036 = vmatpush.msrb.mxu3 %v3889_v34  ;;  %v2750_v2 = vld [vmem:[#allocation2 + $0xb0] sm:$0xff]  ;;  %v5349_v63 = vpack.i.bf16 %v2688_v61, %v2687_v8  ;;  %v3906_v25 = vld [vmem:[%s8048_s4 + $0x88] sm:$0xff] }
 0x394   : > { %v2410_v3 = vmax.f32 %v2346_v44, %v2378_v62  ;;  %v2244_v21 = vadd.f32 %v2243_v5, %v2131_v14  ;;  %5335 = vrot.lane.b32.xlu1 %v5329_v42, %s5644_s17  ;;  %5345 = vrot.lane.b32.xlu2 %v7101_v58, %s5642_s30  ;;  %v5359_v9 = vpack.i.bf16 %v2750_v2, %v2749_v22  ;;  %v3905_v44 = vld [vmem:[%s8048_s4 + $0x80] sm:$0xff] }
 0x395   : > { %5355 = vrot.lane.b32.xlu0 %v5354_v59, %s5644_s17  ;;  %4672 = vmatpush.msra.mxu3 %v6811_v43  ;;  %v2246_v43 = vpop.f32.mrf.mxu2 }
 0x396   : > { %v2481_v11 = vrot.slane %v2410_v3, 7  ;;  %v2311_v49 = vmul.f32 %v6790_v54, %v2244_v21  ;;  %4148 = vmatpush.msrb.mxu2 %v3906_v25 }
 0x397   : > { %4673 = vmatpush.msra.mxu3 %v6818_v53  ;;  %v7193_v53 = vld [vmem:[%s8046_s2] ss:$0 sm:$0xff] }
 0x398   : > { %v2482_v15 = vsel %vm383_vm2, %v2480_v19, %v2481_v11  ;;  %v2578_v39 = vsel %vm383_vm2, %v2481_v11, 0.0  ;;  %v2347_v58 = vadd.f32 %v6798_v23, %v2311_v49  ;;  %v7184_v23 = vpop.f32.mrf.mxu3  ;;  %4149 = vmatpush.msrb.mxu2 %v3905_v44  ;;  %v2641_v11 = vld [vmem:[#allocation2] sm:$0xff]  ;;  %v5176_v49 = vpop.permute.xlu1 %5175 }
 0x399   : > { %2613 = vst.msk [vmem:[#allocation2 + $0xd0] sm:$0x3] %vm515_vm1, %v2578_v39  ;;  %v2133_v57 = vpop.f32.mrf.mxu1  ;;  %4674 = vmatpush.msra.mxu3 %v6825_v51  ;;  %v7206_v51 = vld [vmem:[%s8047_s3] ss:$0 sm:$0xff] }
 0x39a   : > { %2612 = vst.msk [vmem:[#allocation2 + $0xc8] sm:$0xff] %vm512_vm0, %v2482_v15  ;;  %v2379_v17 = vmul.f32 0.1, %v2347_v58  ;;  %v2134_v54 = vadd.f32 %v2133_v57, %v6670_v30  ;;  %4627 = vmatmul.msk.f32.gmra.mxu0 %vm512_vm0, %v2720_v40  ;;  %v2845_v61 = vld [vmem:[#allocation2 + $0xc0] sm:$0xff]  ;;  %v5177_v15 = vunpack.i.l.bf16 %v5176_v49 }
 0x39b   : > { %4675 = vmatpush.msra.mxu3 %v6834_v20 }
 0x39c   : > { %v2411_v35 = vmax.f32 %v2347_v58, %v2379_v17  ;;  %v2247_v55 = vadd.f32 %v2246_v43, %v2134_v54  ;;  %5375 = vrot.lane.b32.xlu2 %v5354_v59, %s5642_s30  ;;  %5350 = vrot.lane.b32.xlu1 %v5349_v63, %s5642_s30  ;;  %v5172_v59 = vunpack.i.l.bf16 %v7135_v12 }
 0x39d   : > { %5360 = vrot.lane.b32.xlu0 %v5359_v9, %s5643_s16 }
 0x39e   : > { %v2483_v30 = vrot.slane %v2411_v35, 7  ;;  %v2312_v42 = vmul.f32 %v7193_v53, %v2247_v55  ;;  %v7196_v32 = vpop.permute.xlu2 %5205  ;;  %v3697_v17 = vsel %vm512_vm0, %v2641_v11, %v5172_v59  ;;  %v5173_v55 = vunpack.i.h.bf16 %v7135_v12 }
 0x3a0   : > { %v2563_v37 = vsel %vm383_vm2, 0.0, %v2483_v30  ;;  %v2348_v18 = vadd.f32 %v7206_v51, %v2312_v42  ;;  %v3698_v25 = vsel %vm512_vm0, %v2642_v60, %v5173_v55 }
 0x3a1   : > { %2614 = vst.msk [vmem:[#allocation2 + $0xd8] sm:$0xff] %vm512_vm0, %v2563_v37  ;;  %v2136_v6 = vpop.f32.mrf.mxu1  ;;  %v2909_v29 = vld [vmem:[#allocation2 + $0xc2] sm:$0xff]  ;;  %v2722_v19 = vld [vmem:[#allocation2 + $0xca] sm:$0xff] }
 0x3a2   : > { %v2380_v26 = vmul.f32 0.1, %v2348_v18  ;;  %v2137_v52 = vadd.f32 %v2136_v6, %v6678_v31  ;;  %4628 = vmatmul.msk.f32.gmra.mxu0 %vm512_vm0, %v2909_v29  ;;  %v7212_v20 = vpack.i.bf16 %v2722_v19, %v2909_v29  ;;  %v2255_v31 = vpop.f32.mrf.mxu3  ;;  %v2846_v7 = vld [vmem:[#allocation2 + $0xc8] sm:$0xff]  ;;  %v5178_v29 = vunpack.i.h.bf16 %v5176_v49 }
 0x3a3   : > { %v2689_v21 = vld [vmem:[#allocation2 + $0xc1] sm:$0xff]  ;;  %v2690_v34 = vld [vmem:[#allocation2 + $0xc9] sm:$0xff]  ;;  %v5394_v2 = vpack.i.bf16 %v2846_v7, %v2845_v61 }
 0x3a4   : > { %v2412_v5 = vmax.f32 %v2348_v18, %v2380_v26  ;;  %v2250_v0 = vadd.f32 %v7149_v50, %v2137_v52  ;;  %5365 = vrot.lane.b32.xlu1 %v5359_v9, %s5644_s17  ;;  %5385 = vrot.lane.b32.xlu2 %v7212_v20, %s5644_s17  ;;  %v5379_v57 = vpack.i.bf16 %v2690_v34, %v2689_v21 }
 0x3a5   : > { %5370 = vrot.lane.b32.xlu0 %v5349_v63, %s5643_s16  ;;  %v3729_v9 = vsel %vm1658_vm3, %v3697_v17, %v5177_v15 }
 0x3a6   : > { %v2484_v13 = vrot.slane %v2412_v5, 7  ;;  %v2313_v40 = vmul.f32 %v7193_v53, %v2250_v0  ;;  %v7226_v62 = vpop.permute.xlu2 %5210  ;;  %v7228_v14 = vpop.permute.xlu0 %5185 }
 0x3a7   : > { %v7257_v44 = vpop.permute.xlu1 %5180  ;;  %v5187_v15 = vunpack.i.l.bf16 %v7228_v14 }
 0x3a8   : > { %v2485_v50 = vsel %vm383_vm2, %v2483_v30, %v2484_v13  ;;  %v2579_v46 = vsel %vm383_vm2, %v2484_v13, 0.0  ;;  %v2349_v3 = vadd.f32 %v7206_v51, %v2313_v40  ;;  %v2753_v61 = vld [vmem:[#allocation2 + $0xd8] sm:$0xff] }
 0x3a9   : > { %2616 = vst.msk [vmem:[#allocation2 + $0xe8] sm:$0x3] %vm515_vm1, %v2579_v46  ;;  %v2139_v8 = vpop.f32.mrf.mxu1 }
 0x3aa   : > { %2615 = vst.msk [vmem:[#allocation2 + $0xe0] sm:$0xff] %vm512_vm0, %v2485_v50  ;;  %v2381_v39 = vmul.f32 0.1, %v2349_v3  ;;  %v2140_v58 = vadd.f32 %v2139_v8, %v6685_v27  ;;  %4629 = vmatmul.msk.f32.gmra.mxu0 %vm512_vm0, %v2722_v19  ;;  %v2258_v35 = vpop.f32.mrf.mxu3  ;;  %v5182_v50 = vunpack.i.l.bf16 %v7257_v44 }
 0x3ac   : > { %v2413_v54 = vmax.f32 %v2349_v3, %v2381_v39  ;;  %v2253_v22 = vadd.f32 %v7184_v23, %v2140_v58  ;;  %5395 = vrot.lane.b32.xlu1 %v5394_v2, %s5644_s17  ;;  %5390 = vrot.lane.b32.xlu2 %v5394_v2, %s5643_s16 }
 0x3ad   : > { %5380 = vrot.lane.b32.xlu0 %v5379_v57, %s5642_s30 }
 0x3ae   : > { %v2486_v63 = vrot.slane %v2413_v54, 7  ;;  %v2314_v56 = vmul.f32 %v7193_v53, %v2253_v22  ;;  %v7244_v43 = vpop.permute.xlu2 %5225  ;;  %v5191_v27 = vpop.permute.xlu0 %5190 }
 0x3af   : > { %v5192_v30 = vunpack.i.l.bf16 %v5191_v27  ;;  %v5193_v0 = vunpack.i.h.bf16 %v5191_v27 }
 0x3b0   : > { %v2564_v23 = vsel %vm383_vm2, 0.0, %v2486_v63  ;;  %v2350_v42 = vadd.f32 %v7206_v51, %v2314_v56 }
 0x3b1   : > { %2617 = vst.msk [vmem:[#allocation2 + $0xf0] sm:$0xff] %vm512_vm0, %v2564_v23  ;;  %v3761_v37 = vsel %vm1691_vm4, %v3729_v9, %v5192_v30  ;;  %v2911_v18 = vld [vmem:[#allocation2 + $0xda] sm:$0xff]  ;;  %v2724_v6 = vld [vmem:[#allocation2 + $0xe2] sm:$0xff]  ;;  %v5183_v9 = vunpack.i.h.bf16 %v7257_v44  ;;  %v5212_v23 = vunpack.i.l.bf16 %v7226_v62 }
 0x3b2   : > { %v2382_v19 = vmul.f32 0.1, %v2350_v42  ;;  %v2142_v26 = vpop.f32.mrf.mxu1  ;;  %4037 = vmatmul.f32.vlgmr.msrb.gmra.mxu3 %v3761_v37  ;;  %4630 = vmatmul.msk.f32.gmra.mxu0 %vm512_vm0, %v2911_v18  ;;  %v7253_v52 = vpack.i.bf16 %v2724_v6, %v2911_v18  ;;  %v7267_v7 = vpop.f32.mrf.mxu3  ;;  %v2754_v21 = vld [vmem:[#allocation2 + $0xe0] sm:$0xff] }
 0x3b3   : > { %v2143_v12 = vadd.f32 %v2142_v26, %v6695_v38  ;;  %v3730_v38 = vsel %vm1658_vm3, %v3698_v25, %v5178_v29  ;;  %v2691_v34 = vld [vmem:[#allocation2 + $0xd9] sm:$0xff]  ;;  %v5419_v58 = vpack.i.bf16 %v2754_v21, %v2753_v61  ;;  %v5227_v26 = vunpack.i.l.bf16 %v7244_v43 }
 0x3b4   : > { %v2414_v5 = vmax.f32 %v2350_v42, %v2382_v19  ;;  %5415 = vrot.lane.b32.xlu1 %v7253_v52, %s5644_s17  ;;  %5405 = vrot.lane.b32.xlu2 %v7212_v20, %s5642_s30  ;;  %v2692_v20 = vld [vmem:[#allocation2 + $0xe1] sm:$0xff]  ;;  %v3762_v8 = vsel %vm1691_vm4, %v3730_v38, %v5193_v0  ;;  %v2769_v18 = vld [vmem:[#allocation2 + $0x19] sm:$0xff] }
 0x3b5   : > { %v2256_v13 = vadd.f32 %v2255_v31, %v2143_v12  ;;  %5400 = vrot.lane.b32.xlu0 %v5379_v57, %s5643_s16  ;;  %v5409_v2 = vpack.i.bf16 %v2692_v20, %v2691_v34  ;;  %v2643_v57 = vld [vmem:[#allocation2 + $0x18] sm:$0xff] }
 0x3b6   : > { %v2487_v40 = vrot.slane %v2414_v5, 7  ;;  %v7264_v59 = vpop.permute.xlu2 %5230  ;;  %v3699_v22 = vsel %vm512_vm0, %v2643_v57, %v5182_v50  ;;  %v7288_v55 = vpop.permute.xlu1 %5215 }
 0x3b7   : > { %v2315_v46 = vmul.f32 %v7193_v53, %v2256_v13  ;;  %v7271_v3 = vpop.permute.xlu0 %5200  ;;  %v2644_v13 = vld [vmem:[#allocation2 + $0x20] sm:$0xff] }
 0x3b8   : > { %v2488_v31 = vsel %vm383_vm2, %v2486_v63, %v2487_v40  ;;  %v2580_v11 = vsel %vm383_vm2, %v2487_v40, 0.0  ;;  %v5197_v63 = vunpack.i.l.bf16 %v7169_v10  ;;  %v3700_v50 = vsel %vm512_vm0, %v2644_v13, %v5183_v9  ;;  %v2771_v13 = vld [vmem:[#allocation2 + $0x31] sm:$0xff] }
 0x3b9   : > { %2619 = vst.msk [vmem:[#allocation2 + $0x100] sm:$0x3] %vm515_vm1, %v2580_v11  ;;  %v2351_v49 = vadd.f32 %v7206_v51, %v2315_v46  ;;  %v5198_v46 = vunpack.i.h.bf16 %v7169_v10  ;;  %v5213_v10 = vunpack.i.h.bf16 %v7226_v62 }
 0x3ba   : > { %2618 = vst.msk [vmem:[#allocation2 + $0xf8] sm:$0xff] %vm512_vm0, %v2488_v31  ;;  %v2145_v39 = vpop.f32.mrf.mxu1  ;;  %4040 = vmatmul.f32.gmra.mxu3 %v3762_v8  ;;  %4631 = vmatmul.msk.f32.gmra.mxu0 %vm512_vm0, %v2724_v6  ;;  %v5188_v6 = vunpack.i.h.bf16 %v7228_v14  ;;  %v3793_v29 = vsel %vm512_vm0, %v2769_v18, %v5197_v63  ;;  %v7297_v19 = vpop.f32.mrf.mxu3  ;;  %v5202_v63 = vunpack.i.l.bf16 %v7271_v3 }
 0x3bb   : > { %v2383_v17 = vmul.f32 0.1, %v2351_v49  ;;  %v2146_v54 = vadd.f32 %v2145_v39, %v6704_v24  ;;  %v3731_v24 = vsel %vm1658_vm3, %v3699_v22, %v5187_v15  ;;  %v2770_v15 = vld [vmem:[#allocation2 + $0x21] sm:$0xff] }
 0x3bc   : > { %5420 = vrot.lane.b32.xlu1 %v5419_v58, %s5643_s16  ;;  %5410 = vrot.lane.b32.xlu2 %v5409_v2, %s5642_s30  ;;  %v3763_v44 = vsel %vm1691_vm4, %v3731_v24, %v5212_v23  ;;  %v3732_v8 = vsel %vm1658_vm3, %v3700_v50, %v5188_v6  ;;  %v5217_v23 = vunpack.i.l.bf16 %v7288_v55 }
 0x3bd   : > { %v2415_v56 = vmax.f32 %v2351_v49, %v2383_v17  ;;  %v2259_v27 = vadd.f32 %v2258_v35, %v2146_v54  ;;  %5430 = vrot.lane.b32.xlu0 %v5409_v2, %s5643_s16  ;;  %v3794_v2 = vsel %vm512_vm0, %v2770_v15, %v5198_v46  ;;  %v3764_v17 = vsel %vm1691_vm4, %v3732_v8, %v5213_v10 }
 0x3be   : > { %v7290_v30 = vpop.permute.xlu2 %5255  ;;  %v3795_v46 = vsel %vm512_vm0, %v2771_v13, %v5217_v23 }
 0x3bf   : > { %v2489_v42 = vrot.slane %v2415_v56, 7  ;;  %v2316_v60 = vmul.f32 %v7193_v53, %v2259_v27  ;;  %v5221_v37 = vpop.permute.xlu0 %5220 }
 0x3c0   : > { %v5222_v35 = vunpack.i.l.bf16 %v5221_v37  ;;  %v5223_v31 = vunpack.i.h.bf16 %v5221_v37  ;;  %v2755_v37 = vld [vmem:[#allocation2 + $0xf0] sm:$0xff] }
 0x3c1   : > { %v2565_v12 = vsel %vm383_vm2, 0.0, %v2489_v42  ;;  %v2352_v25 = vadd.f32 %v7206_v51, %v2316_v60  ;;  %v2913_v5 = vld [vmem:[#allocation2 + $0xf2] sm:$0xff]  ;;  %v2726_v0 = vld [vmem:[#allocation2 + $0xfa] sm:$0xff] }
 0x3c2   : > { %2620 = vst.msk [vmem:[#allocation2 + $0x108] sm:$0xff] %vm512_vm0, %v2565_v12  ;;  %v2148_v40 = vpop.f32.mrf.mxu1  ;;  %4043 = vmatmul.f32.gmra.mxu3 %v3763_v44  ;;  %4632 = vmatmul.msk.f32.gmra.mxu0 %vm512_vm0, %v2913_v5  ;;  %v3825_v14 = vsel %vm1658_vm3, %v3793_v29, %v5222_v35  ;;  %v5444_v38 = vpack.i.bf16 %v2726_v0, %v2913_v5  ;;  %v2694_v57 = vld [vmem:[#allocation2 + $0xf9] sm:$0xff]  ;;  %v2267_v62 = vpop.f32.mrf.mxu3 }
 0x3c3   : > { %v2384_v21 = vmul.f32 0.1, %v2352_v25  ;;  %v2149_v34 = vadd.f32 %v2148_v40, %v6711_v1  ;;  %v3857_v20 = vsel %vm1691_vm4, %v3825_v14, %v5227_v26  ;;  %v3826_v54 = vsel %vm1658_vm3, %v3794_v2, %v5223_v31  ;;  %v2756_v22 = vld [vmem:[#allocation2 + $0xf8] sm:$0xff]  ;;  %v2645_v26 = vld [vmem:[#allocation2 + $0x30] sm:$0xff] }
 0x3c4   : > { %4150 = vmatmul.f32.vlgmr.msrb.gmra.mxu2 %v3857_v20  ;;  %5425 = vrot.lane.b32.xlu1 %v5419_v58, %s5644_s17  ;;  %v5449_v35 = vpack.i.bf16 %v2756_v22, %v2755_v37  ;;  %v3701_v44 = vsel %vm512_vm0, %v2645_v26, %v5202_v63  ;;  %v5208_v22 = vunpack.i.h.bf16 %v7196_v32  ;;  %v5258_v37 = vunpack.i.h.bf16 %v7290_v30 }
 0x3c5   : > { %v2416_v11 = vmax.f32 %v2352_v25, %v2384_v21  ;;  %v2262_v49 = vadd.f32 %v7267_v7, %v2149_v34  ;;  %5435 = vrot.lane.b32.xlu2 %v7253_v52, %s5642_s30  ;;  %5445 = vrot.lane.b32.xlu0 %v5444_v38, %s5644_s17  ;;  %v2693_v7 = vld [vmem:[#allocation2 + $0xf1] sm:$0xff]  ;;  %v5228_v52 = vunpack.i.h.bf16 %v7244_v43  ;;  %v5257_v34 = vunpack.i.l.bf16 %v7290_v30 }
 0x3c6   : > { %v7317_v61 = vpop.permute.xlu1 %5235  ;;  %v7319_v1 = vpop.permute.xlu2 %5285  ;;  %v5439_v60 = vpack.i.bf16 %v2694_v57, %v2693_v7 }
 0x3c7   : > { %v2490_v39 = vrot.slane %v2416_v11, 7  ;;  %v2317_v58 = vmul.f32 %v7193_v53, %v2262_v49  ;;  %v7330_v24 = vpop.permute.xlu0 %5250  ;;  %v3858_v6 = vsel %vm1691_vm4, %v3826_v54, %v5228_v52  ;;  %v5218_v49 = vunpack.i.h.bf16 %v7288_v55  ;;  %v2646_v55 = vld [vmem:[#allocation2 + $0x38] sm:$0xff] }
 0x3c8   : > { %v5252_v29 = vunpack.i.l.bf16 %v7330_v24  ;;  %v5253_v57 = vunpack.i.h.bf16 %v7330_v24 }
 0x3c9   : > { %v2491_v56 = vsel %vm383_vm2, %v2489_v42, %v2490_v39  ;;  %v2581_v27 = vsel %vm383_vm2, %v2490_v39, 0.0  ;;  %v2353_v9 = vadd.f32 %v7206_v51, %v2317_v58 }
 0x3ca   : > { %2622 = vst.msk [vmem:[#allocation2 + $0x118] sm:$0x3] %vm515_vm1, %v2581_v27  ;;  %v2151_v43 = vpop.f32.mrf.mxu1  ;;  %4046 = vmatmul.f32.gmra.mxu3 %v3764_v17  ;;  %4633 = vmatmul.msk.f32.gmra.mxu0 %vm512_vm0, %v2726_v0  ;;  %v3827_v21 = vsel %vm1658_vm3, %v3795_v46, %v5252_v29  ;;  %v2270_v15 = vpop.f32.mrf.mxu3  ;;  %v2772_v27 = vld [vmem:[#allocation2 + $0x39] sm:$0xff] }
 0x3cb   : > { %2621 = vst.msk [vmem:[#allocation2 + $0x110] sm:$0xff] %vm512_vm0, %v2491_v56  ;;  %v2385_v18 = vmul.f32 0.1, %v2353_v9  ;;  %v2152_v42 = vadd.f32 %v2151_v43, %v6717_v4  ;;  %v5207_v4 = vunpack.i.l.bf16 %v7196_v32  ;;  %v3859_v2 = vsel %vm1691_vm4, %v3827_v21, %v5257_v34 }
 0x3cc   : > { %4153 = vmatmul.f32.gmra.mxu2 %v3858_v6  ;;  %5440 = vrot.lane.b32.xlu1 %v5439_v60, %s5642_s30 }
 0x3cd   : > { %v2417_v12 = vmax.f32 %v2353_v9, %v2385_v18  ;;  %v2265_v25 = vadd.f32 %v7297_v19, %v2152_v42  ;;  %5465 = vrot.lane.b32.xlu2 %v5444_v38, %s5642_s30  ;;  %5450 = vrot.lane.b32.xlu0 %v5449_v35, %s5643_s16  ;;  %v5203_v19 = vunpack.i.h.bf16 %v7271_v3  ;;  %v3733_v38 = vsel %vm1658_vm3, %v3701_v44, %v5207_v4 }
 0x3ce   : > { %v5241_v5 = vpop.permute.xlu1 %5240  ;;  %v7345_v0 = vpop.permute.xlu2 %5295 }
 0x3cf   : > { %v2492_v40 = vrot.slane %v2417_v12, 7  ;;  %v2318_v14 = vmul.f32 %v7193_v53, %v2265_v25  ;;  %v5242_v50 = vunpack.i.l.bf16 %v5241_v5  ;;  %v5243_v17 = vunpack.i.h.bf16 %v5241_v5  ;;  %v2851_v12 = vld [vmem:[#allocation2 + $0x108] sm:$0xff] }
 0x3d1   : > { %v2566_v20 = vsel %vm383_vm2, 0.0, %v2492_v40  ;;  %v2354_v31 = vadd.f32 %v7206_v51, %v2318_v14  ;;  %v3765_v11 = vsel %vm1691_vm4, %v3733_v38, %v5242_v50  ;;  %v5232_v14 = vunpack.i.l.bf16 %v7264_v59 }
 0x3d2   : > { %2623 = vst.msk [vmem:[#allocation2 + $0x120] sm:$0xff] %vm512_vm0, %v2566_v20  ;;  %v2154_v8 = vpop.f32.mrf.mxu1  ;;  %4049 = vmatmul.f32.gmra.mxu3 %v3765_v11  ;;  %v2915_v10 = vld [vmem:[#allocation2 + $0x10a] sm:$0xff]  ;;  %v2728_v3 = vld [vmem:[#allocation2 + $0x112] sm:$0xff]  ;;  %v2273_v44 = vpop.f32.mrf.mxu3  ;;  %v5237_v50 = vunpack.i.l.bf16 %v7317_v61 }
 0x3d3   : > { %v2386_v39 = vmul.f32 0.1, %v2354_v31  ;;  %v2155_v58 = vadd.f32 %v2154_v8, %v6722_v45  ;;  %4634 = vmatmul.msk.f32.gmra.mxu0 %vm512_vm0, %v2915_v10  ;;  %v7361_v7 = vpack.i.bf16 %v2728_v3, %v2915_v10  ;;  %v3702_v45 = vsel %vm512_vm0, %v2646_v55, %v5203_v19  ;;  %v2852_v43 = vld [vmem:[#allocation2 + $0x110] sm:$0xff] }
 0x3d4   : > { %4156 = vmatmul.f32.gmra.mxu2 %v3859_v2  ;;  %5455 = vrot.lane.b32.xlu1 %v5449_v35, %s5644_s17  ;;  %v2695_v32 = vld [vmem:[#allocation2 + $0x109] sm:$0xff]  ;;  %v2696_v42 = vld [vmem:[#allocation2 + $0x111] sm:$0xff]  ;;  %v5484_v30 = vpack.i.bf16 %v2852_v43, %v2851_v12 }
 0x3d5   : > { %v2418_v52 = vmax.f32 %v2354_v31, %v2386_v39  ;;  %v2268_v54 = vadd.f32 %v2267_v62, %v2155_v58  ;;  %5475 = vrot.lane.b32.xlu2 %v7361_v7, %s5644_s17  ;;  %5460 = vrot.lane.b32.xlu0 %v5439_v60, %s5643_s16  ;;  %v3796_v62 = vsel %vm512_vm0, %v2772_v27, %v5218_v49  ;;  %v2647_v31 = vld [vmem:[#allocation2 + $0x48] sm:$0xff] }
 0x3d6   : > { %v7370_v63 = vpop.permute.xlu1 %5245  ;;  %v7372_v56 = vpop.permute.xlu2 %5300  ;;  %v3734_v60 = vsel %vm1658_vm3, %v3702_v45, %v5208_v22  ;;  %v3828_v18 = vsel %vm1658_vm3, %v3796_v62, %v5253_v57  ;;  %v3703_v49 = vsel %vm512_vm0, %v2647_v31, %v5232_v14  ;;  %v5233_v57 = vunpack.i.h.bf16 %v7264_v59  ;;  %v2648_v62 = vld [vmem:[#allocation2 + $0x50] sm:$0xff] }
 0x3d7   : > { %v2493_v9 = vrot.slane %v2418_v52, 7  ;;  %v2319_v24 = vmul.f32 %v7193_v53, %v2268_v54  ;;  %v7375_v23 = vpop.permute.xlu0 %5265  ;;  %v3766_v26 = vsel %vm1691_vm4, %v3734_v60, %v5243_v17  ;;  %v3860_v13 = vsel %vm1691_vm4, %v3828_v18, %v5258_v37 }
 0x3d8   : > { %v5238_v54 = vunpack.i.h.bf16 %v7317_v61  ;;  %v5247_v22 = vunpack.i.l.bf16 %v7370_v63  ;;  %v3704_v60 = vsel %vm512_vm0, %v2648_v62, %v5233_v57 }
 0x3d9   : > { %v2494_v6 = vsel %vm383_vm2, %v2492_v40, %v2493_v9  ;;  %v2582_v35 = vsel %vm383_vm2, %v2493_v9, 0.0  ;;  %v2355_v29 = vadd.f32 %v7206_v51, %v2319_v24  ;;  %v5469_v40 = vpack.i.bf16 %v2696_v42, %v2695_v32 }
 0x3da   : > { %2625 = vst.msk [vmem:[#allocation2 + $0x130] sm:$0x3] %vm515_vm1, %v2582_v35  ;;  %v2157_v25 = vpop.f32.mrf.mxu1  ;;  %4052 = vmatmul.f32.gmra.mxu3 %v3766_v26  ;;  %v2276_v45 = vpop.f32.mrf.mxu3  ;;  %v2773_v26 = vld [vmem:[#allocation2 + $0x49] sm:$0xff] }
 0x3db   : > { %2624 = vst.msk [vmem:[#allocation2 + $0x128] sm:$0xff] %vm512_vm0, %v2494_v6  ;;  %v2387_v4 = vmul.f32 0.1, %v2355_v29  ;;  %v2158_v5 = vadd.f32 %v2157_v25, %v6729_v36  ;;  %4635 = vmatmul.msk.f32.gmra.mxu0 %vm512_vm0, %v2728_v3  ;;  %v3735_v3 = vsel %vm1658_vm3, %v3703_v49, %v5237_v50  ;;  %v5287_v6 = vunpack.i.l.bf16 %v7319_v1 }
 0x3dc   : > { %4159 = vmatmul.f32.gmra.mxu2 %v3860_v13  ;;  %5485 = vrot.lane.b32.xlu1 %v5484_v30, %s5644_s17 }
 0x3dd   : > { %v2419_v46 = vmax.f32 %v2355_v29, %v2387_v4  ;;  %v2271_v19 = vadd.f32 %v2270_v15, %v2158_v5  ;;  %5480 = vrot.lane.b32.xlu2 %v5484_v30, %s5643_s16  ;;  %5470 = vrot.lane.b32.xlu0 %v5469_v40, %s5642_s30  ;;  %v3736_v29 = vsel %vm1658_vm3, %v3704_v60, %v5238_v54  ;;  %v2759_v4 = vld [vmem:[#allocation2 + $0x120] sm:$0xff] }
 0x3de   : > { %v7395_v38 = vpop.permute.xlu1 %5260  ;;  %v7397_v36 = vpop.permute.xlu2 %5315 }
 0x3df   : > { %v2495_v21 = vrot.slane %v2419_v46, 7  ;;  %v2320_v34 = vmul.f32 %v7193_v53, %v2271_v19  ;;  %v5271_v20 = vpop.permute.xlu0 %5270  ;;  %v5248_v46 = vunpack.i.h.bf16 %v7370_v63  ;;  %v5263_v54 = vunpack.i.h.bf16 %v7395_v38 }
 0x3e0   : > { %v5272_v11 = vunpack.i.l.bf16 %v5271_v20  ;;  %v5273_v59 = vunpack.i.h.bf16 %v5271_v20  ;;  %v2649_v20 = vld [vmem:[#allocation2 + $0x60] sm:$0xff] }
 0x3e1   : > { %v2567_v8 = vsel %vm383_vm2, 0.0, %v2495_v21  ;;  %v2356_v10 = vadd.f32 %v7206_v51, %v2320_v34 }
 0x3e2   : > { %2626 = vst.msk [vmem:[#allocation2 + $0x138] sm:$0xff] %vm512_vm0, %v2567_v8  ;;  %v2160_v15 = vpop.f32.mrf.mxu1  ;;  %v3767_v39 = vsel %vm1691_vm4, %v3735_v3, %v5272_v11  ;;  %v2917_v58 = vld [vmem:[#allocation2 + $0x122] sm:$0xff]  ;;  %v2730_v2 = vld [vmem:[#allocation2 + $0x12a] sm:$0xff]  ;;  %v3768_v13 = vsel %vm1691_vm4, %v3736_v29, %v5273_v59  ;;  %v2279_v49 = vpop.f32.mrf.mxu3  ;;  %v5267_v8 = vunpack.i.l.bf16 %v7375_v23 }
 0x3e3   : > { %v2388_v55 = vmul.f32 0.1, %v2356_v10  ;;  %v2161_v52 = vadd.f32 %v2160_v15, %v6739_v47  ;;  %4055 = vmatmul.f32.gmra.mxu3 %v3767_v39  ;;  %4636 = vmatmul.msk.f32.gmra.mxu0 %vm512_vm0, %v2917_v58  ;;  %v7409_v17 = vpack.i.bf16 %v2730_v2, %v2917_v58  ;;  %v2760_v18 = vld [vmem:[#allocation2 + $0x128] sm:$0xff]  ;;  %v2774_v15 = vld [vmem:[#allocation2 + $0x51] sm:$0xff] }
 0x3e4   : > { %v2697_v32 = vld [vmem:[#allocation2 + $0x121] sm:$0xff]  ;;  %v2698_v42 = vld [vmem:[#allocation2 + $0x129] sm:$0xff]  ;;  %v5509_v14 = vpack.i.bf16 %v2760_v18, %v2759_v4 }
 0x3e5   : > { %v2420_v27 = vmax.f32 %v2356_v10, %v2388_v55  ;;  %v2274_v9 = vadd.f32 %v2273_v44, %v2161_v52  ;;  %5505 = vrot.lane.b32.xlu1 %v7409_v17, %s5644_s17  ;;  %5495 = vrot.lane.b32.xlu2 %v7361_v7, %s5642_s30  ;;  %v5262_v7 = vunpack.i.l.bf16 %v7395_v38  ;;  %v3797_v44 = vsel %vm512_vm0, %v2773_v26, %v5247_v22  ;;  %v2650_v18 = vld [vmem:[#allocation2 + $0x68] sm:$0xff] }
 0x3e6   : > { %5490 = vrot.lane.b32.xlu0 %v5469_v40, %s5643_s16  ;;  %v7418_v47 = vpop.permute.xlu1 %5275  ;;  %v7420_v24 = vpop.permute.xlu2 %5320  ;;  %v5499_v50 = vpack.i.bf16 %v2698_v42, %v2697_v32  ;;  %v3798_v55 = vsel %vm512_vm0, %v2774_v15, %v5248_v46  ;;  %v5302_v52 = vunpack.i.l.bf16 %v7372_v56  ;;  %v5288_v22 = vunpack.i.h.bf16 %v7319_v1 }
 0x3e7   : > { %v2496_v61 = vrot.slane %v2420_v27, 7  ;;  %v2321_v43 = vmul.f32 %v7193_v53, %v2274_v9  ;;  %v5281_v37 = vpop.permute.xlu0 %5280  ;;  %v3705_v11 = vsel %vm512_vm0, %v2649_v20, %v5262_v7  ;;  %v5277_v32 = vunpack.i.l.bf16 %v7418_v47  ;;  %v7484_v46 = vpop.f32.mrf.mxu0 }
 0x3e8   : > { %v5282_v35 = vunpack.i.l.bf16 %v5281_v37  ;;  %v5283_v31 = vunpack.i.h.bf16 %v5281_v37  ;;  %v3737_v57 = vsel %vm1658_vm3, %v3705_v11, %v5267_v8  ;;  %v3706_v42 = vsel %vm512_vm0, %v2650_v18, %v5263_v54 }
 0x3e9   : > { %v2497_v12 = vsel %vm383_vm2, %v2495_v21, %v2496_v61  ;;  %v2583_v25 = vsel %vm383_vm2, %v2496_v61, 0.0  ;;  %v2357_v30 = vadd.f32 %v7206_v51, %v2321_v43  ;;  %v3769_v62 = vsel %vm1691_vm4, %v3737_v57, %v5302_v52  ;;  %v7498_v15 = vld [vmem:[#allocation2 + $0x138] sm:$0xff] }
 0x3ea   : > { %2628 = vst.msk [vmem:[#allocation2 + $0x148] sm:$0x3] %vm515_vm1, %v2583_v25  ;;  %v2163_v5 = vpop.f32.mrf.mxu1  ;;  %v3829_v40 = vsel %vm1658_vm3, %v3797_v44, %v5282_v35  ;;  %v2775_v44 = vld [vmem:[#allocation2 + $0x61] sm:$0xff]  ;;  %v2282_v4 = vpop.f32.mrf.mxu3  ;;  %v2651_v57 = vld [vmem:[#allocation2 + $0x78] sm:$0xff]  ;;  %v5297_v54 = vunpack.i.l.bf16 %v7345_v0 }
 0x3eb   : > { %2627 = vst.msk [vmem:[#allocation2 + $0x140] sm:$0xff] %vm512_vm0, %v2497_v12  ;;  %v2389_v19 = vmul.f32 0.1, %v2357_v30  ;;  %v2164_v21 = vadd.f32 %v2163_v5, %v6747_v16  ;;  %4058 = vmatmul.f32.gmra.mxu3 %v3768_v13  ;;  %4637 = vmatmul.msk.f32.gmra.mxu0 %vm512_vm0, %v2730_v2  ;;  %v3861_v34 = vsel %vm1691_vm4, %v3829_v40, %v5287_v6  ;;  %v5268_v6 = vunpack.i.h.bf16 %v7375_v23 }
 0x3ec   : > { %4162 = vmatmul.f32.gmra.mxu2 %v3861_v34  ;;  %v5303_v5 = vunpack.i.h.bf16 %v7372_v56  ;;  %v3799_v40 = vsel %vm512_vm0, %v2775_v44, %v5277_v32  ;;  %v2652_v44 = vld [vmem:[#allocation2 + $0x80] sm:$0xff] }
 0x3ed   : > { %v2421_v10 = vmax.f32 %v2357_v30, %v2389_v19  ;;  %v2277_v63 = vadd.f32 %v2276_v45, %v2164_v21  ;;  %5510 = vrot.lane.b32.xlu1 %v5509_v14, %s5643_s16  ;;  %5500 = vrot.lane.b32.xlu2 %v5499_v50, %s5642_s30  ;;  %v3830_v45 = vsel %vm1658_vm3, %v3798_v55, %v5283_v31 }
 0x3ee   : > { %5520 = vrot.lane.b32.xlu0 %v5499_v50, %s5643_s16  ;;  %v7444_v16 = vpop.permute.xlu1 %5305  ;;  %v7446_v3 = vpop.permute.xlu2 %5345  ;;  %v3862_v38 = vsel %vm1691_vm4, %v3830_v45, %v5288_v22  ;;  %v3738_v23 = vsel %vm1658_vm3, %v3706_v42, %v5268_v6 }
 0x3ef   : > { %v2498_v39 = vrot.slane %v2421_v10, 7  ;;  %v2322_v58 = vmul.f32 %v7193_v53, %v2277_v63  ;;  %v7449_v2 = vpop.permute.xlu0 %5290  ;;  %v5307_v35 = vunpack.i.l.bf16 %v7444_v16  ;;  %v3770_v11 = vsel %vm1691_vm4, %v3738_v23, %v5303_v5 }
 0x3f0   : > { %v5292_v13 = vunpack.i.l.bf16 %v7449_v2  ;;  %v5308_v45 = vunpack.i.h.bf16 %v7444_v16  ;;  %v5293_v16 = vunpack.i.h.bf16 %v7449_v2  ;;  %v5317_v23 = vunpack.i.l.bf16 %v7397_v36 }
 0x3f1   : > { %v2568_v27 = vsel %vm383_vm2, 0.0, %v2498_v39  ;;  %v2358_v9 = vadd.f32 %v7206_v51, %v2322_v58  ;;  %v3831_v20 = vsel %vm1658_vm3, %v3799_v40, %v5307_v35 }
 0x3f2   : > { %2629 = vst.msk [vmem:[#allocation2 + $0x150] sm:$0xff] %vm512_vm0, %v2568_v27  ;;  %v2166_v59 = vpop.f32.mrf.mxu1  ;;  %v2919_v61 = vld [vmem:[#allocation2 + $0x13a] sm:$0xff]  ;;  %v2732_v43 = vld [vmem:[#allocation2 + $0x142] sm:$0xff] }
 0x3f3   : > { %v2390_v37 = vmul.f32 0.1, %v2358_v9  ;;  %v2167_v60 = vadd.f32 %v2166_v59, %v6750_v33  ;;  %4061 = vmatmul.f32.gmra.mxu3 %v3769_v62  ;;  %4638 = vmatmul.msk.f32.gmra.mxu0 %vm512_vm0, %v2919_v61  ;;  %v5534_v1 = vpack.i.bf16 %v2732_v43, %v2919_v61  ;;  %v2700_v50 = vld [vmem:[#allocation2 + $0x141] sm:$0xff] }
 0x3f4   : > { %4165 = vmatmul.f32.gmra.mxu2 %v3862_v38  ;;  %v7490_v31 = vld [vmem:[#allocation2 + $0x140] sm:$0xff]  ;;  %v2285_v38 = vpop.f32.mrf.mxu3 }
 0x3f5   : > { %v2422_v7 = vmax.f32 %v2358_v9, %v2390_v37  ;;  %v2280_v29 = vadd.f32 %v2279_v49, %v2167_v60  ;;  %5515 = vrot.lane.b32.xlu1 %v5509_v14, %s5644_s17  ;;  %5525 = vrot.lane.b32.xlu2 %v7409_v17, %s5642_s30  ;;  %v2699_v14 = vld [vmem:[#allocation2 + $0x139] sm:$0xff]  ;;  %v5539_v58 = vpack.i.bf16 %v7490_v31, %v7498_v15 }
 0x3f6   : > { %5535 = vrot.lane.b32.xlu0 %v5534_v1, %s5644_s17  ;;  %v7472_v33 = vpop.permute.xlu1 %5325  ;;  %v7474_v26 = vpop.permute.xlu2 %5375  ;;  %v5529_v63 = vpack.i.bf16 %v2700_v50, %v2699_v14 }
 0x3f7   : > { %v2499_v12 = vrot.slane %v2422_v7, 7  ;;  %v2323_v25 = vmul.f32 %v7193_v53, %v2280_v29  ;;  %v7477_v30 = vpop.permute.xlu0 %5310  ;;  %v7523_v29 = vpop.f32.mrf.mxu0 }
 0x3f8   : > { %v5312_v17 = vunpack.i.l.bf16 %v7477_v30  ;;  %v5313_v9 = vunpack.i.h.bf16 %v7477_v30 }
 0x3f9   : > { %v2500_v19 = vsel %vm383_vm2, %v2498_v39, %v2499_v12  ;;  %v2584_v21 = vsel %vm383_vm2, %v2499_v12, 0.0  ;;  %v2359_v34 = vadd.f32 %v7206_v51, %v2323_v25  ;;  %v5278_v39 = vunpack.i.h.bf16 %v7418_v47 }
 0x3fa   : > { %2631 = vst.msk [vmem:[#allocation2 + $0x160] sm:$0x3] %vm515_vm1, %v2584_v21  ;;  %v2169_v56 = vpop.f32.mrf.mxu1  ;;  %v3863_v49 = vsel %vm1691_vm4, %v3831_v20, %v5312_v17  ;;  %v2777_v20 = vld [vmem:[#allocation2 + $0x79] sm:$0xff] }
 0x3fb   : > { %2630 = vst.msk [vmem:[#allocation2 + $0x158] sm:$0xff] %vm512_vm0, %v2500_v19  ;;  %v2391_v8 = vmul.f32 0.1, %v2359_v34  ;;  %v2170_v10 = vadd.f32 %v2169_v56, %v6754_v48  ;;  %4064 = vmatmul.f32.gmra.mxu3 %v3770_v11  ;;  %4639 = vmatmul.msk.f32.gmra.mxu0 %vm512_vm0, %v2732_v43  ;;  %v3707_v48 = vsel %vm512_vm0, %v2651_v57, %v5292_v13  ;;  %v2776_v43 = vld [vmem:[#allocation2 + $0x69] sm:$0xff]  ;;  %v5298_v13 = vunpack.i.h.bf16 %v7345_v0 }
 0x3fc   : > { %4168 = vmatmul.f32.gmra.mxu2 %v3863_v49  ;;  %v3739_v37 = vsel %vm1658_vm3, %v3707_v48, %v5297_v54  ;;  %v3800_v60 = vsel %vm512_vm0, %v2776_v43, %v5278_v39  ;;  %v3801_v49 = vsel %vm512_vm0, %v2777_v20, %v5317_v23  ;;  %v2288_v54 = vpop.f32.mrf.mxu3 }
 0x3fd   : > { %v2423_v55 = vmax.f32 %v2359_v34, %v2391_v8  ;;  %v2283_v52 = vadd.f32 %v2282_v4, %v2170_v10  ;;  %5530 = vrot.lane.b32.xlu1 %v5529_v63, %s5642_s30  ;;  %5555 = vrot.lane.b32.xlu2 %v5534_v1, %s5642_s30  ;;  %v3832_v7 = vsel %vm1658_vm3, %v3800_v60, %v5308_v45  ;;  %v7558_v45 = vld [vmem:[#allocation2 + $0x150] sm:$0xff] }
 0x3fe   : > { %5540 = vrot.lane.b32.xlu0 %v5539_v58, %s5643_s16  ;;  %v5331_v47 = vpop.permute.xlu1 %5330  ;;  %v7509_v22 = vpop.permute.xlu2 %5385  ;;  %v3864_v2 = vsel %vm1691_vm4, %v3832_v7, %v5313_v9 }
 0x3ff   : > { %v2501_v27 = vrot.slane %v2423_v55, 7  ;;  %v2324_v59 = vmul.f32 %v7193_v53, %v2283_v52  ;;  %v7513_v62 = vpop.permute.xlu0 %5340  ;;  %v5332_v61 = vunpack.i.l.bf16 %v5331_v47  ;;  %v5333_v17 = vunpack.i.h.bf16 %v5331_v47 }
 0x400   : > { %v5342_v56 = vunpack.i.l.bf16 %v7513_v62  ;;  %v5318_v47 = vunpack.i.h.bf16 %v7397_v36  ;;  %v5327_v36 = vunpack.i.l.bf16 %v7472_v33 }
 0x401   : > { %v2569_v1 = vsel %vm383_vm2, 0.0, %v2501_v27  ;;  %v2360_v18 = vadd.f32 %v7206_v51, %v2324_v59  ;;  %v3771_v32 = vsel %vm1691_vm4, %v3739_v37, %v5332_v61  ;;  %v5322_v59 = vunpack.i.l.bf16 %v7420_v24  ;;  %v7569_v37 = vpop.f32.mrf.mxu0 }
 0x402   : > { %2632 = vst.msk [vmem:[#allocation2 + $0x168] sm:$0xff] %vm512_vm0, %v2569_v1  ;;  %v2172_v42 = vpop.f32.mrf.mxu1  ;;  %v2921_v6 = vld [vmem:[#allocation2 + $0x152] sm:$0xff]  ;;  %v2734_v35 = vld [vmem:[#allocation2 + $0x15a] sm:$0xff] }
 0x403   : > { %v2392_v12 = vmul.f32 0.1, %v2360_v18  ;;  %v2173_v25 = vadd.f32 %v2172_v42, %v6762_v28  ;;  %4067 = vmatmul.f32.gmra.mxu3 %v3771_v32  ;;  %4640 = vmatmul.msk.f32.gmra.mxu0 %vm512_vm0, %v2921_v6  ;;  %v7528_v30 = vpack.i.bf16 %v2734_v35, %v2921_v6  ;;  %v3708_v28 = vsel %vm512_vm0, %v2652_v44, %v5293_v16  ;;  %v7545_v0 = vld [vmem:[#allocation2 + $0x158] sm:$0xff]  ;;  %v2778_v16 = vld [vmem:[#allocation2 + $0x81] sm:$0xff]  ;;  %v2653_v42 = vld [vmem:[#allocation2 + $0x90] sm:$0xff] }
 0x404   : > { %4171 = vmatmul.f32.gmra.mxu2 %v3864_v2  ;;  %v3740_v11 = vsel %vm1658_vm3, %v3708_v28, %v5298_v13  ;;  %v7553_v57 = vld [vmem:[#allocation2 + $0x159] sm:$0xff]  ;;  %v5574_v9 = vpack.i.bf16 %v7545_v0, %v7558_v45  ;;  %v3802_v6 = vsel %vm512_vm0, %v2778_v16, %v5318_v47  ;;  %v5343_v2 = vunpack.i.h.bf16 %v7513_v62  ;;  %v2655_v16 = vld [vmem:[#allocation2 + $0xa8] sm:$0xff] }
 0x405   : > { %v2424_v4 = vmax.f32 %v2360_v18, %v2392_v12  ;;  %v2286_v5 = vadd.f32 %v2285_v38, %v2173_v25  ;;  %5545 = vrot.lane.b32.xlu1 %v5539_v58, %s5644_s17  ;;  %5565 = vrot.lane.b32.xlu2 %v7528_v30, %s5644_s17  ;;  %v7551_v58 = vld [vmem:[#allocation2 + $0x151] sm:$0xff]  ;;  %v3772_v52 = vsel %vm1691_vm4, %v3740_v11, %v5333_v17  ;;  %v5624_v44 = vld [vmem:[%s8047_s3] ss:$0 sm:$0xff] }
 0x406   : > { %5550 = vrot.lane.b32.xlu0 %v5529_v63, %s5643_s16  ;;  %v5336_v40 = vpop.permute.xlu1 %5335  ;;  %v7537_v14 = vpop.permute.xlu2 %5390  ;;  %v5559_v43 = vpack.i.bf16 %v7553_v57, %v7551_v58  ;;  %v3709_v12 = vsel %vm512_vm0, %v2653_v42, %v5322_v59  ;;  %v2863_v13 = vld [vmem:[#allocation2 + $0x198] sm:$0xff] }
 0x407   : > { %v2502_v50 = vrot.slane %v2424_v4, 7  ;;  %v2325_v19 = vmul.f32 %v7193_v53, %v2286_v5  ;;  %v5337_v21 = vunpack.i.l.bf16 %v5336_v40  ;;  %v7540_v34 = vpop.permute.xlu0 %5355  ;;  %v5338_v61 = vunpack.i.h.bf16 %v5336_v40  ;;  %v2780_v42 = vld [vmem:[#allocation2 + $0x99] sm:$0xff] }
 0x408   : > { %v3741_v4 = vsel %vm1658_vm3, %v3709_v12, %v5327_v36  ;;  %v5323_v40 = vunpack.i.h.bf16 %v7420_v24  ;;  %v5348_v36 = vunpack.i.h.bf16 %v7446_v3 }
 0x409   : > { %v2503_v8 = vsel %vm383_vm2, %v2501_v27, %v2502_v50  ;;  %v2585_v10 = vsel %vm383_vm2, %v2502_v50, 0.0  ;;  %v2361_v63 = vadd.f32 %v7206_v51, %v2325_v19  ;;  %v3833_v39 = vsel %vm1658_vm3, %v3801_v49, %v5337_v21  ;;  %v7600_v11 = vpop.f32.mrf.mxu0 }
 0x40a   : > { %2634 = vst.msk [vmem:[#allocation2 + $0x178] sm:$0x3] %vm515_vm1, %v2585_v10  ;;  %v2175_v55 = vpop.f32.mrf.mxu1  ;;  %v3865_v48 = vsel %vm1691_vm4, %v3833_v39, %v5342_v56  ;;  %v3834_v25 = vsel %vm1658_vm3, %v3802_v6, %v5338_v61  ;;  %v5347_v50 = vunpack.i.l.bf16 %v7446_v3  ;;  %v5328_v19 = vunpack.i.h.bf16 %v7472_v33  ;;  %v2654_v10 = vld [vmem:[#allocation2 + $0x98] sm:$0xff] }
 0x40b   : > { %2633 = vst.msk [vmem:[#allocation2 + $0x170] sm:$0xff] %vm512_vm0, %v2503_v8  ;;  %v2393_v51 = vmul.f32 0.1, %v2361_v63  ;;  %v2176_v27 = vadd.f32 %v2175_v55, %v6773_v41  ;;  %4070 = vmatmul.f32.gmra.mxu3 %v3772_v52  ;;  %4641 = vmatmul.msk.f32.gmra.mxu0 %vm512_vm0, %v2734_v35  ;;  %v3866_v62 = vsel %vm1691_vm4, %v3834_v25, %v5343_v2  ;;  %v5392_v2 = vunpack.i.l.bf16 %v7537_v14 }
 0x40c   : > { %4174 = vmatmul.f32.gmra.mxu2 %v3865_v48  ;;  %v3710_v55 = vsel %vm512_vm0, %v2654_v10, %v5323_v40  ;;  %v3804_v25 = vsel %vm512_vm0, %v2780_v42, %v5348_v36  ;;  %v5377_v40 = vunpack.i.l.bf16 %v7474_v26  ;;  %v2781_v10 = vld [vmem:[#allocation2 + $0xa9] sm:$0xff] }
 0x40d   : > { %v2425_v60 = vmax.f32 %v2361_v63, %v2393_v51  ;;  %v2289_v38 = vadd.f32 %v2288_v54, %v2176_v27  ;;  %5575 = vrot.lane.b32.xlu1 %v5574_v9, %s5644_s17  ;;  %5570 = vrot.lane.b32.xlu2 %v5574_v9, %s5643_s16  ;;  %v2779_v63 = vld [vmem:[#allocation2 + $0x91] sm:$0xff]  ;;  %v3742_v27 = vsel %vm1658_vm3, %v3710_v55, %v5328_v19 }
 0x40e   : > { %5560 = vrot.lane.b32.xlu0 %v5559_v43, %s5642_s30  ;;  %v7575_v41 = vpop.permute.xlu1 %5350  ;;  %v7579_v35 = vpop.permute.xlu2 %5405  ;;  %v3803_v48 = vsel %vm512_vm0, %v2779_v63, %v5347_v50  ;;  %v5393_v63 = vunpack.i.h.bf16 %v7537_v14 }
 0x40f   : > { %v2504_v1 = vrot.slane %v2425_v60, 7  ;;  %v2326_v18 = vmul.f32 %v7193_v53, %v2289_v38  ;;  %v5361_v32 = vpop.permute.xlu0 %5360  ;;  %v5352_v39 = vunpack.i.l.bf16 %v7575_v41 }
 0x410   : > { %v5362_v7 = vunpack.i.l.bf16 %v5361_v32  ;;  %v5363_v20 = vunpack.i.h.bf16 %v5361_v32  ;;  %v5357_v32 = vunpack.i.l.bf16 %v7540_v34 }
 0x411   : > { %v2570_v23 = vsel %vm383_vm2, 0.0, %v2504_v1  ;;  %v2362_v53 = vadd.f32 %v5624_v44, %v2326_v18  ;;  %v3711_v18 = vsel %vm512_vm0, %v2655_v16, %v5352_v39 }
 0x412   : > { %2635 = vst.msk [vmem:[#allocation2 + $0x180] sm:$0xff] %vm512_vm0, %v2570_v23  ;;  %v3773_v5 = vsel %vm1691_vm4, %v3741_v4, %v5362_v7  ;;  %v2923_v28 = vld [vmem:[#allocation2 + $0x16a] sm:$0xff]  ;;  %v2924_v52 = vld [vmem:[#allocation2 + $0x172] sm:$0xff]  ;;  %v3774_v61 = vsel %vm1691_vm4, %v3742_v27, %v5363_v20  ;;  %v3743_v12 = vsel %vm1658_vm3, %v3711_v18, %v5357_v32  ;;  %v5353_v23 = vunpack.i.h.bf16 %v7575_v41  ;;  %v7643_v4 = vpop.f32.mrf.mxu0 }
 0x413   : > { %v2394_v17 = vmul.f32 0.1, %v2362_v53  ;;  %4073 = vmatmul.f32.gmra.mxu3 %v3773_v5  ;;  %4642 = vmatmul.msk.f32.gmra.mxu0 %vm512_vm0, %v2923_v28  ;;  %v7607_v54 = vld [vmem:[#allocation2 + $0x171] sm:$0xff]  ;;  %v7621_v60 = vpack.i.bf16 %v2924_v52, %v2923_v28  ;;  %v3775_v5 = vsel %vm1691_vm4, %v3743_v12, %v5392_v2 }
 0x414   : > { %4177 = vmatmul.f32.gmra.mxu2 %v3866_v62  ;;  %v2656_v41 = vld [vmem:[#allocation2 + $0xb0] sm:$0xff] }
 0x415   : > { %v2426_v21 = vmax.f32 %v2362_v53, %v2394_v17  ;;  %3533 = vrot.lane.b32.xlu1 %v2863_v13, %s5644_s17  ;;  %5585 = vrot.lane.b32.xlu2 %v7528_v30, %s5642_s30  ;;  %v7605_v30 = vld [vmem:[#allocation2 + $0x169] sm:$0xff]  ;;  %v3712_v19 = vsel %vm512_vm0, %v2656_v41, %v5353_v23  ;;  %v2782_v12 = vld [vmem:[#allocation2 + $0xb1] sm:$0xff] }
 0x416   : > { %5580 = vrot.lane.b32.xlu0 %v5559_v43, %s5643_s16  ;;  %v5366_v56 = vpop.permute.xlu1 %5365  ;;  %v7614_v59 = vpop.permute.xlu2 %5410  ;;  %v5589_v38 = vpack.i.bf16 %v7607_v54, %v7605_v30  ;;  %v7641_v53 = vld [vmem:[#allocation2 + $0x170] sm:$0xff]  ;;  %v7646_v13 = vld [vmem:[#allocation2 + $0x168] sm:$0xff] }
 0x417   : > { %v2505_v49 = vrot.slane %v2426_v21, 7  ;;  %v5371_v8 = vpop.permute.xlu0 %5370  ;;  %v5367_v24 = vunpack.i.l.bf16 %v5366_v56  ;;  %v5599_v62 = vpack.i.bf16 %v7641_v53, %v7646_v13  ;;  %v5358_v21 = vunpack.i.h.bf16 %v7540_v34  ;;  %v2658_v41 = vld [vmem:[#allocation2 + $0xc8] sm:$0xff] }
 0x418   : > { %v5372_v33 = vunpack.i.l.bf16 %v5371_v8  ;;  %v5373_v6 = vunpack.i.h.bf16 %v5371_v8  ;;  %v3805_v34 = vsel %vm512_vm0, %v2781_v10, %v5377_v40 }
 0x419   : > { %v2506_v47 = vsel %vm383_vm2, %v2504_v1, %v2505_v49  ;;  %v2586_v51 = vsel %vm383_vm2, %v2505_v49, 0.0  ;;  %v3835_v9 = vsel %vm1658_vm3, %v3803_v48, %v5367_v24  ;;  %v5368_v1 = vunpack.i.h.bf16 %v5366_v56  ;;  %v2861_v56 = vld [vmem:[#allocation2 + $0x180] sm:$0xff] }
 0x41a   : > { %2637 = vst.msk [vmem:[#allocation2 + $0x190] sm:$0x3] %vm515_vm1, %v2586_v51  ;;  %v3867_v43 = vsel %vm1691_vm4, %v3835_v9, %v5372_v33  ;;  %v3744_v24 = vsel %vm1658_vm3, %v3712_v19, %v5358_v21  ;;  %v7671_v27 = vpop.f32.mrf.mxu0  ;;  %v5388_v21 = vunpack.i.h.bf16 %v7509_v22 }
 0x41b   : > { %2636 = vst.msk [vmem:[#allocation2 + $0x188] sm:$0xff] %vm512_vm0, %v2506_v47  ;;  %4076 = vmatmul.f32.gmra.mxu3 %v3774_v61  ;;  %4643 = vmatmul.msk.f32.gmra.mxu0 %vm512_vm0, %v2924_v52  ;;  %v3836_v44 = vsel %vm1658_vm3, %v3804_v25, %v5368_v1  ;;  %v3776_v48 = vsel %vm1691_vm4, %v3744_v24, %v5393_v63  ;;  %v2657_v61 = vld [vmem:[#allocation2 + $0xc0] sm:$0xff] }
 0x41c   : > { %4180 = vmatmul.f32.gmra.mxu2 %v3867_v43  ;;  %v3868_v17 = vsel %vm1691_vm4, %v3836_v44, %v5373_v6  ;;  %v5378_v43 = vunpack.i.h.bf16 %v7474_v26 }
 0x41d   : > { %5595 = vrot.lane.b32.xlu1 %v7621_v60, %s5644_s17  ;;  %5590 = vrot.lane.b32.xlu2 %v5589_v38, %s5642_s30  ;;  %v5387_v38 = vunpack.i.l.bf16 %v7509_v22  ;;  %v2895_v22 = vld [vmem:[#allocation2 + $0x199] sm:$0xff] }
 0x41e   : > { %3653 = vrot.lane.b32.xlu0 %v7605_v30, %s5643_s16  ;;  %v7632_v3 = vpop.permute.xlu1 %5395  ;;  %v3806_v2 = vsel %vm512_vm0, %v2782_v12, %v5378_v43  ;;  %v2784_v43 = vld [vmem:[#allocation2 + $0xc9] sm:$0xff]  ;;  %v2864_v12 = vld [vmem:[#allocation2 + $0x1a0] sm:$0xff] }
 0x41f   : > { %v7634_v7 = vpop.permute.xlu0 %5380  ;;  %v7653_v50 = vpop.permute.xlu2 %5435  ;;  %v5397_v20 = vunpack.i.l.bf16 %v7632_v3  ;;  %v5398_v16 = vunpack.i.h.bf16 %v7632_v3 }
 0x420   : > { %v5382_v33 = vunpack.i.l.bf16 %v7634_v7  ;;  %v5383_v23 = vunpack.i.h.bf16 %v7634_v7 }
 0x421   : > { %v3837_v55 = vsel %vm1658_vm3, %v3805_v34, %v5397_v20  ;;  %v3838_v44 = vsel %vm1658_vm3, %v3806_v2, %v5398_v16  ;;  %v2896_v2 = vld [vmem:[#allocation2 + $0x1a1] sm:$0xff] }
 0x422   : > { %v2925_v28 = vld [vmem:[#allocation2 + $0x182] sm:$0xff]  ;;  %v2926_v47 = vld [vmem:[#allocation2 + $0x18a] sm:$0xff]  ;;  %v3713_v36 = vsel %vm512_vm0, %v2657_v61, %v5382_v33  ;;  %v3714_v19 = vsel %vm512_vm0, %v2658_v41, %v5383_v23  ;;  %v5408_v33 = vunpack.i.h.bf16 %v7579_v35  ;;  %v5413_v23 = vunpack.i.h.bf16 %v7614_v59 }
 0x423   : > { %4079 = vmatmul.f32.gmra.mxu3 %v3775_v5  ;;  %4644 = vmatmul.msk.f32.gmra.mxu0 %vm512_vm0, %v2925_v28  ;;  %v2768_v52 = vld [vmem:[#allocation2 + $0x188] sm:$0xff]  ;;  %v3745_v26 = vsel %vm1658_vm3, %v3713_v36, %v5387_v38  ;;  %v5407_v5 = vunpack.i.l.bf16 %v7579_v35  ;;  %v3746_v10 = vsel %vm1658_vm3, %v3714_v19, %v5388_v21  ;;  %v2659_v36 = vld [vmem:[#allocation2 + $0xd8] sm:$0xff] }
 0x424   : > { %4183 = vmatmul.f32.gmra.mxu2 %v3868_v17  ;;  %v7674_v14 = vld [vmem:[#allocation2 + $0x181] sm:$0xff]  ;;  %v5614_v9 = vpack.i.bf16 %v2768_v52, %v2861_v56  ;;  %v7696_v17 = vld [vmem:[#allocation2 + $0x189] sm:$0xff]  ;;  %v3808_v38 = vsel %vm512_vm0, %v2784_v43, %v5408_v33  ;;  %v2785_v19 = vld [vmem:[#allocation2 + $0xd9] sm:$0xff] }
 0x425   : > { %5600 = vrot.lane.b32.xlu1 %v5599_v62, %s5643_s16  ;;  %3655 = vrot.lane.b32.xlu2 %v7607_v54, %s5643_s16  ;;  %v2661_v33 = vld [vmem:[#allocation2 + $0xf0] sm:$0xff] }
 0x426   : > { %3529 = vrot.lane.b32.xlu0 %v2861_v56, %s5644_s17  ;;  %v7662_v49 = vpop.permute.xlu1 %5415 }
 0x427   : > { %v5401_v8 = vpop.permute.xlu0 %5400  ;;  %v7683_v1 = vpop.permute.xlu2 %5465 }
 0x428   : > { %v5402_v39 = vunpack.i.l.bf16 %v5401_v8  ;;  %v5403_v32 = vunpack.i.h.bf16 %v5401_v8 }
 0x42a   : > { %v3869_v51 = vsel %vm1691_vm4, %v3837_v55, %v5402_v39  ;;  %v3870_v3 = vsel %vm1691_vm4, %v3838_v44, %v5403_v32  ;;  %v5412_v55 = vunpack.i.l.bf16 %v7614_v59  ;;  %v5437_v44 = vunpack.i.l.bf16 %v7653_v50 }
 0x42b   : > { %4082 = vmatmul.f32.gmra.mxu3 %v3776_v48  ;;  %4645 = vmatmul.msk.f32.gmra.mxu0 %vm512_vm0, %v2926_v47 }
 0x42c   : > { %4186 = vmatmul.f32.gmra.mxu2 %v3869_v51  ;;  %v5417_v51 = vunpack.i.l.bf16 %v7662_v49 }
 0x42d   : > { %5605 = vrot.lane.b32.xlu1 %v5599_v62, %s5644_s17  ;;  %3657 = vrot.lane.b32.xlu2 %v7674_v14, %s5643_s16 }
 0x42e   : > { %5615 = vrot.lane.b32.xlu0 %v5614_v9, %s5643_s16  ;;  %v5421_v18 = vpop.permute.xlu1 %5420 }
 0x42f   : > { %v5422_v42 = vunpack.i.l.bf16 %v5421_v18  ;;  %v5431_v6 = vpop.permute.xlu0 %5430  ;;  %v5423_v40 = vunpack.i.h.bf16 %v5421_v18  ;;  %v7706_v8 = vpop.permute.xlu2 %5475  ;;  %v3715_v18 = vsel %vm512_vm0, %v2659_v36, %v5412_v55  ;;  %v2786_v36 = vld [vmem:[#allocation2 + $0xe1] sm:$0xff] }
 0x431   : > { %v3777_v25 = vsel %vm1691_vm4, %v3745_v26, %v5422_v42  ;;  %v3778_v39 = vsel %vm1691_vm4, %v3746_v10, %v5423_v40  ;;  %v5433_v42 = vunpack.i.h.bf16 %v5431_v6 }
 0x433   : > { %4085 = vmatmul.f32.gmra.mxu3 %v3777_v25 }
 0x434   : > { %4189 = vmatmul.f32.gmra.mxu2 %v3870_v3  ;;  %v5418_v3 = vunpack.i.h.bf16 %v7662_v49 }
 0x435   : > { %5610 = vrot.lane.b32.xlu1 %v7621_v60, %s5642_s30  ;;  %3405 = vrot.lane.b32.xlu2 %v2925_v28, %s5642_s30  ;;  %v7698_v62 = vpop.f32.mrf.mxu3  ;;  %v2783_v60 = vld [vmem:[#allocation2 + $0xc1] sm:$0xff]  ;;  %v5432_v28 = vunpack.i.l.bf16 %v5431_v6 }
 0x436   : > { %3659 = vrot.lane.b32.xlu0 %v7696_v17, %s5643_s16  ;;  %v5426_v7 = vpop.permute.xlu1 %5425  ;;  %v3807_v24 = vsel %vm512_vm0, %v2783_v60, %v5407_v5  ;;  %v3809_v60 = vsel %vm512_vm0, %v2785_v19, %v5437_v44  ;;  %v5467_v44 = vunpack.i.l.bf16 %v7683_v1  ;;  %v7769_v19 = vpop.f32.mrf.mxu0 }
 0x437   : > { %v5427_v20 = vunpack.i.l.bf16 %v5426_v7  ;;  %v7704_v56 = vpop.permute.xlu0 %5445  ;;  %v5428_v48 = vunpack.i.h.bf16 %v5426_v7  ;;  %v2660_v7 = vld [vmem:[#allocation2 + $0xe0] sm:$0xff] }
 0x438   : > { %v3716_v59 = vsel %vm512_vm0, %v2660_v7, %v5413_v23 }
 0x439   : > { %v3839_v63 = vsel %vm1658_vm3, %v3807_v24, %v5427_v20  ;;  %v3840_v32 = vsel %vm1658_vm3, %v3808_v38, %v5428_v48  ;;  %v3748_v24 = vsel %vm1658_vm3, %v3716_v59, %v5418_v3  ;;  %v5448_v3 = vunpack.i.h.bf16 %v7704_v56  ;;  %v2787_v59 = vld [vmem:[#allocation2 + $0xf1] sm:$0xff] }
 0x43a   : > { %v3871_v34 = vsel %vm1691_vm4, %v3839_v63, %v5432_v28  ;;  %v3872_v25 = vsel %vm1691_vm4, %v3840_v32, %v5433_v42 }
 0x43b   : > { %4088 = vmatmul.f32.gmra.mxu3 %v3778_v39  ;;  %v5438_v39 = vunpack.i.h.bf16 %v7653_v50 }
 0x43c   : > { %4192 = vmatmul.f32.gmra.mxu2 %v3871_v34 }
 0x43d   : > { %3531 = vrot.lane.b32.xlu1 %v2768_v52, %s5644_s17  ;;  %3407 = vrot.lane.b32.xlu2 %v2926_v47, %s5642_s30  ;;  %v7718_v9 = vpop.f32.mrf.mxu3  ;;  %v3747_v52 = vsel %vm1658_vm3, %v3715_v18, %v5417_v51  ;;  %v7727_v47 = vpop.permute.xlu2 %5480  ;;  %v5447_v51 = vunpack.i.l.bf16 %v7704_v56  ;;  %v3810_v50 = vsel %vm512_vm0, %v2786_v36, %v5438_v39  ;;  %v5468_v39 = vunpack.i.h.bf16 %v7683_v1 }
 0x43e   : > { %3661 = vrot.lane.b32.xlu0 %v2895_v22, %s5643_s16  ;;  %v7721_v61 = vpop.permute.xlu1 %5440  ;;  %v5482_v18 = vunpack.i.l.bf16 %v7727_v47  ;;  %v5477_v36 = vunpack.i.l.bf16 %v7706_v8 }
 0x43f   : > { %v5451_v35 = vpop.permute.xlu0 %5450  ;;  %v5442_v21 = vunpack.i.l.bf16 %v7721_v61  ;;  %v5443_v32 = vunpack.i.h.bf16 %v7721_v61 }
 0x440   : > { %v5452_v16 = vunpack.i.l.bf16 %v5451_v35  ;;  %v5453_v5 = vunpack.i.h.bf16 %v5451_v35 }
 0x441   : > { %v3717_v48 = vsel %vm512_vm0, %v2661_v33, %v5442_v21  ;;  %v5483_v21 = vunpack.i.h.bf16 %v7727_v47 }
 0x442   : > { %v3779_v26 = vsel %vm1691_vm4, %v3747_v52, %v5452_v16  ;;  %v3780_v63 = vsel %vm1691_vm4, %v3748_v24, %v5453_v5  ;;  %v3749_v16 = vsel %vm1658_vm3, %v3717_v48, %v5447_v51 }
 0x443   : > { %4091 = vmatmul.f32.gmra.mxu3 %v3779_v26  ;;  %v3781_v26 = vsel %vm1691_vm4, %v3749_v16, %v5482_v18 }
 0x444   : > { %4195 = vmatmul.f32.gmra.mxu2 %v3872_v25 }
 0x445   : > { %3535 = vrot.lane.b32.xlu1 %v2864_v12, %s5644_s17  ;;  %v7735_v6 = vpop.f32.mrf.mxu3  ;;  %v7746_v22 = vpop.permute.xlu2 %5495 }
 0x446   : > { %3663 = vrot.lane.b32.xlu0 %v2896_v2, %s5643_s16  ;;  %v5456_v41 = vpop.permute.xlu1 %5455  ;;  %v2662_v2 = vld [vmem:[#allocation2 + $0xf8] sm:$0xff] }
 0x447   : > { %v5457_v40 = vunpack.i.l.bf16 %v5456_v41  ;;  %v5461_v20 = vpop.permute.xlu0 %5460  ;;  %v4151_v28 = vpop.f32.mrf.mxu2  ;;  %v5458_v55 = vunpack.i.h.bf16 %v5456_v41  ;;  %v3718_v23 = vsel %vm512_vm0, %v2662_v2, %v5443_v32 }
 0x448   : > { %v5462_v49 = vunpack.i.l.bf16 %v5461_v20  ;;  %v5463_v38 = vunpack.i.h.bf16 %v5461_v20  ;;  %v3750_v7 = vsel %vm1658_vm3, %v3718_v23, %v5448_v3  ;;  %v2664_v3 = vld [vmem:[#allocation2 + $0x110] sm:$0xff] }
 0x449   : > { %v3841_v10 = vsel %vm1658_vm3, %v3809_v60, %v5457_v40  ;;  %v3842_v52 = vsel %vm1658_vm3, %v3810_v50, %v5458_v55  ;;  %v3782_v56 = vsel %vm1691_vm4, %v3750_v7, %v5483_v21  ;;  %v2663_v55 = vld [vmem:[#allocation2 + $0x108] sm:$0xff] }
 0x44a   : > { %v3873_v34 = vsel %vm1691_vm4, %v3841_v10, %v5462_v49  ;;  %v3874_v25 = vsel %vm1691_vm4, %v3842_v52, %v5463_v38  ;;  %v3811_v49 = vsel %vm512_vm0, %v2787_v59, %v5467_v44  ;;  %v2788_v52 = vld [vmem:[#allocation2 + $0xf9] sm:$0xff]  ;;  %v5497_v44 = vunpack.i.l.bf16 %v7746_v22 }
 0x44b   : > { %4094 = vmatmul.f32.gmra.mxu3 %v3780_v63 }
 0x44c   : > { %4198 = vmatmul.f32.gmra.mxu2 %v3873_v34  ;;  %v4152_v34 = vadd.f32 %v4151_v28, %v7698_v62  ;;  %v3812_v28 = vsel %vm512_vm0, %v2788_v52, %v5468_v39 }
 0x44d   : > { %v7750_v43 = vpop.f32.mrf.mxu3  ;;  %v7764_v61 = vpop.permute.xlu2 %5500 }
 0x44e   : > { %v5486_v35 = vpop.permute.xlu1 %5485  ;;  %v4265_v1 = vadd.f32 %v7484_v46, %v4152_v34 }
 0x44f   : > { %v5471_v42 = vpop.permute.xlu0 %5470  ;;  %v4154_v12 = vpop.f32.mrf.mxu2  ;;  %v5487_v41 = vunpack.i.l.bf16 %v5486_v35  ;;  %v5488_v48 = vunpack.i.h.bf16 %v5486_v35 }
 0x450   : > { %v5472_v24 = vunpack.i.l.bf16 %v5471_v42  ;;  %v5473_v35 = vunpack.i.h.bf16 %v5471_v42  ;;  %v4155_v46 = vadd.f32 %v4154_v12, %v7718_v9  ;;  %v5478_v42 = vunpack.i.h.bf16 %v7706_v8 }
 0x451   : > { %v3843_v10 = vsel %vm1658_vm3, %v3811_v49, %v5487_v41  ;;  %v3844_v2 = vsel %vm1658_vm3, %v3812_v28, %v5488_v48  ;;  %v5498_v8 = vunpack.i.h.bf16 %v7746_v22  ;;  %v2665_v28 = vld [vmem:[#allocation2 + $0x120] sm:$0xff] }
 0x452   : > { %v3719_v51 = vsel %vm512_vm0, %v2663_v55, %v5472_v24  ;;  %v3720_v21 = vsel %vm512_vm0, %v2664_v3, %v5473_v35  ;;  %v2789_v24 = vld [vmem:[#allocation2 + $0x109] sm:$0xff]  ;;  %v5503_v3 = vunpack.i.h.bf16 %v7764_v61 }
 0x453   : > { %4097 = vmatmul.f32.gmra.mxu3 %v3781_v26  ;;  %v3751_v62 = vsel %vm1658_vm3, %v3719_v51, %v5477_v36  ;;  %v7787_v26 = vpop.f32.mrf.mxu0  ;;  %v3813_v9 = vsel %vm512_vm0, %v2789_v24, %v5497_v44  ;;  %v5502_v51 = vunpack.i.l.bf16 %v7764_v61 }
 0x454   : > { %4201 = vmatmul.f32.gmra.mxu2 %v3874_v25 }
 0x455   : > { %v7762_v5 = vpop.f32.mrf.mxu3  ;;  %v7782_v50 = vpop.permute.xlu2 %5525 }
 0x457   : > { %v7766_v40 = vpop.permute.xlu1 %5505  ;;  %v4157_v33 = vpop.f32.mrf.mxu2 }
 0x458   : > { %v5491_v20 = vpop.permute.xlu0 %5490  ;;  %v4158_v36 = vadd.f32 %v4157_v33, %v7735_v6  ;;  %v3721_v6 = vsel %vm512_vm0, %v2665_v28, %v5502_v51 }
 0x459   : > { %v5492_v60 = vunpack.i.l.bf16 %v5491_v20  ;;  %v5493_v38 = vunpack.i.h.bf16 %v5491_v20 }
 0x45b   : > { %4100 = vmatmul.f32.gmra.mxu3 %v3782_v56  ;;  %v3875_v63 = vsel %vm1691_vm4, %v3843_v10, %v5492_v60  ;;  %v3876_v23 = vsel %vm1691_vm4, %v3844_v2, %v5493_v38  ;;  %v4268_v56 = vadd.f32 %v7523_v29, %v4155_v46  ;;  %v7809_v48 = vpop.f32.mrf.mxu0  ;;  %v5507_v38 = vunpack.i.l.bf16 %v7766_v40 }
 0x45c   : > { %4204 = vmatmul.f32.gmra.mxu2 %v3875_v63  ;;  %v3752_v63 = vsel %vm1658_vm3, %v3720_v21, %v5478_v42  ;;  %v5527_v21 = vunpack.i.l.bf16 %v7782_v50  ;;  %v5508_v42 = vunpack.i.h.bf16 %v7766_v40 }
 0x45d   : > { %v7778_v47 = vpop.f32.mrf.mxu3  ;;  %v7803_v12 = vpop.permute.xlu2 %5555  ;;  %v3753_v33 = vsel %vm1658_vm3, %v3721_v6, %v5507_v38 }
 0x45f   : > { %v5511_v16 = vpop.permute.xlu1 %5510  ;;  %v4160_v20 = vpop.f32.mrf.mxu2 }
 0x460   : > { %v5512_v18 = vunpack.i.l.bf16 %v5511_v16  ;;  %v5521_v32 = vpop.permute.xlu0 %5520  ;;  %v5513_v41 = vunpack.i.h.bf16 %v5511_v16 }
 0x461   : > { %v5522_v10 = vunpack.i.l.bf16 %v5521_v32  ;;  %v5523_v2 = vunpack.i.h.bf16 %v5521_v32 }
 0x462   : > { %v3783_v25 = vsel %vm1691_vm4, %v3751_v62, %v5512_v18  ;;  %v3784_v39 = vsel %vm1691_vm4, %v3752_v63, %v5513_v41  ;;  %v2790_v18 = vld [vmem:[#allocation2 + $0x111] sm:$0xff] }
 0x463   : > { %4360 = vxpose.xlu2.b32.start [1/16] (narrow) %v4265_v1, 32  ;;  %4103 = vmatmul.f32.gmra.mxu3 %v3783_v25  ;;  %v3814_v22 = vsel %vm512_vm0, %v2790_v18, %v5498_v8  ;;  %v4271_v25 = vadd.f32 %v7569_v37, %v4158_v36  ;;  %v4161_v37 = vadd.f32 %v4160_v20, %v7750_v43  ;;  %v7830_v32 = vpop.f32.mrf.mxu0 }
 0x464   : > { %4207 = vmatmul.f32.gmra.mxu2 %v3876_v23 }
 0x465   : > { %v7826_v41 = vpop.permute.xlu2 %5565 }
 0x466   : > { %v7794_v7 = vpop.f32.mrf.mxu3 }
 0x467   : > { %v5516_v59 = vpop.permute.xlu1 %5515 }
 0x468   : > { %v5517_v60 = vunpack.i.l.bf16 %v5516_v59  ;;  %v7798_v49 = vpop.permute.xlu0 %5535  ;;  %v5518_v29 = vunpack.i.h.bf16 %v5516_v59 }
 0x46a   : > { %v3845_v34 = vsel %vm1658_vm3, %v3813_v9, %v5517_v60  ;;  %v3846_v35 = vsel %vm1658_vm3, %v3814_v22, %v5518_v29  ;;  %v5528_v29 = vunpack.i.h.bf16 %v7782_v50 }
 0x46b   : > { %4361 = vxpose.xlu2.b32.cont [2/16] (narrow) %v4268_v56, 32  ;;  %4106 = vmatmul.f32.gmra.mxu3 %v3784_v39  ;;  %v3877_v55 = vsel %vm1691_vm4, %v3845_v34, %v5522_v10  ;;  %v3878_v46 = vsel %vm1691_vm4, %v3846_v35, %v5523_v2  ;;  %v2666_v10 = vld [vmem:[#allocation2 + $0x128] sm:$0xff]  ;;  %v4274_v34 = vadd.f32 %v7600_v11, %v4161_v37  ;;  %v7851_v6 = vpop.f32.mrf.mxu0  ;;  %v5557_v37 = vunpack.i.l.bf16 %v7803_v12 }
 0x46c   : > { %4210 = vmatmul.f32.gmra.mxu2 %v3877_v55  ;;  %v3722_v9 = vsel %vm512_vm0, %v2666_v10, %v5503_v3  ;;  %v2791_v39 = vld [vmem:[#allocation2 + $0x121] sm:$0xff]  ;;  %v2792_v35 = vld [vmem:[#allocation2 + $0x129] sm:$0xff] }
 0x46d   : > { %v3815_v20 = vsel %vm512_vm0, %v2791_v39, %v5527_v21  ;;  %v3754_v40 = vsel %vm1658_vm3, %v3722_v9, %v5508_v42  ;;  %v5571_v22 = vpop.permute.xlu2 %5570  ;;  %v2793_v39 = vld [vmem:[#allocation2 + $0x139] sm:$0xff] }
 0x46e   : > { %v7814_v16 = vpop.f32.mrf.mxu3 }
 0x46f   : > { %v4163_v52 = vpop.f32.mrf.mxu2  ;;  %v7816_v1 = vpop.permute.xlu1 %5530 }
 0x470   : > { %v5541_v62 = vpop.permute.xlu0 %5540  ;;  %v5532_v8 = vunpack.i.l.bf16 %v7816_v1  ;;  %v4164_v11 = vadd.f32 %v4163_v52, %v7762_v5 }
 0x471   : > { %v5542_v23 = vunpack.i.l.bf16 %v5541_v62  ;;  %v5543_v60 = vunpack.i.h.bf16 %v5541_v62  ;;  %v5537_v62 = vunpack.i.l.bf16 %v7798_v49 }
 0x472   : > { %v3723_v18 = vsel %vm512_vm0, %v7498_v15, %v5532_v8  ;;  %v5572_v15 = vunpack.i.l.bf16 %v5571_v22 }
 0x473   : > { %4362 = vxpose.xlu2.b32.cont [3/16] (narrow) %v4271_v25, 32  ;;  %v3785_v44 = vsel %vm1691_vm4, %v3753_v33, %v5542_v23  ;;  %v3786_v51 = vsel %vm1691_vm4, %v3754_v40, %v5543_v60  ;;  %v3816_v23 = vsel %vm512_vm0, %v2792_v35, %v5528_v29  ;;  %v3755_v5 = vsel %vm1658_vm3, %v3723_v18, %v5537_v62  ;;  %v2794_v18 = vld [vmem:[#allocation2 + $0x141] sm:$0xff] }
 0x474   : > { %4109 = vmatmul.f32.gmra.mxu3 %v3785_v44  ;;  %4213 = vmatmul.f32.gmra.mxu2 %v3878_v46  ;;  %v4277_v44 = vadd.f32 %v7643_v4, %v4164_v11  ;;  %v5533_v46 = vunpack.i.h.bf16 %v7816_v1  ;;  %v3787_v3 = vsel %vm1691_vm4, %v3755_v5, %v5572_v15  ;;  %v5558_v40 = vunpack.i.h.bf16 %v7803_v12 }
 0x475   : > { %v5586_v35 = vpop.permute.xlu2 %5585  ;;  %v5567_v15 = vunpack.i.l.bf16 %v7826_v41 }
 0x476   : > { %v7833_v59 = vpop.f32.mrf.mxu3  ;;  %v3724_v60 = vsel %vm512_vm0, %v7490_v31, %v5533_v46  ;;  %v3818_v62 = vsel %vm512_vm0, %v2794_v18, %v5558_v40  ;;  %v5588_v40 = vunpack.i.h.bf16 %v5586_v35 }
 0x477   : > { %v4166_v24 = vpop.f32.mrf.mxu2  ;;  %v5546_v56 = vpop.permute.xlu1 %5545 }
 0x478   : > { %v5547_v63 = vunpack.i.l.bf16 %v5546_v56  ;;  %v5551_v61 = vpop.permute.xlu0 %5550  ;;  %v5548_v38 = vunpack.i.h.bf16 %v5546_v56  ;;  %v4167_v42 = vadd.f32 %v4166_v24, %v7778_v47  ;;  %v5538_v56 = vunpack.i.h.bf16 %v7798_v49  ;;  %v7873_v24 = vpop.f32.mrf.mxu0 }
 0x479   : > { %v5552_v43 = vunpack.i.l.bf16 %v5551_v61  ;;  %v5553_v50 = vunpack.i.h.bf16 %v5551_v61  ;;  %v3817_v47 = vsel %vm512_vm0, %v2793_v39, %v5557_v37  ;;  %v5568_v39 = vunpack.i.h.bf16 %v7826_v41 }
 0x47a   : > { %v3847_v55 = vsel %vm1658_vm3, %v3815_v20, %v5547_v63  ;;  %v3848_v52 = vsel %vm1658_vm3, %v3816_v23, %v5548_v38  ;;  %v3756_v9 = vsel %vm1658_vm3, %v3724_v60, %v5538_v56  ;;  %v4280_v8 = vadd.f32 %v7671_v27, %v4167_v42 }
 0x47b   : > { %4363 = vxpose.xlu2.b32.cont [4/16] (narrow) %v4274_v34, 32  ;;  %v3879_v36 = vsel %vm1691_vm4, %v3847_v55, %v5552_v43  ;;  %v3880_v21 = vsel %vm1691_vm4, %v3848_v52, %v5553_v50  ;;  %v5573_v34 = vunpack.i.h.bf16 %v5571_v22 }
 0x47c   : > { %4112 = vmatmul.f32.gmra.mxu3 %v3786_v51  ;;  %4216 = vmatmul.f32.gmra.mxu2 %v3879_v36 }
 0x47d   : > { %v3788_v49 = vsel %vm1691_vm4, %v3756_v9, %v5573_v34  ;;  %v5591_v56 = vpop.permute.xlu2 %5590 }
 0x47e   : > { %v7848_v28 = vpop.f32.mrf.mxu3  ;;  %v5592_v41 = vunpack.i.l.bf16 %v5591_v56 }
 0x47f   : > { %v4169_v25 = vpop.f32.mrf.mxu2  ;;  %v5576_v2 = vpop.permute.xlu1 %5575 }
 0x480   : > { %v7853_v33 = vpop.permute.xlu0 %5560  ;;  %v5577_v10 = vunpack.i.l.bf16 %v5576_v2  ;;  %v4170_v55 = vadd.f32 %v4169_v25, %v7794_v7  ;;  %v5578_v29 = vunpack.i.h.bf16 %v5576_v2  ;;  %v7889_v25 = vpop.f32.mrf.mxu0  ;;  %v4424_v2 = vld [vmem:[%s8049_s5] sm:$0xff] }
 0x481   : > { %v5562_v50 = vunpack.i.l.bf16 %v7853_v33 }
 0x482   : > { %v3849_v31 = vsel %vm1658_vm3, %v3817_v47, %v5577_v10  ;;  %v4283_v22 = vadd.f32 %v7769_v19, %v4170_v55  ;;  %v3850_v12 = vsel %vm1658_vm3, %v3818_v62, %v5578_v29  ;;  %v5645_v19 = vmov 0  }
 0x483   : > { %4364 = vxpose.xlu2.b32.cont [5/16] (narrow) %v4277_v44, 32  ;;  %5619 = vset.pattern.permute.xlu0 %v5645_v19  ;;  %v3725_v52 = vsel %vm512_vm0, %v7558_v45, %v5562_v50  ;;  %v4425_v45 = vld [vmem:[%s8049_s5 + $0x8] sm:$0xff]  ;;  %v5587_v10 = vunpack.i.l.bf16 %v5586_v35 }
 0x484   : > { %4115 = vmatmul.f32.gmra.mxu3 %v3787_v3  ;;  %4219 = vmatmul.f32.gmra.mxu2 %v3880_v21  ;;  %v3757_v42 = vsel %vm1658_vm3, %v3725_v52, %v5567_v15  ;;  %v5593_v15 = vunpack.i.h.bf16 %v5591_v56 }
 0x485   : > { %4430 = vperm.xlu0 %5619, %v4424_v2  }
 0x486   : > { %v7866_v4 = vpop.f32.mrf.mxu3 }
 0x487   : > { %v4172_v1 = vpop.f32.mrf.mxu2  ;;  %v7868_v63 = vpop.permute.xlu1 %3533 }
 0x488   : > { %v5581_v61 = vpop.permute.xlu0 %5580  ;;  %v4173_v23 = vadd.f32 %v4172_v1, %v7814_v16  ;;  %v5563_v16 = vunpack.i.h.bf16 %v7853_v33 }
 0x489   : > { %v5582_v43 = vunpack.i.l.bf16 %v5581_v61  ;;  %v5583_v51 = vunpack.i.h.bf16 %v5581_v61  ;;  %v7910_v61 = vpop.f32.mrf.mxu0 }
 0x48a   : > { %v4286_v21 = vadd.f32 %v7787_v26, %v4173_v23  ;;  %v3726_v33 = vsel %vm512_vm0, %v7545_v0, %v5563_v16 }
 0x48b   : > { %4365 = vxpose.xlu2.b32.cont [6/16] (narrow) %v4280_v8, 32  ;;  %v3881_v20 = vsel %vm1691_vm4, %v3849_v31, %v5582_v43  ;;  %v3882_v7 = vsel %vm1691_vm4, %v3850_v12, %v5583_v51  ;;  %v3758_v31 = vsel %vm1658_vm3, %v3726_v33, %v5568_v39  ;;  %v3727_v12 = vsel %vm512_vm0, %v7646_v13, %v5592_v41  ;;  %v4427_v13 = vld [vmem:[%s8049_s5 + $0x18] sm:$0xff] }
 0x48c   : > { %4118 = vmatmul.f32.gmra.mxu3 %v3788_v49  ;;  %4222 = vmatmul.f32.gmra.mxu2 %v3881_v20 }
 0x48d   : > { %4435 = vperm.xlu0 %5619, %v4425_v45  }
 0x48e   : > { %v7880_v27 = vpop.f32.mrf.mxu3 }
 0x48f   : > { %v4175_v36 = vpop.f32.mrf.mxu2  ;;  %v7882_v38 = vpop.permute.xlu1 %5595 }
 0x490   : > { %v3654_v11 = vpop.permute.xlu0 %3653  ;;  %v4176_v1 = vadd.f32 %v4175_v36, %v7833_v59  ;;  %v3819_v59 = vsel %vm512_vm0, %v7551_v58, %v5587_v10  ;;  %v5597_v51 = vunpack.i.l.bf16 %v7882_v38  ;;  %v3656_v36 = vpop.permute.xlu2 %3655 }
 0x491   : > { %v7933_v50 = vpop.f32.mrf.mxu0 }
 0x492   : > { %v4289_v47 = vadd.f32 %v7809_v48, %v4176_v1  ;;  %v4426_v48 = vld [vmem:[%s8049_s5 + $0x10] sm:$0xff]  ;;  %v3759_v23 = vsel %vm1658_vm3, %v3727_v12, %v5597_v51 }
 0x493   : > { %4366 = vxpose.xlu2.b32.cont [7/16] (narrow) %v4283_v22, 32 }
 0x494   : > { %4225 = vmatmul.f32.gmra.mxu2 %v3882_v7 }
 0x495   : > { %4440 = vperm.xlu0 %5619, %v4426_v48  }
 0x496   : > { %v7895_v5 = vpop.f32.mrf.mxu3 }
 0x497   : > { %v4178_v44 = vpop.f32.mrf.mxu2  ;;  %v5601_v46 = vpop.permute.xlu1 %5600 }
 0x498   : > { %v5602_v3 = vunpack.i.l.bf16 %v5601_v46  ;;  %v7901_v37 = vpop.permute.xlu0 %3529  ;;  %v5603_v26 = vunpack.i.h.bf16 %v5601_v46  ;;  %v4179_v58 = vadd.f32 %v4178_v44, %v7848_v28  ;;  %v5598_v44 = vunpack.i.h.bf16 %v7882_v38  ;;  %v3658_v16 = vpop.permute.xlu2 %3657 }
 0x499   : > { %v7958_v45 = vpop.f32.mrf.mxu0 }
 0x49a   : > { %v3789_v60 = vsel %vm1691_vm4, %v3757_v42, %v5602_v3  ;;  %v3790_v49 = vsel %vm1691_vm4, %v3758_v31, %v5603_v26  ;;  %v4292_v2 = vadd.f32 %v7830_v32, %v4179_v58 }
 0x49b   : > { %4367 = vxpose.xlu2.b32.cont [8/16] (narrow) %v4286_v21, 32  ;;  %4121 = vmatmul.f32.gmra.mxu3 %v3789_v60  ;;  %v3728_v60 = vsel %vm512_vm0, %v7641_v53, %v5593_v15  ;;  %v4456_v53 = vld [vmem:[%s8050_s6] sm:$0xff] }
 0x49d   : > { %4445 = vperm.xlu0 %5619, %v4427_v13  }
 0x49e   : > { %v7912_v9 = vpop.f32.mrf.mxu3 }
 0x49f   : > { %v4181_v34 = vpop.f32.mrf.mxu2  ;;  %v5606_v8 = vpop.permute.xlu1 %5605 }
 0x4a0   : > { %v5607_v43 = vunpack.i.l.bf16 %v5606_v8  ;;  %v5616_v55 = vpop.permute.xlu0 %5615  ;;  %v5608_v29 = vunpack.i.h.bf16 %v5606_v8  ;;  %v4182_v32 = vadd.f32 %v4181_v34, %v7866_v4  ;;  %v3760_v4 = vsel %vm1658_vm3, %v3728_v60, %v5598_v44  ;;  %v3406_v31 = vpop.permute.xlu2 %3405 }
 0x4a1   : > { %v5617_v18 = vunpack.i.l.bf16 %v5616_v55  ;;  %v5618_v3 = vunpack.i.h.bf16 %v5616_v55 }
 0x4a2   : > { %v3851_v20 = vsel %vm1658_vm3, %v3819_v59, %v5607_v43  ;;  %v4295_v38 = vadd.f32 %v7851_v6, %v4182_v32  ;;  %v2928_v43 = vld [vmem:[#allocation2 + $0x1a2] sm:$0xff] }
 0x4a3   : > { %4368 = vxpose.xlu2.b32.cont [9/16] (narrow) %v4289_v47, 32  ;;  %4124 = vmatmul.f32.gmra.mxu3 %v3790_v49  ;;  %v3883_v0 = vsel %vm1691_vm4, %v3851_v20, %v3654_v11  ;;  %v3820_v11 = vsel %vm512_vm0, %v7553_v57, %v5588_v40  ;;  %v3791_v19 = vsel %vm1691_vm4, %v3759_v23, %v5617_v18  ;;  %v2927_v57 = vld [vmem:[#allocation2 + $0x19a] sm:$0xff]  ;;  %v4312_v49 = vpop.f32.mrf.mxu0 }
 0x4a4   : > { %4228 = vmatmul.f32.gmra.mxu2 %v3883_v0  ;;  %v3852_v7 = vsel %vm1658_vm3, %v3820_v11, %v5608_v29  ;;  %4646 = vmatmul.msk.f32.gmra.mxu0 %vm512_vm0, %v2927_v57 }
 0x4a5   : > { %v3884_v52 = vsel %vm1691_vm4, %v3852_v7, %v3656_v36  ;;  %4462 = vperm.xlu0 %5619, %v4456_v53  }
 0x4a6   : > { %v7929_v22 = vpop.f32.mrf.mxu3 }
 0x4a7   : > { %v4184_v62 = vpop.f32.mrf.mxu2  ;;  %v5611_v35 = vpop.permute.xlu1 %5610 }
 0x4a8   : > { %v5612_v28 = vunpack.i.l.bf16 %v5611_v35  ;;  %v5613_v10 = vunpack.i.h.bf16 %v5611_v35  ;;  %v3660_v26 = vpop.permute.xlu0 %3659  ;;  %v3408_v48 = vpop.permute.xlu2 %3407 }
 0x4aa   : > { %v3821_v46 = vsel %vm512_vm0, %v7605_v30, %v5612_v28  ;;  %v3792_v30 = vsel %vm1691_vm4, %v3760_v4, %v5618_v3  ;;  %v3822_v39 = vsel %vm512_vm0, %v7607_v54, %v5613_v10 }
 0x4ab   : > { %4369 = vxpose.xlu2.b32.cont [10/16] (narrow) %v4292_v2, 32  ;;  %4127 = vmatmul.f32.gmra.mxu3 %v3791_v19  ;;  %v3853_v56 = vsel %vm1658_vm3, %v3821_v46, %v7901_v37  ;;  %v4185_v37 = vadd.f32 %v4184_v62, %v7880_v27  ;;  %v4457_v27 = vld [vmem:[%s8050_s6 + $0x8] sm:$0xff]  ;;  %v4315_v36 = vpop.f32.mrf.mxu0 }
 0x4ac   : > { %4231 = vmatmul.f32.gmra.mxu2 %v3884_v52  ;;  %v3885_v1 = vsel %vm1691_vm4, %v3853_v56, %v3658_v16 }
 0x4ad   : > { %v4298_v47 = vadd.f32 %v7873_v24, %v4185_v37  ;;  %4467 = vperm.xlu0 %5619, %v4457_v27   ;;  %v3823_v24 = vsel %vm512_vm0, %v7674_v14, %v3406_v31  ;;  %v3824_v14 = vsel %vm512_vm0, %v7696_v17, %v3408_v48 }
 0x4ae   : > { %v7950_v21 = vpop.f32.mrf.mxu3  ;;  %v3855_v41 = vsel %vm1658_vm3, %v3823_v24, %v7868_v63 }
 0x4af   : > { %v4187_v42 = vpop.f32.mrf.mxu2  ;;  %v3532_v6 = vpop.permute.xlu1 %3531 }
 0x4b0   : > { %v3854_v8 = vsel %vm1658_vm3, %v3822_v39, %v3532_v6  ;;  %v4188_v54 = vadd.f32 %v4187_v42, %v7895_v5  ;;  %v3662_v20 = vpop.permute.xlu0 %3661  ;;  %v4458_v5 = vld [vmem:[%s8050_s6 + $0x10] sm:$0xff] }
 0x4b1   : > { %v3886_v59 = vsel %vm1691_vm4, %v3854_v8, %v3660_v26  ;;  %v3887_v29 = vsel %vm1691_vm4, %v3855_v41, %v3662_v20 }
 0x4b2   : > { %v4301_v0 = vadd.f32 %v7889_v25, %v4188_v54 }
 0x4b3   : > { %4370 = vxpose.xlu2.b32.cont [11/16] (narrow) %v4295_v38, 32  ;;  %4130 = vmatmul.f32.gmra.mxu3 %v3792_v30  ;;  %v4318_v17 = vpop.f32.mrf.mxu0 }
 0x4b4   : > { %4234 = vmatmul.f32.gmra.mxu2 %v3885_v1 }
 0x4b5   : > { %4472 = vperm.xlu0 %5619, %v4458_v5  }
 0x4b6   : > { %v4086_v33 = vpop.f32.mrf.mxu3 }
 0x4b7   : > { %v4190_v34 = vpop.f32.mrf.mxu2  ;;  %v3536_v51 = vpop.permute.xlu1 %3535 }
 0x4b8   : > { %v4191_v58 = vadd.f32 %v4190_v34, %v7912_v9  ;;  %v3856_v63 = vsel %vm1658_vm3, %v3824_v14, %v3536_v51  ;;  %v3664_v62 = vpop.permute.xlu0 %3663  ;;  %v4459_v9 = vld [vmem:[%s8050_s6 + $0x18] sm:$0xff] }
 0x4b9   : > { %v3888_v11 = vsel %vm1691_vm4, %v3856_v63, %v3664_v62 }
 0x4ba   : > { %v4304_v35 = vadd.f32 %v7910_v61, %v4191_v58 }
 0x4bb   : > { %4371 = vxpose.xlu2.b32.cont [12/16] (narrow) %v4298_v47, 32  ;;  %4647 = vmatmul.msk.f32.vlgmr.msra.gmra.mxu3 %vm512_vm0, %v2928_v43  ;;  %v4321_v13 = vpop.f32.mrf.mxu0 }
 0x4bc   : > { %4237 = vmatmul.f32.gmra.mxu2 %v3886_v59 }
 0x4bd   : > { %4477 = vperm.xlu0 %5619, %v4459_v9  }
 0x4be   : > { %v4089_v40 = vpop.f32.mrf.mxu3 }
 0x4bf   : > { %v4193_v55 = vpop.f32.mrf.mxu2 }
 0x4c0   : > { %v4194_v12 = vadd.f32 %v4193_v55, %v7929_v22 }
 0x4c2   : > { %v4307_v28 = vadd.f32 %v7933_v50, %v4194_v12 }
 0x4c3   : > { %4372 = vxpose.xlu2.b32.cont [13/16] (narrow) %v4301_v0, 32  ;;  %v4324_v42 = vpop.f32.mrf.mxu0 }
 0x4c4   : > { %4240 = vmatmul.f32.gmra.mxu2 %v3887_v29 }
 0x4c6   : > { %v4092_v25 = vpop.f32.mrf.mxu3 }
 0x4c7   : > { %v4196_v18 = vpop.f32.mrf.mxu2 }
 0x4c8   : > { %v4197_v61 = vadd.f32 %v4196_v18, %v7950_v21 }
 0x4ca   : > { %v4310_v57 = vadd.f32 %v7958_v45, %v4197_v61 }
 0x4cb   : > { %4373 = vxpose.xlu2.b32.cont [14/16] (narrow) %v4304_v35, 32  ;;  %v4327_v21 = vpop.f32.mrf.mxu0 }
 0x4cc   : > { %4243 = vmatmul.f32.gmra.mxu2 %v3888_v11 }
 0x4ce   : > { %v4095_v23 = vpop.f32.mrf.mxu3 }
 0x4cf   : > { %v4199_v7 = vpop.f32.mrf.mxu2 }
 0x4d0   : > { %v4200_v2 = vadd.f32 %v4199_v7, %v4086_v33 }
 0x4d2   : > { %v4313_v19 = vadd.f32 %v4312_v49, %v4200_v2 }
 0x4d3   : > { %4374 = vxpose.xlu2.b32.cont [15/16] (narrow) %v4307_v28, 32  ;;  %v4330_v1 = vpop.f32.mrf.mxu0 }
 0x4d4   : > { %4392 = vxpose.xlu1.b32.start [1/16] (narrow) %v4313_v19, 32 }
 0x4d6   : > { %v4098_v32 = vpop.f32.mrf.mxu3 }
 0x4d7   : > { %v4202_v52 = vpop.f32.mrf.mxu2 }
 0x4d8   : > { %v4203_v15 = vadd.f32 %v4202_v52, %v4089_v40 }
 0x4da   : > { %v4316_v44 = vadd.f32 %v4315_v36, %v4203_v15 }
 0x4db   : > { %4375 = vxpose.xlu2.b32.end [16/16] (narrow) %v4310_v57, 32  ;;  %v4333_v39 = vpop.f32.mrf.mxu0 }
 0x4dc   : > { %4393 = vxpose.xlu1.b32.cont [2/16] (narrow) %v4316_v44, 32 }
 0x4de   : > { %v4101_v50 = vpop.f32.mrf.mxu3 }
 0x4df   : > { %v4205_v22 = vpop.f32.mrf.mxu2 }
 0x4e0   : > { %v4206_v46 = vadd.f32 %v4205_v22, %v4092_v25 }
 0x4e2   : > { %v4319_v3 = vadd.f32 %v4318_v17, %v4206_v46  ;;  %v5625_v17 = vld [vmem:[%s5702_s29] sm:$0xff]  ;;  %v5626_v46 = vld [vmem:[%s5702_s29 + $0x10] sm:$0xff] }
 0x4e3   : > { %v4336_v49 = vpop.f32.mrf.mxu0 }
 0x4e4   : > { %4394 = vxpose.xlu1.b32.cont [3/16] (narrow) %v4319_v3, 32 }
 0x4e6   : > { %v4104_v38 = vpop.f32.mrf.mxu3 }
 0x4e7   : > { %v4208_v16 = vpop.f32.mrf.mxu2 }
 0x4e8   : > { %v4209_v60 = vadd.f32 %v4208_v16, %v4095_v23 }
 0x4ea   : > { %v4322_v56 = vadd.f32 %v4321_v13, %v4209_v60 }
 0x4eb   : > { %v4339_v55 = vpop.f32.mrf.mxu0 }
 0x4ec   : > { %4395 = vxpose.xlu1.b32.cont [4/16] (narrow) %v4322_v56, 32 }
 0x4ee   : > { %v4107_v53 = vpop.f32.mrf.mxu3 }
 0x4ef   : > { %v4211_v4 = vpop.f32.mrf.mxu2 }
 0x4f0   : > { %v4212_v30 = vadd.f32 %v4211_v4, %v4098_v32 }
 0x4f2   : > { %v4325_v45 = vadd.f32 %v4324_v42, %v4212_v30 }
 0x4f3   : > { %v4342_v51 = vpop.f32.mrf.mxu0 }
 0x4f4   : > { %4396 = vxpose.xlu1.b32.cont [5/16] (narrow) %v4325_v45, 32 }
 0x4f7   : > { %v4214_v10 = vpop.f32.mrf.mxu2  ;;  %v4110_v8 = vpop.f32.mrf.mxu3 }
 0x4f8   : > { %v4215_v26 = vadd.f32 %v4214_v10, %v4101_v50  ;;  %v7998_v59 = vpop.permute.xlu0 %4430  ;;  %v5627_v10 = vld [vmem:[%s5702_s29 + $0x20] sm:$0xff] }
 0x4fa   : > { %v4328_v37 = vadd.f32 %v4327_v21, %v4215_v26 }
 0x4fb   : > { %v4345_v35 = vpop.f32.mrf.mxu0 }
 0x4fc   : > { %4397 = vxpose.xlu1.b32.cont [6/16] (narrow) %v4328_v37, 32  ;;  %v4376_v14 = vpop.trf.xlu2 }
 0x4fd   : > { %v4448_v18 = vmul.f32 %v7998_v59, %v4376_v14 }
 0x4ff   : > { %v4217_v6 = vpop.f32.mrf.mxu2  ;;  %v4113_v27 = vpop.f32.mrf.mxu3 }
 0x500   : > { %v4218_v33 = vadd.f32 %v4217_v6, %v4104_v38  ;;  %v8000_v24 = vpop.permute.xlu0 %4435 }
 0x502   : > { %v4331_v34 = vadd.f32 %v4330_v1, %v4218_v33 }
 0x503   : > { %v4348_v32 = vpop.f32.mrf.mxu0 }
 0x504   : > { %4398 = vxpose.xlu1.b32.cont [7/16] (narrow) %v4331_v34, 32  ;;  %v4377_v7 = vpop.trf.xlu2 }
 0x505   : > { %v4450_v19 = vmul.f32 %v8000_v24, %v4377_v7 }
 0x507   : > { %v4220_v43 = vpop.f32.mrf.mxu2  ;;  %v4116_v0 = vpop.f32.mrf.mxu3 }
 0x508   : > { %v4221_v47 = vadd.f32 %v4220_v43, %v4107_v53  ;;  %v8002_v5 = vpop.permute.xlu0 %4440 }
 0x50a   : > { %v4334_v31 = vadd.f32 %v4333_v39, %v4221_v47  ;;  %v5628_v47 = vld [vmem:[%s5702_s29 + $0x30] sm:$0xff] }
 0x50b   : > { %v4351_v26 = vpop.f32.mrf.mxu0 }
 0x50c   : > { %4399 = vxpose.xlu1.b32.cont [8/16] (narrow) %v4334_v31, 32  ;;  %v4378_v22 = vpop.trf.xlu2 }
 0x50d   : > { %v4452_v16 = vmul.f32 %v8002_v5, %v4378_v22 }
 0x50f   : > { %v4223_v54 = vpop.f32.mrf.mxu2  ;;  %v4119_v58 = vpop.f32.mrf.mxu3 }
 0x510   : > { %v4224_v20 = vadd.f32 %v4223_v54, %v4110_v8  ;;  %v8004_v36 = vpop.permute.xlu0 %4445 }
 0x512   : > { %v4337_v40 = vadd.f32 %v4336_v49, %v4224_v20 }
 0x514   : > { %4400 = vxpose.xlu1.b32.cont [9/16] (narrow) %v4337_v40, 32  ;;  %v4379_v30 = vpop.trf.xlu2 }
 0x515   : > { %v4454_v6 = vmul.f32 %v8004_v36, %v4379_v30 }
 0x517   : > { %v4226_v41 = vpop.f32.mrf.mxu2 }
 0x518   : > { %v4227_v29 = vadd.f32 %v4226_v41, %v4113_v27  ;;  %v8007_v9 = vpop.permute.xlu0 %4462 }
 0x519   : > { %v4480_v12 = vadd.f32 %v8007_v9, %v4448_v18  ;;  %v5629_v18 = vld [vmem:[%s5702_s29 + $0x8] sm:$0xff] }
 0x51a   : > { %v4340_v48 = vadd.f32 %v4339_v55, %v4227_v29 }
 0x51b   : > { %v4488_v2 = vadd.f32 %v5625_v17, %v4480_v12  ;;  %v5630_v17 = vld [vmem:[%s5702_s29 + $0x18] sm:$0xff] }
 0x51c   : > { %4401 = vxpose.xlu1.b32.cont [10/16] (narrow) %v4340_v48, 32 }
 0x51d   : > { %v4496_v23 = vmul.f32 0.1, %v4488_v2 }
 0x51e   : > { %v4122_v62 = vpop.f32.mrf.mxu3 }
 0x51f   : > { %v4504_v52 = vmax.f32 %v4488_v2, %v4496_v23 }
 0x520   : > { %v4468_v57 = vpop.permute.xlu0 %4467 }
 0x521   : > { %4512 = vst [vmem:[%s8017_s19] sm:$0xff] %v4504_v52  ;;  %v4482_v44 = vadd.f32 %v4468_v57, %v4450_v19  ;;  %v4354_v49 = vpop.f32.mrf.mxu0 }
 0x523   : > { %v4490_v3 = vadd.f32 %v5626_v46, %v4482_v44 }
 0x525   : > { %v4498_v50 = vmul.f32 0.1, %v4490_v3 }
 0x526   : > { %v4125_v13 = vpop.f32.mrf.mxu3 }
 0x527   : > { %v4229_v25 = vpop.f32.mrf.mxu2  ;;  %v4506_v56 = vmax.f32 %v4490_v3, %v4498_v50 }
 0x528   : > { %v4230_v63 = vadd.f32 %v4229_v25, %v4116_v0  ;;  %v4473_v38 = vpop.permute.xlu0 %4472 }
 0x529   : > { %4514 = vst [vmem:[%s8017_s19 + $0x10] sm:$0xff] %v4506_v56  ;;  %v4484_v4 = vadd.f32 %v4473_v38, %v4452_v16 }
 0x52a   : > { %v4343_v11 = vadd.f32 %v4342_v51, %v4230_v63 }
 0x52b   : > { %v4492_v1 = vadd.f32 %v5627_v10, %v4484_v4 }
 0x52c   : > { %4402 = vxpose.xlu1.b32.cont [11/16] (narrow) %v4343_v11, 32 }
 0x52d   : > { %v4500_v37 = vmul.f32 0.1, %v4492_v1 }
 0x52e   : > { %v4128_v45 = vpop.f32.mrf.mxu3 }
 0x52f   : > { %v4232_v28 = vpop.f32.mrf.mxu2  ;;  %v4508_v39 = vmax.f32 %v4492_v1, %v4500_v37 }
 0x530   : > { %v4233_v61 = vadd.f32 %v4232_v28, %v4119_v58  ;;  %v4478_v8 = vpop.permute.xlu0 %4477 }
 0x531   : > { %4516 = vst [vmem:[%s8017_s19 + $0x20] sm:$0xff] %v4508_v39  ;;  %v4486_v43 = vadd.f32 %v4478_v8, %v4454_v6 }
 0x532   : > { %v4346_v15 = vadd.f32 %v4345_v35, %v4233_v61  ;;  %v5631_v61 = vld [vmem:[%s5702_s29 + $0x28] sm:$0xff] }
 0x533   : > { %v4494_v31 = vadd.f32 %v5628_v47, %v4486_v43 }
 0x534   : > { %4403 = vxpose.xlu1.b32.cont [12/16] (narrow) %v4346_v15, 32 }
 0x535   : > { %v4502_v20 = vmul.f32 0.1, %v4494_v31 }
 0x536   : > { %v4131_v27 = vpop.f32.mrf.mxu3 }
 0x537   : > { %v4235_v42 = vpop.f32.mrf.mxu2  ;;  %v4510_v55 = vmax.f32 %v4494_v31, %v4502_v20 }
 0x538   : > { %v4236_v60 = vadd.f32 %v4235_v42, %v4122_v62 }
 0x539   : > { %4518 = vst [vmem:[%s8017_s19 + $0x30] sm:$0xff] %v4510_v55 }
 0x53a   : > { %v4349_v21 = vadd.f32 %v4348_v32, %v4236_v60  ;;  %v5632_v32 = vld [vmem:[%s5702_s29 + $0x38] sm:$0xff] }
 0x53c   : > { %4404 = vxpose.xlu1.b32.cont [13/16] (narrow) %v4349_v21, 32 }
 0x53e   : > { %v4357_v29 = vpop.f32.mrf.mxu3 }
 0x53f   : > { %v4238_v53 = vpop.f32.mrf.mxu2 }
 0x540   : > { %v4239_v33 = vadd.f32 %v4238_v53, %v4125_v13 }
 0x542   : > { %v4352_v34 = vadd.f32 %v4351_v26, %v4239_v33 }
 0x544   : > { %4405 = vxpose.xlu1.b32.cont [14/16] (narrow) %v4352_v34, 32 }
 0x547   : > { %v4241_v54 = vpop.f32.mrf.mxu2 }
 0x548   : > { %v4242_v40 = vadd.f32 %v4241_v54, %v4128_v45 }
 0x54a   : > { %v4355_v0 = vadd.f32 %v4354_v49, %v4242_v40 }
 0x54c   : > { %4406 = vxpose.xlu1.b32.cont [15/16] (narrow) %v4355_v0, 32 }
 0x54f   : > { %v4244_v41 = vpop.f32.mrf.mxu2 }
 0x550   : > { %v4245_v48 = vadd.f32 %v4244_v41, %v4131_v27 }
 0x552   : > { %v4358_v51 = vadd.f32 %v4357_v29, %v4245_v48 }
 0x554   : > { %4407 = vxpose.xlu1.b32.end [16/16] (narrow) %v4358_v51, 32 }
 0x580   : > { %v4408_v58 = vpop.trf.xlu1 }
 0x581   : > { %v4449_v14 = vmul.f32 %v7998_v59, %v4408_v58 }
 0x583   : > { %v4481_v25 = vadd.f32 %v8007_v9, %v4449_v14 }
 0x585   : > { %v4489_v63 = vadd.f32 %v5629_v18, %v4481_v25 }
 0x587   : > { %v4497_v62 = vmul.f32 0.1, %v4489_v63 }
 0x588   : > { %v4409_v35 = vpop.trf.xlu1 }
 0x589   : > { %v4505_v11 = vmax.f32 %v4489_v63, %v4497_v62  ;;  %v4451_v12 = vmul.f32 %v8000_v24, %v4409_v35 }
 0x58b   : > { %4513 = vst [vmem:[%s8017_s19 + $0x8] sm:$0xff] %v4505_v11  ;;  %v4483_v7 = vadd.f32 %v4468_v57, %v4451_v12 }
 0x58d   : > { %v4491_v2 = vadd.f32 %v5630_v17, %v4483_v7 }
 0x58f   : > { %v4499_v28 = vmul.f32 0.1, %v4491_v2 }
 0x590   : > { %v4410_v23 = vpop.trf.xlu1 }
 0x591   : > { %v4507_v59 = vmax.f32 %v4491_v2, %v4499_v28  ;;  %v4453_v9 = vmul.f32 %v8002_v5, %v4410_v23 }
 0x593   : > { %4515 = vst [vmem:[%s8017_s19 + $0x18] sm:$0xff] %v4507_v59  ;;  %v4485_v19 = vadd.f32 %v4473_v38, %v4453_v9 }
 0x595   : > { %v4493_v52 = vadd.f32 %v5631_v61, %v4485_v19 }
 0x597   : > { %v4501_v15 = vmul.f32 0.1, %v4493_v52 }
 0x598   : > { %v4411_v13 = vpop.trf.xlu1 }
 0x599   : > { %v4509_v44 = vmax.f32 %v4493_v52, %v4501_v15  ;;  %v4455_v24 = vmul.f32 %v8004_v36, %v4411_v13 }
 0x59b   : > { %4517 = vst [vmem:[%s8017_s19 + $0x28] sm:$0xff] %v4509_v44  ;;  %v4487_v57 = vadd.f32 %v4478_v8, %v4455_v24 }
 0x59d   : > { %v4495_v22 = vadd.f32 %v5632_v32, %v4487_v57 }
 0x59f   : > { %v4503_v46 = vmul.f32 0.1, %v4495_v22 }
 0x5a1   : > { %v4511_v3 = vmax.f32 %v4495_v22, %v4503_v46 }
 0x5a3   : > { %4519 = vst [vmem:[%s8017_s19 + $0x38] sm:$0xff] %v4511_v3 }
 0x5a4 PF: > { %s17_s24 = sadd.s32 1, %s5639_s24  }
 0x5a5   : > { %p14_p4 = scmp.ge.s32.totalorder %s17_s24, 4  }
 0x5a7   :  { %16 = sbr.rel (!%p14_p4) target bundleno = 1 (0x1), region = 80 }

</bundles_post_ra>
